<compile_context>
chip_gen: v7x
topology: tpu7x:2x2x1
jax: 0.10.0
libtpu: 0.0.40
codegen_flags: <defaults>
</compile_context>

<pallas_src>
import functools

import jax
import jax.numpy as jnp
import numpy as np
from jax import lax
from jax.experimental import pallas as pl
from jax.experimental.pallas import tpu as pltpu

KSIZE = 21
PAD = 10
C1 = 0.01 ** 2
C2 = 0.03 ** 2


def _pool_count_matrix(n: int) -> np.ndarray:
    """(n, n) matrix M with M[o, i] = #times original index i is hit by the
    21-tap window of output position o under ReflectionPad2d(10).
    For a 1-D signal v:  avg_pool21(reflect_pad10(v))[o] == (M @ v)[o] / 21."""
    assert n > PAD, "ReflectionPad2d(10) requires spatial dims >= 11"
    p = np.arange(n)[:, None] + np.arange(KSIZE)[None, :] - PAD   # signed coords
    q = np.abs(p)                                                 # reflect at 0
    q = np.where(q >= n, 2 * (n - 1) - q, q)                      # reflect at n-1
    m = np.zeros((n, n), np.float32)
    np.add.at(m, (np.repeat(np.arange(n), KSIZE), q.reshape(-1)), 1.0)
    return m


def _vmem_limit_bytes() -> int:
    """Generation-aware scoped-VMEM limit (~3/4 of physical, <= 100 MiB)."""
    try:
        info = pltpu.get_tpu_info()
        cap = int(getattr(info, "vmem_capacity_bytes", 0)) or 64 * 1024 * 1024
    except Exception:
        cap = 64 * 1024 * 1024
    return min((cap * 3) // 4, 100 * 1024 * 1024)


def _choose_block_batch(B: int, H: int, W: int, budget_bytes: int) -> int:
    """Planes per grid step.  Prefer, in order: a batch grid with >= 2 steps
    (so the "parallel" axis can be split across TensorCores), an even number
    of grid steps (v7x has 2 TCs), then the largest block within the VMEM
    budget.  bt must divide B and keep the (bt*H, W) block sublane-aligned."""
    plane_bytes = H * W * 4
    bt_cap = max(1, budget_bytes // plane_bytes)
    cands = [d for d in range(1, B + 1)
             if B % d == 0 and (d * H) % 8 == 0 and d <= bt_cap]
    if not cands:
        cands = [d for d in range(1, B + 1)
                 if B % d == 0 and ((d * H) % 8 == 0 or d == B)]

    def score(d):
        g = B // d
        return (g >= 2, g % 2 == 0, d)

    return max(cands, key=score)


def ssim_kernel(x_ref, y_ref, a_ref, b_ref, o_ref, r_ref, *, bt, h):
    # x_ref, y_ref : (bt*h, W) stacked image planes (plane t = rows [t*h, (t+1)*h))
    # a_ref        : (h, h) row-pool tap counts     (constant across the grid)
    # b_ref        : (W, W) column-pool tap counts  (constant across the grid)
    # o_ref        : (bt*h, W) SSIM loss map
    # r_ref        : (bt*h, W) f32 VMEM scratch slab (row-pool streaming buffer)
    inv_area = 1.0 / float(KSIZE * KSIZE)

    def pool(q):
        # q: (bt*h, W) f32.  Per plane: pool(reflect_pad(plane)) == A @ plane @ B / 441.
        b = b_ref[...]
        c = jnp.dot(q, b, preferred_element_type=jnp.float32)   # batched column pool
        a = a_ref[...]
        if bt == 1:
            return jnp.dot(a, c, preferred_element_type=jnp.float32) * inv_area
        if bt <= 16:
            # short static unroll; stream each plane's row pool into scratch
            for t in range(bt):
                r_ref[pl.ds(t * h, h), :] = jnp.dot(
                    a, c[t * h:(t + 1) * h, :], preferred_element_type=jnp.float32)
        else:
            def body(t, carry):
                off = t * h
                if h % 8 == 0:
                    off = pl.multiple_of(off, 8)
                blk = lax.dynamic_slice_in_dim(c, off, h, axis=0)
                r_ref[pl.ds(off, h), :] = jnp.dot(
                    a, blk, preferred_element_type=jnp.float32)
                return carry
            lax.fori_loop(0, bt, body, 0)
        return r_ref[...] * inv_area

    x = x_ref[...].astype(jnp.float32)
    y = y_ref[...].astype(jnp.float32)

    mu_x = pool(x)
    mu_y = pool(y)
    sigma_x = pool(x * x) - mu_x * mu_x
    sigma_y = pool(y * y) - mu_y * mu_y
    sigma_xy = pool(x * y) - mu_x * mu_y

    ssim_n = (2.0 * mu_x * mu_y + C1) * (2.0 * sigma_xy + C2)
    ssim_d = (mu_x * mu_x + mu_y * mu_y + C1) * (sigma_x + sigma_y + C2)
    inv_d = pl.reciprocal(ssim_d, approx=True)          # EUP
    inv_d = inv_d * (2.0 - ssim_d * inv_d)              # one Newton step -> ~f32 exact
    o_ref[...] = jnp.clip((1.0 - ssim_n * inv_d) * 0.5, 0.0, 1.0).astype(o_ref.dtype)


def _build_call(B, H, W, bt, g, out_dtype, vmem_limit, single_buffer_taps):
    tap_kw = {"pipeline_mode": pl.Buffered(1)} if single_buffer_taps else {}
    return pl.pallas_call(
        functools.partial(ssim_kernel, bt=bt, h=H),
        out_shape=jax.ShapeDtypeStruct((B * H, W), out_dtype),
        grid=(g,),
        in_specs=[
            pl.BlockSpec((bt * H, W), lambda i: (i, 0)),
            pl.BlockSpec((bt * H, W), lambda i: (i, 0)),
            pl.BlockSpec((H, H), lambda i: (0, 0), **tap_kw),
            pl.BlockSpec((W, W), lambda i: (0, 0), **tap_kw),
        ],
        out_specs=pl.BlockSpec((bt * H, W), lambda i: (i, 0)),
        scratch_shapes=[pltpu.VMEM((bt * H, W), jnp.float32)],
        compiler_params=pltpu.CompilerParams(
            dimension_semantics=("parallel",),
            vmem_limit_bytes=int(vmem_limit),
        ),
    )


def ssim_pallas(x, y):
    """x, y: (N, C, H, W) float32 -> (N, C, H, W) SSIM loss map."""
    N, C, H, W = x.shape
    B = N * C
    xf = x.reshape(B * H, W)                 # free row-major collapse
    yf = y.reshape(B * H, W)

    a_row = jnp.asarray(_pool_count_matrix(H))          # (H, H)
    b_col = jnp.asarray(_pool_count_matrix(W).T)        # (W, W), right-multiply form

    vmem_limit = _vmem_limit_bytes()
    tap_bytes = (H * H + W * W) * 4
    # Per-step footprint ~ 2 inputs x 2 bufs + 2 output bufs + scratch slab
    # + ~5 pooled slabs + working set ~= 14 x block, plus the tap matrices.
    blk_budget = max(H * W * 4, (vmem_limit * 6 // 10 - tap_bytes) // 14)

    bt = _choose_block_batch(B, H, W, blk_budget)
    g = B // bt

    try:
        out = _build_call(B, H, W, bt, g, x.dtype, vmem_limit, True)(
            xf, yf, a_row, b_col)
    except Exception:
        # Fallback if Buffered(1) single-buffering of the constant taps is
        # rejected by this jax version: identical kernel, default buffering.
        out = _build_call(B, H, W, bt, g, x.dtype, vmem_limit, False)(
            xf, yf, a_row, b_col)

    return out.reshape(N, C, H, W)


def ssim_ref(x, y):
    """Pure-JAX reference (identical semantics to the PyTorch module)."""
    def pool(a):  # a: (N, C, Hp, Wp)
        s = lax.reduce_window(a, 0.0, lax.add,
                              (1, 1, KSIZE, KSIZE), (1, 1, 1, 1), "VALID")
        return s / float(KSIZE * KSIZE)

    xp = jnp.pad(x, ((0, 0), (0, 0), (PAD, PAD), (PAD, PAD)), mode="reflect")
    yp = jnp.pad(y, ((0, 0), (0, 0), (PAD, PAD), (PAD, PAD)), mode="reflect")
    mu_x = pool(xp)
    mu_y = pool(yp)
    sigma_x = pool(xp * xp) - mu_x ** 2
    sigma_y = pool(yp * yp) - mu_y ** 2
    sigma_xy = pool(xp * yp) - mu_x * mu_y
    n = (2 * mu_x * mu_y + C1) * (2 * sigma_xy + C2)
    d = (mu_x ** 2 + mu_y ** 2 + C1) * (sigma_x + sigma_y + C2)
    return jnp.clip((1 - n / d) / 2, 0.0, 1.0)


if __name__ == "__main__":
    key = jax.random.PRNGKey(0)
    kx, ky = jax.random.split(key)
    N, C, H, W = 2, 4, 16, 16
    x = jax.random.uniform(kx, (N, C, H, W), dtype=jnp.float32)
    y = jax.random.uniform(ky, (N, C, H, W), dtype=jnp.float32)

    out = jax.block_until_ready(ssim_pallas(x, y))
    ref = jax.block_until_ready(ssim_ref(x, y))

    assert out.shape == (N, C, H, W)
    err = float(jnp.max(jnp.abs(out - ref)))
    assert err < 1e-4, f"max abs err = {err}"

    print("KERNEL_OK")
</pallas_src>

<mosaic_0001>
module attributes {stable_mosaic.version = 11 : i64} {
  func.func @ssim_kernel(%arg0: i32, %arg1: memref<64x16xf32, #tpu.memory_space<vmem>>, %arg2: memref<64x16xf32, #tpu.memory_space<vmem>>, %arg3: memref<16x16xf32, #tpu.memory_space<vmem>>, %arg4: memref<16x16xf32, #tpu.memory_space<vmem>>, %arg5: memref<64x16xf32, #tpu.memory_space<vmem>>, %arg6: memref<64x16xf32, #tpu.memory_space<vmem>>) attributes {dimension_semantics = [#tpu.dimension_semantics<parallel>], iteration_bounds = array<i64: 2>, scalar_prefetch = 0 : i64, scratch_operands = 1 : i64, tpu.core_type = #tpu.core_type<tc>, window_params = [{transform_indices = @transform_0, window_bounds = array<i64: 64, 16>}, {transform_indices = @transform_1, window_bounds = array<i64: 64, 16>}, {pipeline_mode = #tpu.pipeline_mode<synchronous>, transform_indices = @transform_2, window_bounds = array<i64: 16, 16>}, {pipeline_mode = #tpu.pipeline_mode<synchronous>, transform_indices = @transform_3, window_bounds = array<i64: 16, 16>}, {transform_indices = @transform_4, window_bounds = array<i64: 64, 16>}]} {
    %c0 = arith.constant 0 : index
    %c0_0 = arith.constant 0 : index
    %0 = vector.load %arg1[%c0, %c0_0] : memref<64x16xf32, #tpu.memory_space<vmem>>, vector<64x16xf32>
    %c0_1 = arith.constant 0 : index
    %c0_2 = arith.constant 0 : index
    %1 = vector.load %arg2[%c0_1, %c0_2] : memref<64x16xf32, #tpu.memory_space<vmem>>, vector<64x16xf32>
    %c0_3 = arith.constant 0 : index
    %c0_4 = arith.constant 0 : index
    %2 = vector.load %arg4[%c0_3, %c0_4] : memref<16x16xf32, #tpu.memory_space<vmem>>, vector<16x16xf32>
    %cst = arith.constant dense<0.000000e+00> : vector<64x16xf32>
    %3 = tpu.matmul %0, %2, %cst {dimension_numbers = #tpu.dot_dimension_numbers<[1], [0], [0], [1], [0, 0, 1, 1], [], []>} : vector<64x16xf32>, vector<16x16xf32>, vector<64x16xf32> -> vector<64x16xf32>
    %c0_5 = arith.constant 0 : index
    %c0_6 = arith.constant 0 : index
    %4 = vector.load %arg3[%c0_5, %c0_6] : memref<16x16xf32, #tpu.memory_space<vmem>>, vector<16x16xf32>
    %5 = vector.extract_strided_slice %3 {offsets = [0, 0], sizes = [16, 16], strides = [1, 1]} : vector<64x16xf32> to vector<16x16xf32>
    %cst_7 = arith.constant dense<0.000000e+00> : vector<16x16xf32>
    %6 = tpu.matmul %4, %5, %cst_7 {dimension_numbers = #tpu.dot_dimension_numbers<[1], [0], [0], [1], [0, 0, 1, 1], [], []>} : vector<16x16xf32>, vector<16x16xf32>, vector<16x16xf32> -> vector<16x16xf32>
    %c0_8 = arith.constant 0 : index
    %c0_9 = arith.constant 0 : index
    %7 = vector.load %arg6[%c0_8, %c0_9] : memref<64x16xf32, #tpu.memory_space<vmem>>, vector<16x16xf32>
    tpu.vector_store %arg6[%c0_8, %c0_9], %6 {strides = array<i32>} : memref<64x16xf32, #tpu.memory_space<vmem>>, vector<16x16xf32>,
    %8 = vector.extract_strided_slice %3 {offsets = [16, 0], sizes = [16, 16], strides = [1, 1]} : vector<64x16xf32> to vector<16x16xf32>
    %cst_10 = arith.constant dense<0.000000e+00> : vector<16x16xf32>
    %9 = tpu.matmul %4, %8, %cst_10 {dimension_numbers = #tpu.dot_dimension_numbers<[1], [0], [0], [1], [0, 0, 1, 1], [], []>} : vector<16x16xf32>, vector<16x16xf32>, vector<16x16xf32> -> vector<16x16xf32>
    %c16 = arith.constant 16 : index
    %c0_11 = arith.constant 0 : index
    %10 = vector.load %arg6[%c16, %c0_11] : memref<64x16xf32, #tpu.memory_space<vmem>>, vector<16x16xf32>
    tpu.vector_store %arg6[%c16, %c0_11], %9 {strides = array<i32>} : memref<64x16xf32, #tpu.memory_space<vmem>>, vector<16x16xf32>,
    %11 = vector.extract_strided_slice %3 {offsets = [32, 0], sizes = [16, 16], strides = [1, 1]} : vector<64x16xf32> to vector<16x16xf32>
    %cst_12 = arith.constant dense<0.000000e+00> : vector<16x16xf32>
    %12 = tpu.matmul %4, %11, %cst_12 {dimension_numbers = #tpu.dot_dimension_numbers<[1], [0], [0], [1], [0, 0, 1, 1], [], []>} : vector<16x16xf32>, vector<16x16xf32>, vector<16x16xf32> -> vector<16x16xf32>
    %c32 = arith.constant 32 : index
    %c0_13 = arith.constant 0 : index
    %13 = vector.load %arg6[%c32, %c0_13] : memref<64x16xf32, #tpu.memory_space<vmem>>, vector<16x16xf32>
    tpu.vector_store %arg6[%c32, %c0_13], %12 {strides = array<i32>} : memref<64x16xf32, #tpu.memory_space<vmem>>, vector<16x16xf32>,
    %14 = vector.extract_strided_slice %3 {offsets = [48, 0], sizes = [16, 16], strides = [1, 1]} : vector<64x16xf32> to vector<16x16xf32>
    %cst_14 = arith.constant dense<0.000000e+00> : vector<16x16xf32>
    %15 = tpu.matmul %4, %14, %cst_14 {dimension_numbers = #tpu.dot_dimension_numbers<[1], [0], [0], [1], [0, 0, 1, 1], [], []>} : vector<16x16xf32>, vector<16x16xf32>, vector<16x16xf32> -> vector<16x16xf32>
    %c48 = arith.constant 48 : index
    %c0_15 = arith.constant 0 : index
    %16 = vector.load %arg6[%c48, %c0_15] : memref<64x16xf32, #tpu.memory_space<vmem>>, vector<16x16xf32>
    tpu.vector_store %arg6[%c48, %c0_15], %15 {strides = array<i32>} : memref<64x16xf32, #tpu.memory_space<vmem>>, vector<16x16xf32>,
    %c0_16 = arith.constant 0 : index
    %c0_17 = arith.constant 0 : index
    %17 = vector.load %arg6[%c0_16, %c0_17] : memref<64x16xf32, #tpu.memory_space<vmem>>, vector<64x16xf32>
    %cst_18 = arith.constant 0.00226757373 : f32
    %18 = vector.broadcast %cst_18 : f32 to vector<64x16xf32>
    %19 = arith.mulf %17, %18 : vector<64x16xf32>
    %c0_19 = arith.constant 0 : index
    %c0_20 = arith.constant 0 : index
    %20 = vector.load %arg4[%c0_19, %c0_20] : memref<16x16xf32, #tpu.memory_space<vmem>>, vector<16x16xf32>
    %cst_21 = arith.constant dense<0.000000e+00> : vector<64x16xf32>
    %21 = tpu.matmul %1, %20, %cst_21 {dimension_numbers = #tpu.dot_dimension_numbers<[1], [0], [0], [1], [0, 0, 1, 1], [], []>} : vector<64x16xf32>, vector<16x16xf32>, vector<64x16xf32> -> vector<64x16xf32>
    %c0_22 = arith.constant 0 : index
    %c0_23 = arith.constant 0 : index
    %22 = vector.load %arg3[%c0_22, %c0_23] : memref<16x16xf32, #tpu.memory_space<vmem>>, vector<16x16xf32>
    %23 = vector.extract_strided_slice %21 {offsets = [0, 0], sizes = [16, 16], strides = [1, 1]} : vector<64x16xf32> to vector<16x16xf32>
    %cst_24 = arith.constant dense<0.000000e+00> : vector<16x16xf32>
    %24 = tpu.matmul %22, %23, %cst_24 {dimension_numbers = #tpu.dot_dimension_numbers<[1], [0], [0], [1], [0, 0, 1, 1], [], []>} : vector<16x16xf32>, vector<16x16xf32>, vector<16x16xf32> -> vector<16x16xf32>
    %c0_25 = arith.constant 0 : index
    %c0_26 = arith.constant 0 : index
    %25 = vector.load %arg6[%c0_25, %c0_26] : memref<64x16xf32, #tpu.memory_space<vmem>>, vector<16x16xf32>
    tpu.vector_store %arg6[%c0_25, %c0_26], %24 {strides = array<i32>} : memref<64x16xf32, #tpu.memory_space<vmem>>, vector<16x16xf32>,
    %26 = vector.extract_strided_slice %21 {offsets = [16, 0], sizes = [16, 16], strides = [1, 1]} : vector<64x16xf32> to vector<16x16xf32>
    %cst_27 = arith.constant dense<0.000000e+00> : vector<16x16xf32>
    %27 = tpu.matmul %22, %26, %cst_27 {dimension_numbers = #tpu.dot_dimension_numbers<[1], [0], [0], [1], [0, 0, 1, 1], [], []>} : vector<16x16xf32>, vector<16x16xf32>, vector<16x16xf32> -> vector<16x16xf32>
    %c16_28 = arith.constant 16 : index
    %c0_29 = arith.constant 0 : index
    %28 = vector.load %arg6[%c16_28, %c0_29] : memref<64x16xf32, #tpu.memory_space<vmem>>, vector<16x16xf32>
    tpu.vector_store %arg6[%c16_28, %c0_29], %27 {strides = array<i32>} : memref<64x16xf32, #tpu.memory_space<vmem>>, vector<16x16xf32>,
    %29 = vector.extract_strided_slice %21 {offsets = [32, 0], sizes = [16, 16], strides = [1, 1]} : vector<64x16xf32> to vector<16x16xf32>
    %cst_30 = arith.constant dense<0.000000e+00> : vector<16x16xf32>
    %30 = tpu.matmul %22, %29, %cst_30 {dimension_numbers = #tpu.dot_dimension_numbers<[1], [0], [0], [1], [0, 0, 1, 1], [], []>} : vector<16x16xf32>, vector<16x16xf32>, vector<16x16xf32> -> vector<16x16xf32>
    %c32_31 = arith.constant 32 : index
    %c0_32 = arith.constant 0 : index
    %31 = vector.load %arg6[%c32_31, %c0_32] : memref<64x16xf32, #tpu.memory_space<vmem>>, vector<16x16xf32>
    tpu.vector_store %arg6[%c32_31, %c0_32], %30 {strides = array<i32>} : memref<64x16xf32, #tpu.memory_space<vmem>>, vector<16x16xf32>,
    %32 = vector.extract_strided_slice %21 {offsets = [48, 0], sizes = [16, 16], strides = [1, 1]} : vector<64x16xf32> to vector<16x16xf32>
    %cst_33 = arith.constant dense<0.000000e+00> : vector<16x16xf32>
    %33 = tpu.matmul %22, %32, %cst_33 {dimension_numbers = #tpu.dot_dimension_numbers<[1], [0], [0], [1], [0, 0, 1, 1], [], []>} : vector<16x16xf32>, vector<16x16xf32>, vector<16x16xf32> -> vector<16x16xf32>
    %c48_34 = arith.constant 48 : index
    %c0_35 = arith.constant 0 : index
    %34 = vector.load %arg6[%c48_34, %c0_35] : memref<64x16xf32, #tpu.memory_space<vmem>>, vector<16x16xf32>
    tpu.vector_store %arg6[%c48_34, %c0_35], %33 {strides = array<i32>} : memref<64x16xf32, #tpu.memory_space<vmem>>, vector<16x16xf32>,
    %c0_36 = arith.constant 0 : index
    %c0_37 = arith.constant 0 : index
    %35 = vector.load %arg6[%c0_36, %c0_37] : memref<64x16xf32, #tpu.memory_space<vmem>>, vector<64x16xf32>
    %cst_38 = arith.constant 0.00226757373 : f32
    %36 = vector.broadcast %cst_38 : f32 to vector<64x16xf32>
    %37 = arith.mulf %35, %36 : vector<64x16xf32>
    %38 = arith.mulf %0, %0 : vector<64x16xf32>
    %c0_39 = arith.constant 0 : index
    %c0_40 = arith.constant 0 : index
    %39 = vector.load %arg4[%c0_39, %c0_40] : memref<16x16xf32, #tpu.memory_space<vmem>>, vector<16x16xf32>
    %cst_41 = arith.constant dense<0.000000e+00> : vector<64x16xf32>
    %40 = tpu.matmul %38, %39, %cst_41 {dimension_numbers = #tpu.dot_dimension_numbers<[1], [0], [0], [1], [0, 0, 1, 1], [], []>} : vector<64x16xf32>, vector<16x16xf32>, vector<64x16xf32> -> vector<64x16xf32>
    %c0_42 = arith.constant 0 : index
    %c0_43 = arith.constant 0 : index
    %41 = vector.load %arg3[%c0_42, %c0_43] : memref<16x16xf32, #tpu.memory_space<vmem>>, vector<16x16xf32>
    %42 = vector.extract_strided_slice %40 {offsets = [0, 0], sizes = [16, 16], strides = [1, 1]} : vector<64x16xf32> to vector<16x16xf32>
    %cst_44 = arith.constant dense<0.000000e+00> : vector<16x16xf32>
    %43 = tpu.matmul %41, %42, %cst_44 {dimension_numbers = #tpu.dot_dimension_numbers<[1], [0], [0], [1], [0, 0, 1, 1], [], []>} : vector<16x16xf32>, vector<16x16xf32>, vector<16x16xf32> -> vector<16x16xf32>
    %c0_45 = arith.constant 0 : index
    %c0_46 = arith.constant 0 : index
    %44 = vector.load %arg6[%c0_45, %c0_46] : memref<64x16xf32, #tpu.memory_space<vmem>>, vector<16x16xf32>
    tpu.vector_store %arg6[%c0_45, %c0_46], %43 {strides = array<i32>} : memref<64x16xf32, #tpu.memory_space<vmem>>, vector<16x16xf32>,
    %45 = vector.extract_strided_slice %40 {offsets = [16, 0], sizes = [16, 16], strides = [1, 1]} : vector<64x16xf32> to vector<16x16xf32>
    %cst_47 = arith.constant dense<0.000000e+00> : vector<16x16xf32>
    %46 = tpu.matmul %41, %45, %cst_47 {dimension_numbers = #tpu.dot_dimension_numbers<[1], [0], [0], [1], [0, 0, 1, 1], [], []>} : vector<16x16xf32>, vector<16x16xf32>, vector<16x16xf32> -> vector<16x16xf32>
    %c16_48 = arith.constant 16 : index
    %c0_49 = arith.constant 0 : index
    %47 = vector.load %arg6[%c16_48, %c0_49] : memref<64x16xf32, #tpu.memory_space<vmem>>, vector<16x16xf32>
    tpu.vector_store %arg6[%c16_48, %c0_49], %46 {strides = array<i32>} : memref<64x16xf32, #tpu.memory_space<vmem>>, vector<16x16xf32>,
    %48 = vector.extract_strided_slice %40 {offsets = [32, 0], sizes = [16, 16], strides = [1, 1]} : vector<64x16xf32> to vector<16x16xf32>
    %cst_50 = arith.constant dense<0.000000e+00> : vector<16x16xf32>
    %49 = tpu.matmul %41, %48, %cst_50 {dimension_numbers = #tpu.dot_dimension_numbers<[1], [0], [0], [1], [0, 0, 1, 1], [], []>} : vector<16x16xf32>, vector<16x16xf32>, vector<16x16xf32> -> vector<16x16xf32>
    %c32_51 = arith.constant 32 : index
    %c0_52 = arith.constant 0 : index
    %50 = vector.load %arg6[%c32_51, %c0_52] : memref<64x16xf32, #tpu.memory_space<vmem>>, vector<16x16xf32>
    tpu.vector_store %arg6[%c32_51, %c0_52], %49 {strides = array<i32>} : memref<64x16xf32, #tpu.memory_space<vmem>>, vector<16x16xf32>,
    %51 = vector.extract_strided_slice %40 {offsets = [48, 0], sizes = [16, 16], strides = [1, 1]} : vector<64x16xf32> to vector<16x16xf32>
    %cst_53 = arith.constant dense<0.000000e+00> : vector<16x16xf32>
    %52 = tpu.matmul %41, %51, %cst_53 {dimension_numbers = #tpu.dot_dimension_numbers<[1], [0], [0], [1], [0, 0, 1, 1], [], []>} : vector<16x16xf32>, vector<16x16xf32>, vector<16x16xf32> -> vector<16x16xf32>
    %c48_54 = arith.constant 48 : index
    %c0_55 = arith.constant 0 : index
    %53 = vector.load %arg6[%c48_54, %c0_55] : memref<64x16xf32, #tpu.memory_space<vmem>>, vector<16x16xf32>
    tpu.vector_store %arg6[%c48_54, %c0_55], %52 {strides = array<i32>} : memref<64x16xf32, #tpu.memory_space<vmem>>, vector<16x16xf32>,
    %c0_56 = arith.constant 0 : index
    %c0_57 = arith.constant 0 : index
    %54 = vector.load %arg6[%c0_56, %c0_57] : memref<64x16xf32, #tpu.memory_space<vmem>>, vector<64x16xf32>
    %cst_58 = arith.constant 0.00226757373 : f32
    %55 = vector.broadcast %cst_58 : f32 to vector<64x16xf32>
    %56 = arith.mulf %54, %55 : vector<64x16xf32>
    %57 = arith.mulf %19, %19 : vector<64x16xf32>
    %58 = arith.subf %56, %57 : vector<64x16xf32>
    %59 = arith.mulf %1, %1 : vector<64x16xf32>
    %c0_59 = arith.constant 0 : index
    %c0_60 = arith.constant 0 : index
    %60 = vector.load %arg4[%c0_59, %c0_60] : memref<16x16xf32, #tpu.memory_space<vmem>>, vector<16x16xf32>
    %cst_61 = arith.constant dense<0.000000e+00> : vector<64x16xf32>
    %61 = tpu.matmul %59, %60, %cst_61 {dimension_numbers = #tpu.dot_dimension_numbers<[1], [0], [0], [1], [0, 0, 1, 1], [], []>} : vector<64x16xf32>, vector<16x16xf32>, vector<64x16xf32> -> vector<64x16xf32>
    %c0_62 = arith.constant 0 : index
    %c0_63 = arith.constant 0 : index
    %62 = vector.load %arg3[%c0_62, %c0_63] : memref<16x16xf32, #tpu.memory_space<vmem>>, vector<16x16xf32>
    %63 = vector.extract_strided_slice %61 {offsets = [0, 0], sizes = [16, 16], strides = [1, 1]} : vector<64x16xf32> to vector<16x16xf32>
    %cst_64 = arith.constant dense<0.000000e+00> : vector<16x16xf32>
    %64 = tpu.matmul %62, %63, %cst_64 {dimension_numbers = #tpu.dot_dimension_numbers<[1], [0], [0], [1], [0, 0, 1, 1], [], []>} : vector<16x16xf32>, vector<16x16xf32>, vector<16x16xf32> -> vector<16x16xf32>
    %c0_65 = arith.constant 0 : index
    %c0_66 = arith.constant 0 : index
    %65 = vector.load %arg6[%c0_65, %c0_66] : memref<64x16xf32, #tpu.memory_space<vmem>>, vector<16x16xf32>
    tpu.vector_store %arg6[%c0_65, %c0_66], %64 {strides = array<i32>} : memref<64x16xf32, #tpu.memory_space<vmem>>, vector<16x16xf32>,
    %66 = vector.extract_strided_slice %61 {offsets = [16, 0], sizes = [16, 16], strides = [1, 1]} : vector<64x16xf32> to vector<16x16xf32>
    %cst_67 = arith.constant dense<0.000000e+00> : vector<16x16xf32>
    %67 = tpu.matmul %62, %66, %cst_67 {dimension_numbers = #tpu.dot_dimension_numbers<[1], [0], [0], [1], [0, 0, 1, 1], [], []>} : vector<16x16xf32>, vector<16x16xf32>, vector<16x16xf32> -> vector<16x16xf32>
    %c16_68 = arith.constant 16 : index
    %c0_69 = arith.constant 0 : index
    %68 = vector.load %arg6[%c16_68, %c0_69] : memref<64x16xf32, #tpu.memory_space<vmem>>, vector<16x16xf32>
    tpu.vector_store %arg6[%c16_68, %c0_69], %67 {strides = array<i32>} : memref<64x16xf32, #tpu.memory_space<vmem>>, vector<16x16xf32>,
    %69 = vector.extract_strided_slice %61 {offsets = [32, 0], sizes = [16, 16], strides = [1, 1]} : vector<64x16xf32> to vector<16x16xf32>
    %cst_70 = arith.constant dense<0.000000e+00> : vector<16x16xf32>
    %70 = tpu.matmul %62, %69, %cst_70 {dimension_numbers = #tpu.dot_dimension_numbers<[1], [0], [0], [1], [0, 0, 1, 1], [], []>} : vector<16x16xf32>, vector<16x16xf32>, vector<16x16xf32> -> vector<16x16xf32>
    %c32_71 = arith.constant 32 : index
    %c0_72 = arith.constant 0 : index
    %71 = vector.load %arg6[%c32_71, %c0_72] : memref<64x16xf32, #tpu.memory_space<vmem>>, vector<16x16xf32>
    tpu.vector_store %arg6[%c32_71, %c0_72], %70 {strides = array<i32>} : memref<64x16xf32, #tpu.memory_space<vmem>>, vector<16x16xf32>,
    %72 = vector.extract_strided_slice %61 {offsets = [48, 0], sizes = [16, 16], strides = [1, 1]} : vector<64x16xf32> to vector<16x16xf32>
    %cst_73 = arith.constant dense<0.000000e+00> : vector<16x16xf32>
    %73 = tpu.matmul %62, %72, %cst_73 {dimension_numbers = #tpu.dot_dimension_numbers<[1], [0], [0], [1], [0, 0, 1, 1], [], []>} : vector<16x16xf32>, vector<16x16xf32>, vector<16x16xf32> -> vector<16x16xf32>
    %c48_74 = arith.constant 48 : index
    %c0_75 = arith.constant 0 : index
    %74 = vector.load %arg6[%c48_74, %c0_75] : memref<64x16xf32, #tpu.memory_space<vmem>>, vector<16x16xf32>
    tpu.vector_store %arg6[%c48_74, %c0_75], %73 {strides = array<i32>} : memref<64x16xf32, #tpu.memory_space<vmem>>, vector<16x16xf32>,
    %c0_76 = arith.constant 0 : index
    %c0_77 = arith.constant 0 : index
    %75 = vector.load %arg6[%c0_76, %c0_77] : memref<64x16xf32, #tpu.memory_space<vmem>>, vector<64x16xf32>
    %cst_78 = arith.constant 0.00226757373 : f32
    %76 = vector.broadcast %cst_78 : f32 to vector<64x16xf32>
    %77 = arith.mulf %75, %76 : vector<64x16xf32>
    %78 = arith.mulf %37, %37 : vector<64x16xf32>
    %79 = arith.subf %77, %78 : vector<64x16xf32>
    %80 = arith.mulf %0, %1 : vector<64x16xf32>
    %c0_79 = arith.constant 0 : index
    %c0_80 = arith.constant 0 : index
    %81 = vector.load %arg4[%c0_79, %c0_80] : memref<16x16xf32, #tpu.memory_space<vmem>>, vector<16x16xf32>
    %cst_81 = arith.constant dense<0.000000e+00> : vector<64x16xf32>
    %82 = tpu.matmul %80, %81, %cst_81 {dimension_numbers = #tpu.dot_dimension_numbers<[1], [0], [0], [1], [0, 0, 1, 1], [], []>} : vector<64x16xf32>, vector<16x16xf32>, vector<64x16xf32> -> vector<64x16xf32>
    %c0_82 = arith.constant 0 : index
    %c0_83 = arith.constant 0 : index
    %83 = vector.load %arg3[%c0_82, %c0_83] : memref<16x16xf32, #tpu.memory_space<vmem>>, vector<16x16xf32>
    %84 = vector.extract_strided_slice %82 {offsets = [0, 0], sizes = [16, 16], strides = [1, 1]} : vector<64x16xf32> to vector<16x16xf32>
    %cst_84 = arith.constant dense<0.000000e+00> : vector<16x16xf32>
    %85 = tpu.matmul %83, %84, %cst_84 {dimension_numbers = #tpu.dot_dimension_numbers<[1], [0], [0], [1], [0, 0, 1, 1], [], []>} : vector<16x16xf32>, vector<16x16xf32>, vector<16x16xf32> -> vector<16x16xf32>
    %c0_85 = arith.constant 0 : index
    %c0_86 = arith.constant 0 : index
    %86 = vector.load %arg6[%c0_85, %c0_86] : memref<64x16xf32, #tpu.memory_space<vmem>>, vector<16x16xf32>
    tpu.vector_store %arg6[%c0_85, %c0_86], %85 {strides = array<i32>} : memref<64x16xf32, #tpu.memory_space<vmem>>, vector<16x16xf32>,
    %87 = vector.extract_strided_slice %82 {offsets = [16, 0], sizes = [16, 16], strides = [1, 1]} : vector<64x16xf32> to vector<16x16xf32>
    %cst_87 = arith.constant dense<0.000000e+00> : vector<16x16xf32>
    %88 = tpu.matmul %83, %87, %cst_87 {dimension_numbers = #tpu.dot_dimension_numbers<[1], [0], [0], [1], [0, 0, 1, 1], [], []>} : vector<16x16xf32>, vector<16x16xf32>, vector<16x16xf32> -> vector<16x16xf32>
    %c16_88 = arith.constant 16 : index
    %c0_89 = arith.constant 0 : index
    %89 = vector.load %arg6[%c16_88, %c0_89] : memref<64x16xf32, #tpu.memory_space<vmem>>, vector<16x16xf32>
    tpu.vector_store %arg6[%c16_88, %c0_89], %88 {strides = array<i32>} : memref<64x16xf32, #tpu.memory_space<vmem>>, vector<16x16xf32>,
    %90 = vector.extract_strided_slice %82 {offsets = [32, 0], sizes = [16, 16], strides = [1, 1]} : vector<64x16xf32> to vector<16x16xf32>
    %cst_90 = arith.constant dense<0.000000e+00> : vector<16x16xf32>
    %91 = tpu.matmul %83, %90, %cst_90 {dimension_numbers = #tpu.dot_dimension_numbers<[1], [0], [0], [1], [0, 0, 1, 1], [], []>} : vector<16x16xf32>, vector<16x16xf32>, vector<16x16xf32> -> vector<16x16xf32>
    %c32_91 = arith.constant 32 : index
    %c0_92 = arith.constant 0 : index
    %92 = vector.load %arg6[%c32_91, %c0_92] : memref<64x16xf32, #tpu.memory_space<vmem>>, vector<16x16xf32>
    tpu.vector_store %arg6[%c32_91, %c0_92], %91 {strides = array<i32>} : memref<64x16xf32, #tpu.memory_space<vmem>>, vector<16x16xf32>,
    %93 = vector.extract_strided_slice %82 {offsets = [48, 0], sizes = [16, 16], strides = [1, 1]} : vector<64x16xf32> to vector<16x16xf32>
    %cst_93 = arith.constant dense<0.000000e+00> : vector<16x16xf32>
    %94 = tpu.matmul %83, %93, %cst_93 {dimension_numbers = #tpu.dot_dimension_numbers<[1], [0], [0], [1], [0, 0, 1, 1], [], []>} : vector<16x16xf32>, vector<16x16xf32>, vector<16x16xf32> -> vector<16x16xf32>
    %c48_94 = arith.constant 48 : index
    %c0_95 = arith.constant 0 : index
    %95 = vector.load %arg6[%c48_94, %c0_95] : memref<64x16xf32, #tpu.memory_space<vmem>>, vector<16x16xf32>
    tpu.vector_store %arg6[%c48_94, %c0_95], %94 {strides = array<i32>} : memref<64x16xf32, #tpu.memory_space<vmem>>, vector<16x16xf32>,
    %c0_96 = arith.constant 0 : index
    %c0_97 = arith.constant 0 : index
    %96 = vector.load %arg6[%c0_96, %c0_97] : memref<64x16xf32, #tpu.memory_space<vmem>>, vector<64x16xf32>
    %cst_98 = arith.constant 0.00226757373 : f32
    %97 = vector.broadcast %cst_98 : f32 to vector<64x16xf32>
    %98 = arith.mulf %96, %97 : vector<64x16xf32>
    %99 = arith.mulf %19, %37 : vector<64x16xf32>
    %100 = arith.subf %98, %99 : vector<64x16xf32>
    %cst_99 = arith.constant 2.000000e+00 : f32
    %101 = vector.broadcast %cst_99 : f32 to vector<64x16xf32>
    %102 = arith.mulf %101, %19 : vector<64x16xf32>
    %103 = arith.mulf %102, %37 : vector<64x16xf32>
    %cst_100 = arith.constant 9.99999974E-5 : f32
    %104 = vector.broadcast %cst_100 : f32 to vector<64x16xf32>
    %105 = arith.addf %103, %104 : vector<64x16xf32>
    %cst_101 = arith.constant 2.000000e+00 : f32
    %106 = vector.broadcast %cst_101 : f32 to vector<64x16xf32>
    %107 = arith.mulf %106, %100 : vector<64x16xf32>
    %cst_102 = arith.constant 8.99999984E-4 : f32
    %108 = vector.broadcast %cst_102 : f32 to vector<64x16xf32>
    %109 = arith.addf %107, %108 : vector<64x16xf32>
    %110 = arith.mulf %105, %109 : vector<64x16xf32>
    %111 = arith.mulf %19, %19 : vector<64x16xf32>
    %112 = arith.mulf %37, %37 : vector<64x16xf32>
    %113 = arith.addf %111, %112 : vector<64x16xf32>
    %cst_103 = arith.constant 9.99999974E-5 : f32
    %114 = vector.broadcast %cst_103 : f32 to vector<64x16xf32>
    %115 = arith.addf %113, %114 : vector<64x16xf32>
    %116 = arith.addf %58, %79 : vector<64x16xf32>
    %cst_104 = arith.constant 8.99999984E-4 : f32
    %117 = vector.broadcast %cst_104 : f32 to vector<64x16xf32>
    %118 = arith.addf %116, %117 : vector<64x16xf32>
    %119 = arith.mulf %115, %118 : vector<64x16xf32>
    %120 = tpu.reciprocal %119 {approx = true} : vector<64x16xf32> -> vector<64x16xf32>
    %121 = arith.mulf %119, %120 : vector<64x16xf32>
    %cst_105 = arith.constant 2.000000e+00 : f32
    %122 = vector.broadcast %cst_105 : f32 to vector<64x16xf32>
    %123 = arith.subf %122, %121 : vector<64x16xf32>
    %124 = arith.mulf %120, %123 : vector<64x16xf32>
    %125 = arith.mulf %110, %124 : vector<64x16xf32>
    %cst_106 = arith.constant 1.000000e+00 : f32
    %126 = vector.broadcast %cst_106 : f32 to vector<64x16xf32>
    %127 = arith.subf %126, %125 : vector<64x16xf32>
    %cst_107 = arith.constant 5.000000e-01 : f32
    %128 = vector.broadcast %cst_107 : f32 to vector<64x16xf32>
    %129 = arith.mulf %127, %128 : vector<64x16xf32>
    %cst_108 = arith.constant 0.000000e+00 : f32
    %cst_109 = arith.constant 1.000000e+00 : f32
    %130 = vector.broadcast %cst_108 : f32 to vector<64x16xf32>
    %131 = arith.maximumf %130, %129 : vector<64x16xf32>
    %132 = vector.broadcast %cst_109 : f32 to vector<64x16xf32>
    %133 = arith.minimumf %132, %131 : vector<64x16xf32>
    %c0_110 = arith.constant 0 : index
    %c0_111 = arith.constant 0 : index
    %134 = vector.load %arg5[%c0_110, %c0_111] : memref<64x16xf32, #tpu.memory_space<vmem>>, vector<64x16xf32>
    tpu.vector_store %arg5[%c0_110, %c0_111], %133 {strides = array<i32>} : memref<64x16xf32, #tpu.memory_space<vmem>>, vector<64x16xf32>,
    return
  }
  func.func @transform_0(%arg0: i32) -> (i32, i32) {
    %c0_i32 = arith.constant 0 : i32
    %c0_i32_0 = arith.constant 0 : i32
    return %arg0, %c0_i32 : i32, i32
  }
  func.func @transform_1(%arg0: i32) -> (i32, i32) {
    %c0_i32 = arith.constant 0 : i32
    %c0_i32_0 = arith.constant 0 : i32
    return %arg0, %c0_i32 : i32, i32
  }
  func.func @transform_2(%arg0: i32) -> (i32, i32) {
    %c0_i32 = arith.constant 0 : i32
    %c0_i32_0 = arith.constant 0 : i32
    %c0_i32_1 = arith.constant 0 : i32
    return %c0_i32, %c0_i32_0 : i32, i32
  }
  func.func @transform_3(%arg0: i32) -> (i32, i32) {
    %c0_i32 = arith.constant 0 : i32
    %c0_i32_0 = arith.constant 0 : i32
    %c0_i32_1 = arith.constant 0 : i32
    return %c0_i32, %c0_i32_0 : i32, i32
  }
  func.func @transform_4(%arg0: i32) -> (i32, i32) {
    %c0_i32 = arith.constant 0 : i32
    %c0_i32_0 = arith.constant 0 : i32
    return %arg0, %c0_i32 : i32, i32
  }
}

module attributes {stable_mosaic.version = 11 : i64} {
  func.func @ssim_kernel(%arg0: i32, %arg1: memref<64x16xf32, #tpu.memory_space<vmem>>, %arg2: memref<64x16xf32, #tpu.memory_space<vmem>>, %arg3: memref<16x16xf32, #tpu.memory_space<vmem>>, %arg4: memref<16x16xf32, #tpu.memory_space<vmem>>, %arg5: memref<64x16xf32, #tpu.memory_space<vmem>>, %arg6: memref<64x16xf32, #tpu.memory_space<vmem>>) attributes {dimension_semantics = [#tpu.dimension_semantics<parallel>], iteration_bounds = array<i64: 2>, scalar_prefetch = 0 : i64, scratch_operands = 1 : i64, tpu.core_type = #tpu.core_type<tc>, window_params = [{transform_indices = @transform_0, window_bounds = array<i64: 64, 16>}, {transform_indices = @transform_1, window_bounds = array<i64: 64, 16>}, {pipeline_mode = #tpu.pipeline_mode<synchronous>, transform_indices = @transform_2, window_bounds = array<i64: 16, 16>}, {pipeline_mode = #tpu.pipeline_mode<synchronous>, transform_indices = @transform_3, window_bounds = array<i64: 16, 16>}, {transform_indices = @transform_4, window_bounds = array<i64: 64, 16>}]} {
    %c0 = arith.constant 0 : index
    %c0_0 = arith.constant 0 : index
    %0 = vector.load %arg1[%c0, %c0_0] : memref<64x16xf32, #tpu.memory_space<vmem>>, vector<64x16xf32>
    %c0_1 = arith.constant 0 : index
    %c0_2 = arith.constant 0 : index
    %1 = vector.load %arg2[%c0_1, %c0_2] : memref<64x16xf32, #tpu.memory_space<vmem>>, vector<64x16xf32>
    %c0_3 = arith.constant 0 : index
    %c0_4 = arith.constant 0 : index
    %2 = vector.load %arg4[%c0_3, %c0_4] : memref<16x16xf32, #tpu.memory_space<vmem>>, vector<16x16xf32>
    %cst = arith.constant dense<0.000000e+00> : vector<64x16xf32>
    %3 = tpu.matmul %0, %2, %cst {dimension_numbers = #tpu.dot_dimension_numbers<[1], [0], [0], [1], [0, 0, 1, 1], [], []>} : vector<64x16xf32>, vector<16x16xf32>, vector<64x16xf32> -> vector<64x16xf32>
    %c0_5 = arith.constant 0 : index
    %c0_6 = arith.constant 0 : index
    %4 = vector.load %arg3[%c0_5, %c0_6] : memref<16x16xf32, #tpu.memory_space<vmem>>, vector<16x16xf32>
    %5 = vector.extract_strided_slice %3 {offsets = [0, 0], sizes = [16, 16], strides = [1, 1]} : vector<64x16xf32> to vector<16x16xf32>
    %cst_7 = arith.constant dense<0.000000e+00> : vector<16x16xf32>
    %6 = tpu.matmul %4, %5, %cst_7 {dimension_numbers = #tpu.dot_dimension_numbers<[1], [0], [0], [1], [0, 0, 1, 1], [], []>} : vector<16x16xf32>, vector<16x16xf32>, vector<16x16xf32> -> vector<16x16xf32>
    %c0_8 = arith.constant 0 : index
    %c0_9 = arith.constant 0 : index
    %7 = vector.load %arg6[%c0_8, %c0_9] : memref<64x16xf32, #tpu.memory_space<vmem>>, vector<16x16xf32>
    tpu.vector_store %arg6[%c0_8, %c0_9], %6 {strides = array<i32>} : memref<64x16xf32, #tpu.memory_space<vmem>>, vector<16x16xf32>,
    %8 = vector.extract_strided_slice %3 {offsets = [16, 0], sizes = [16, 16], strides = [1, 1]} : vector<64x16xf32> to vector<16x16xf32>
    %cst_10 = arith.constant dense<0.000000e+00> : vector<16x16xf32>
    %9 = tpu.matmul %4, %8, %cst_10 {dimension_numbers = #tpu.dot_dimension_numbers<[1], [0], [0], [1], [0, 0, 1, 1], [], []>} : vector<16x16xf32>, vector<16x16xf32>, vector<16x16xf32> -> vector<16x16xf32>
    %c16 = arith.constant 16 : index
    %c0_11 = arith.constant 0 : index
    %10 = vector.load %arg6[%c16, %c0_11] : memref<64x16xf32, #tpu.memory_space<vmem>>, vector<16x16xf32>
    tpu.vector_store %arg6[%c16, %c0_11], %9 {strides = array<i32>} : memref<64x16xf32, #tpu.memory_space<vmem>>, vector<16x16xf32>,
    %11 = vector.extract_strided_slice %3 {offsets = [32, 0], sizes = [16, 16], strides = [1, 1]} : vector<64x16xf32> to vector<16x16xf32>
    %cst_12 = arith.constant dense<0.000000e+00> : vector<16x16xf32>
    %12 = tpu.matmul %4, %11, %cst_12 {dimension_numbers = #tpu.dot_dimension_numbers<[1], [0], [0], [1], [0, 0, 1, 1], [], []>} : vector<16x16xf32>, vector<16x16xf32>, vector<16x16xf32> -> vector<16x16xf32>
    %c32 = arith.constant 32 : index
    %c0_13 = arith.constant 0 : index
    %13 = vector.load %arg6[%c32, %c0_13] : memref<64x16xf32, #tpu.memory_space<vmem>>, vector<16x16xf32>
    tpu.vector_store %arg6[%c32, %c0_13], %12 {strides = array<i32>} : memref<64x16xf32, #tpu.memory_space<vmem>>, vector<16x16xf32>,
    %14 = vector.extract_strided_slice %3 {offsets = [48, 0], sizes = [16, 16], strides = [1, 1]} : vector<64x16xf32> to vector<16x16xf32>
    %cst_14 = arith.constant dense<0.000000e+00> : vector<16x16xf32>
    %15 = tpu.matmul %4, %14, %cst_14 {dimension_numbers = #tpu.dot_dimension_numbers<[1], [0], [0], [1], [0, 0, 1, 1], [], []>} : vector<16x16xf32>, vector<16x16xf32>, vector<16x16xf32> -> vector<16x16xf32>
    %c48 = arith.constant 48 : index
    %c0_15 = arith.constant 0 : index
    %16 = vector.load %arg6[%c48, %c0_15] : memref<64x16xf32, #tpu.memory_space<vmem>>, vector<16x16xf32>
    tpu.vector_store %arg6[%c48, %c0_15], %15 {strides = array<i32>} : memref<64x16xf32, #tpu.memory_space<vmem>>, vector<16x16xf32>,
    %c0_16 = arith.constant 0 : index
    %c0_17 = arith.constant 0 : index
    %17 = vector.load %arg6[%c0_16, %c0_17] : memref<64x16xf32, #tpu.memory_space<vmem>>, vector<64x16xf32>
    %cst_18 = arith.constant 0.00226757373 : f32
    %18 = vector.broadcast %cst_18 : f32 to vector<64x16xf32>
    %19 = arith.mulf %17, %18 : vector<64x16xf32>
    %c0_19 = arith.constant 0 : index
    %c0_20 = arith.constant 0 : index
    %20 = vector.load %arg4[%c0_19, %c0_20] : memref<16x16xf32, #tpu.memory_space<vmem>>, vector<16x16xf32>
    %cst_21 = arith.constant dense<0.000000e+00> : vector<64x16xf32>
    %21 = tpu.matmul %1, %20, %cst_21 {dimension_numbers = #tpu.dot_dimension_numbers<[1], [0], [0], [1], [0, 0, 1, 1], [], []>} : vector<64x16xf32>, vector<16x16xf32>, vector<64x16xf32> -> vector<64x16xf32>
    %c0_22 = arith.constant 0 : index
    %c0_23 = arith.constant 0 : index
    %22 = vector.load %arg3[%c0_22, %c0_23] : memref<16x16xf32, #tpu.memory_space<vmem>>, vector<16x16xf32>
    %23 = vector.extract_strided_slice %21 {offsets = [0, 0], sizes = [16, 16], strides = [1, 1]} : vector<64x16xf32> to vector<16x16xf32>
    %cst_24 = arith.constant dense<0.000000e+00> : vector<16x16xf32>
    %24 = tpu.matmul %22, %23, %cst_24 {dimension_numbers = #tpu.dot_dimension_numbers<[1], [0], [0], [1], [0, 0, 1, 1], [], []>} : vector<16x16xf32>, vector<16x16xf32>, vector<16x16xf32> -> vector<16x16xf32>
    %c0_25 = arith.constant 0 : index
    %c0_26 = arith.constant 0 : index
    %25 = vector.load %arg6[%c0_25, %c0_26] : memref<64x16xf32, #tpu.memory_space<vmem>>, vector<16x16xf32>
    tpu.vector_store %arg6[%c0_25, %c0_26], %24 {strides = array<i32>} : memref<64x16xf32, #tpu.memory_space<vmem>>, vector<16x16xf32>,
    %26 = vector.extract_strided_slice %21 {offsets = [16, 0], sizes = [16, 16], strides = [1, 1]} : vector<64x16xf32> to vector<16x16xf32>
    %cst_27 = arith.constant dense<0.000000e+00> : vector<16x16xf32>
    %27 = tpu.matmul %22, %26, %cst_27 {dimension_numbers = #tpu.dot_dimension_numbers<[1], [0], [0], [1], [0, 0, 1, 1], [], []>} : vector<16x16xf32>, vector<16x16xf32>, vector<16x16xf32> -> vector<16x16xf32>
    %c16_28 = arith.constant 16 : index
    %c0_29 = arith.constant 0 : index
    %28 = vector.load %arg6[%c16_28, %c0_29] : memref<64x16xf32, #tpu.memory_space<vmem>>, vector<16x16xf32>
    tpu.vector_store %arg6[%c16_28, %c0_29], %27 {strides = array<i32>} : memref<64x16xf32, #tpu.memory_space<vmem>>, vector<16x16xf32>,
    %29 = vector.extract_strided_slice %21 {offsets = [32, 0], sizes = [16, 16], strides = [1, 1]} : vector<64x16xf32> to vector<16x16xf32>
    %cst_30 = arith.constant dense<0.000000e+00> : vector<16x16xf32>
    %30 = tpu.matmul %22, %29, %cst_30 {dimension_numbers = #tpu.dot_dimension_numbers<[1], [0], [0], [1], [0, 0, 1, 1], [], []>} : vector<16x16xf32>, vector<16x16xf32>, vector<16x16xf32> -> vector<16x16xf32>
    %c32_31 = arith.constant 32 : index
    %c0_32 = arith.constant 0 : index
    %31 = vector.load %arg6[%c32_31, %c0_32] : memref<64x16xf32, #tpu.memory_space<vmem>>, vector<16x16xf32>
    tpu.vector_store %arg6[%c32_31, %c0_32], %30 {strides = array<i32>} : memref<64x16xf32, #tpu.memory_space<vmem>>, vector<16x16xf32>,
    %32 = vector.extract_strided_slice %21 {offsets = [48, 0], sizes = [16, 16], strides = [1, 1]} : vector<64x16xf32> to vector<16x16xf32>
    %cst_33 = arith.constant dense<0.000000e+00> : vector<16x16xf32>
    %33 = tpu.matmul %22, %32, %cst_33 {dimension_numbers = #tpu.dot_dimension_numbers<[1], [0], [0], [1], [0, 0, 1, 1], [], []>} : vector<16x16xf32>, vector<16x16xf32>, vector<16x16xf32> -> vector<16x16xf32>
    %c48_34 = arith.constant 48 : index
    %c0_35 = arith.constant 0 : index
    %34 = vector.load %arg6[%c48_34, %c0_35] : memref<64x16xf32, #tpu.memory_space<vmem>>, vector<16x16xf32>
    tpu.vector_store %arg6[%c48_34, %c0_35], %33 {strides = array<i32>} : memref<64x16xf32, #tpu.memory_space<vmem>>, vector<16x16xf32>,
    %c0_36 = arith.constant 0 : index
    %c0_37 = arith.constant 0 : index
    %35 = vector.load %arg6[%c0_36, %c0_37] : memref<64x16xf32, #tpu.memory_space<vmem>>, vector<64x16xf32>
    %cst_38 = arith.constant 0.00226757373 : f32
    %36 = vector.broadcast %cst_38 : f32 to vector<64x16xf32>
    %37 = arith.mulf %35, %36 : vector<64x16xf32>
    %38 = arith.mulf %0, %0 : vector<64x16xf32>
    %c0_39 = arith.constant 0 : index
    %c0_40 = arith.constant 0 : index
    %39 = vector.load %arg4[%c0_39, %c0_40] : memref<16x16xf32, #tpu.memory_space<vmem>>, vector<16x16xf32>
    %cst_41 = arith.constant dense<0.000000e+00> : vector<64x16xf32>
    %40 = tpu.matmul %38, %39, %cst_41 {dimension_numbers = #tpu.dot_dimension_numbers<[1], [0], [0], [1], [0, 0, 1, 1], [], []>} : vector<64x16xf32>, vector<16x16xf32>, vector<64x16xf32> -> vector<64x16xf32>
    %c0_42 = arith.constant 0 : index
    %c0_43 = arith.constant 0 : index
    %41 = vector.load %arg3[%c0_42, %c0_43] : memref<16x16xf32, #tpu.memory_space<vmem>>, vector<16x16xf32>
    %42 = vector.extract_strided_slice %40 {offsets = [0, 0], sizes = [16, 16], strides = [1, 1]} : vector<64x16xf32> to vector<16x16xf32>
    %cst_44 = arith.constant dense<0.000000e+00> : vector<16x16xf32>
    %43 = tpu.matmul %41, %42, %cst_44 {dimension_numbers = #tpu.dot_dimension_numbers<[1], [0], [0], [1], [0, 0, 1, 1], [], []>} : vector<16x16xf32>, vector<16x16xf32>, vector<16x16xf32> -> vector<16x16xf32>
    %c0_45 = arith.constant 0 : index
    %c0_46 = arith.constant 0 : index
    %44 = vector.load %arg6[%c0_45, %c0_46] : memref<64x16xf32, #tpu.memory_space<vmem>>, vector<16x16xf32>
    tpu.vector_store %arg6[%c0_45, %c0_46], %43 {strides = array<i32>} : memref<64x16xf32, #tpu.memory_space<vmem>>, vector<16x16xf32>,
    %45 = vector.extract_strided_slice %40 {offsets = [16, 0], sizes = [16, 16], strides = [1, 1]} : vector<64x16xf32> to vector<16x16xf32>
    %cst_47 = arith.constant dense<0.000000e+00> : vector<16x16xf32>
    %46 = tpu.matmul %41, %45, %cst_47 {dimension_numbers = #tpu.dot_dimension_numbers<[1], [0], [0], [1], [0, 0, 1, 1], [], []>} : vector<16x16xf32>, vector<16x16xf32>, vector<16x16xf32> -> vector<16x16xf32>
    %c16_48 = arith.constant 16 : index
    %c0_49 = arith.constant 0 : index
    %47 = vector.load %arg6[%c16_48, %c0_49] : memref<64x16xf32, #tpu.memory_space<vmem>>, vector<16x16xf32>
    tpu.vector_store %arg6[%c16_48, %c0_49], %46 {strides = array<i32>} : memref<64x16xf32, #tpu.memory_space<vmem>>, vector<16x16xf32>,
    %48 = vector.extract_strided_slice %40 {offsets = [32, 0], sizes = [16, 16], strides = [1, 1]} : vector<64x16xf32> to vector<16x16xf32>
    %cst_50 = arith.constant dense<0.000000e+00> : vector<16x16xf32>
    %49 = tpu.matmul %41, %48, %cst_50 {dimension_numbers = #tpu.dot_dimension_numbers<[1], [0], [0], [1], [0, 0, 1, 1], [], []>} : vector<16x16xf32>, vector<16x16xf32>, vector<16x16xf32> -> vector<16x16xf32>
    %c32_51 = arith.constant 32 : index
    %c0_52 = arith.constant 0 : index
    %50 = vector.load %arg6[%c32_51, %c0_52] : memref<64x16xf32, #tpu.memory_space<vmem>>, vector<16x16xf32>
    tpu.vector_store %arg6[%c32_51, %c0_52], %49 {strides = array<i32>} : memref<64x16xf32, #tpu.memory_space<vmem>>, vector<16x16xf32>,
    %51 = vector.extract_strided_slice %40 {offsets = [48, 0], sizes = [16, 16], strides = [1, 1]} : vector<64x16xf32> to vector<16x16xf32>
    %cst_53 = arith.constant dense<0.000000e+00> : vector<16x16xf32>
    %52 = tpu.matmul %41, %51, %cst_53 {dimension_numbers = #tpu.dot_dimension_numbers<[1], [0], [0], [1], [0, 0, 1, 1], [], []>} : vector<16x16xf32>, vector<16x16xf32>, vector<16x16xf32> -> vector<16x16xf32>
    %c48_54 = arith.constant 48 : index
    %c0_55 = arith.constant 0 : index
    %53 = vector.load %arg6[%c48_54, %c0_55] : memref<64x16xf32, #tpu.memory_space<vmem>>, vector<16x16xf32>
    tpu.vector_store %arg6[%c48_54, %c0_55], %52 {strides = array<i32>} : memref<64x16xf32, #tpu.memory_space<vmem>>, vector<16x16xf32>,
    %c0_56 = arith.constant 0 : index
    %c0_57 = arith.constant 0 : index
    %54 = vector.load %arg6[%c0_56, %c0_57] : memref<64x16xf32, #tpu.memory_space<vmem>>, vector<64x16xf32>
    %cst_58 = arith.constant 0.00226757373 : f32
    %55 = vector.broadcast %cst_58 : f32 to vector<64x16xf32>
    %56 = arith.mulf %54, %55 : vector<64x16xf32>
    %57 = arith.mulf %19, %19 : vector<64x16xf32>
    %58 = arith.subf %56, %57 : vector<64x16xf32>
    %59 = arith.mulf %1, %1 : vector<64x16xf32>
    %c0_59 = arith.constant 0 : index
    %c0_60 = arith.constant 0 : index
    %60 = vector.load %arg4[%c0_59, %c0_60] : memref<16x16xf32, #tpu.memory_space<vmem>>, vector<16x16xf32>
    %cst_61 = arith.constant dense<0.000000e+00> : vector<64x16xf32>
    %61 = tpu.matmul %59, %60, %cst_61 {dimension_numbers = #tpu.dot_dimension_numbers<[1], [0], [0], [1], [0, 0, 1, 1], [], []>} : vector<64x16xf32>, vector<16x16xf32>, vector<64x16xf32> -> vector<64x16xf32>
    %c0_62 = arith.constant 0 : index
    %c0_63 = arith.constant 0 : index
    %62 = vector.load %arg3[%c0_62, %c0_63] : memref<16x16xf32, #tpu.memory_space<vmem>>, vector<16x16xf32>
    %63 = vector.extract_strided_slice %61 {offsets = [0, 0], sizes = [16, 16], strides = [1, 1]} : vector<64x16xf32> to vector<16x16xf32>
    %cst_64 = arith.constant dense<0.000000e+00> : vector<16x16xf32>
    %64 = tpu.matmul %62, %63, %cst_64 {dimension_numbers = #tpu.dot_dimension_numbers<[1], [0], [0], [1], [0, 0, 1, 1], [], []>} : vector<16x16xf32>, vector<16x16xf32>, vector<16x16xf32> -> vector<16x16xf32>
    %c0_65 = arith.constant 0 : index
    %c0_66 = arith.constant 0 : index
    %65 = vector.load %arg6[%c0_65, %c0_66] : memref<64x16xf32, #tpu.memory_space<vmem>>, vector<16x16xf32>
    tpu.vector_store %arg6[%c0_65, %c0_66], %64 {strides = array<i32>} : memref<64x16xf32, #tpu.memory_space<vmem>>, vector<16x16xf32>,
    %66 = vector.extract_strided_slice %61 {offsets = [16, 0], sizes = [16, 16], strides = [1, 1]} : vector<64x16xf32> to vector<16x16xf32>
    %cst_67 = arith.constant dense<0.000000e+00> : vector<16x16xf32>
    %67 = tpu.matmul %62, %66, %cst_67 {dimension_numbers = #tpu.dot_dimension_numbers<[1], [0], [0], [1], [0, 0, 1, 1], [], []>} : vector<16x16xf32>, vector<16x16xf32>, vector<16x16xf32> -> vector<16x16xf32>
    %c16_68 = arith.constant 16 : index
    %c0_69 = arith.constant 0 : index
    %68 = vector.load %arg6[%c16_68, %c0_69] : memref<64x16xf32, #tpu.memory_space<vmem>>, vector<16x16xf32>
    tpu.vector_store %arg6[%c16_68, %c0_69], %67 {strides = array<i32>} : memref<64x16xf32, #tpu.memory_space<vmem>>, vector<16x16xf32>,
    %69 = vector.extract_strided_slice %61 {offsets = [32, 0], sizes = [16, 16], strides = [1, 1]} : vector<64x16xf32> to vector<16x16xf32>
    %cst_70 = arith.constant dense<0.000000e+00> : vector<16x16xf32>
    %70 = tpu.matmul %62, %69, %cst_70 {dimension_numbers = #tpu.dot_dimension_numbers<[1], [0], [0], [1], [0, 0, 1, 1], [], []>} : vector<16x16xf32>, vector<16x16xf32>, vector<16x16xf32> -> vector<16x16xf32>
    %c32_71 = arith.constant 32 : index
    %c0_72 = arith.constant 0 : index
    %71 = vector.load %arg6[%c32_71, %c0_72] : memref<64x16xf32, #tpu.memory_space<vmem>>, vector<16x16xf32>
    tpu.vector_store %arg6[%c32_71, %c0_72], %70 {strides = array<i32>} : memref<64x16xf32, #tpu.memory_space<vmem>>, vector<16x16xf32>,
    %72 = vector.extract_strided_slice %61 {offsets = [48, 0], sizes = [16, 16], strides = [1, 1]} : vector<64x16xf32> to vector<16x16xf32>
    %cst_73 = arith.constant dense<0.000000e+00> : vector<16x16xf32>
    %73 = tpu.matmul %62, %72, %cst_73 {dimension_numbers = #tpu.dot_dimension_numbers<[1], [0], [0], [1], [0, 0, 1, 1], [], []>} : vector<16x16xf32>, vector<16x16xf32>, vector<16x16xf32> -> vector<16x16xf32>
    %c48_74 = arith.constant 48 : index
    %c0_75 = arith.constant 0 : index
    %74 = vector.load %arg6[%c48_74, %c0_75] : memref<64x16xf32, #tpu.memory_space<vmem>>, vector<16x16xf32>
    tpu.vector_store %arg6[%c48_74, %c0_75], %73 {strides = array<i32>} : memref<64x16xf32, #tpu.memory_space<vmem>>, vector<16x16xf32>,
    %c0_76 = arith.constant 0 : index
    %c0_77 = arith.constant 0 : index
    %75 = vector.load %arg6[%c0_76, %c0_77] : memref<64x16xf32, #tpu.memory_space<vmem>>, vector<64x16xf32>
    %cst_78 = arith.constant 0.00226757373 : f32
    %76 = vector.broadcast %cst_78 : f32 to vector<64x16xf32>
    %77 = arith.mulf %75, %76 : vector<64x16xf32>
    %78 = arith.mulf %37, %37 : vector<64x16xf32>
    %79 = arith.subf %77, %78 : vector<64x16xf32>
    %80 = arith.mulf %0, %1 : vector<64x16xf32>
    %c0_79 = arith.constant 0 : index
    %c0_80 = arith.constant 0 : index
    %81 = vector.load %arg4[%c0_79, %c0_80] : memref<16x16xf32, #tpu.memory_space<vmem>>, vector<16x16xf32>
    %cst_81 = arith.constant dense<0.000000e+00> : vector<64x16xf32>
    %82 = tpu.matmul %80, %81, %cst_81 {dimension_numbers = #tpu.dot_dimension_numbers<[1], [0], [0], [1], [0, 0, 1, 1], [], []>} : vector<64x16xf32>, vector<16x16xf32>, vector<64x16xf32> -> vector<64x16xf32>
    %c0_82 = arith.constant 0 : index
    %c0_83 = arith.constant 0 : index
    %83 = vector.load %arg3[%c0_82, %c0_83] : memref<16x16xf32, #tpu.memory_space<vmem>>, vector<16x16xf32>
    %84 = vector.extract_strided_slice %82 {offsets = [0, 0], sizes = [16, 16], strides = [1, 1]} : vector<64x16xf32> to vector<16x16xf32>
    %cst_84 = arith.constant dense<0.000000e+00> : vector<16x16xf32>
    %85 = tpu.matmul %83, %84, %cst_84 {dimension_numbers = #tpu.dot_dimension_numbers<[1], [0], [0], [1], [0, 0, 1, 1], [], []>} : vector<16x16xf32>, vector<16x16xf32>, vector<16x16xf32> -> vector<16x16xf32>
    %c0_85 = arith.constant 0 : index
    %c0_86 = arith.constant 0 : index
    %86 = vector.load %arg6[%c0_85, %c0_86] : memref<64x16xf32, #tpu.memory_space<vmem>>, vector<16x16xf32>
    tpu.vector_store %arg6[%c0_85, %c0_86], %85 {strides = array<i32>} : memref<64x16xf32, #tpu.memory_space<vmem>>, vector<16x16xf32>,
    %87 = vector.extract_strided_slice %82 {offsets = [16, 0], sizes = [16, 16], strides = [1, 1]} : vector<64x16xf32> to vector<16x16xf32>
    %cst_87 = arith.constant dense<0.000000e+00> : vector<16x16xf32>
    %88 = tpu.matmul %83, %87, %cst_87 {dimension_numbers = #tpu.dot_dimension_numbers<[1], [0], [0], [1], [0, 0, 1, 1], [], []>} : vector<16x16xf32>, vector<16x16xf32>, vector<16x16xf32> -> vector<16x16xf32>
    %c16_88 = arith.constant 16 : index
    %c0_89 = arith.constant 0 : index
    %89 = vector.load %arg6[%c16_88, %c0_89] : memref<64x16xf32, #tpu.memory_space<vmem>>, vector<16x16xf32>
    tpu.vector_store %arg6[%c16_88, %c0_89], %88 {strides = array<i32>} : memref<64x16xf32, #tpu.memory_space<vmem>>, vector<16x16xf32>,
    %90 = vector.extract_strided_slice %82 {offsets = [32, 0], sizes = [16, 16], strides = [1, 1]} : vector<64x16xf32> to vector<16x16xf32>
    %cst_90 = arith.constant dense<0.000000e+00> : vector<16x16xf32>
    %91 = tpu.matmul %83, %90, %cst_90 {dimension_numbers = #tpu.dot_dimension_numbers<[1], [0], [0], [1], [0, 0, 1, 1], [], []>} : vector<16x16xf32>, vector<16x16xf32>, vector<16x16xf32> -> vector<16x16xf32>
    %c32_91 = arith.constant 32 : index
    %c0_92 = arith.constant 0 : index
    %92 = vector.load %arg6[%c32_91, %c0_92] : memref<64x16xf32, #tpu.memory_space<vmem>>, vector<16x16xf32>
    tpu.vector_store %arg6[%c32_91, %c0_92], %91 {strides = array<i32>} : memref<64x16xf32, #tpu.memory_space<vmem>>, vector<16x16xf32>,
    %93 = vector.extract_strided_slice %82 {offsets = [48, 0], sizes = [16, 16], strides = [1, 1]} : vector<64x16xf32> to vector<16x16xf32>
    %cst_93 = arith.constant dense<0.000000e+00> : vector<16x16xf32>
    %94 = tpu.matmul %83, %93, %cst_93 {dimension_numbers = #tpu.dot_dimension_numbers<[1], [0], [0], [1], [0, 0, 1, 1], [], []>} : vector<16x16xf32>, vector<16x16xf32>, vector<16x16xf32> -> vector<16x16xf32>
    %c48_94 = arith.constant 48 : index
    %c0_95 = arith.constant 0 : index
    %95 = vector.load %arg6[%c48_94, %c0_95] : memref<64x16xf32, #tpu.memory_space<vmem>>, vector<16x16xf32>
    tpu.vector_store %arg6[%c48_94, %c0_95], %94 {strides = array<i32>} : memref<64x16xf32, #tpu.memory_space<vmem>>, vector<16x16xf32>,
    %c0_96 = arith.constant 0 : index
    %c0_97 = arith.constant 0 : index
    %96 = vector.load %arg6[%c0_96, %c0_97] : memref<64x16xf32, #tpu.memory_space<vmem>>, vector<64x16xf32>
    %cst_98 = arith.constant 0.00226757373 : f32
    %97 = vector.broadcast %cst_98 : f32 to vector<64x16xf32>
    %98 = arith.mulf %96, %97 : vector<64x16xf32>
    %99 = arith.mulf %19, %37 : vector<64x16xf32>
    %100 = arith.subf %98, %99 : vector<64x16xf32>
    %cst_99 = arith.constant 2.000000e+00 : f32
    %101 = vector.broadcast %cst_99 : f32 to vector<64x16xf32>
    %102 = arith.mulf %101, %19 : vector<64x16xf32>
    %103 = arith.mulf %102, %37 : vector<64x16xf32>
    %cst_100 = arith.constant 9.99999974E-5 : f32
    %104 = vector.broadcast %cst_100 : f32 to vector<64x16xf32>
    %105 = arith.addf %103, %104 : vector<64x16xf32>
    %cst_101 = arith.constant 2.000000e+00 : f32
    %106 = vector.broadcast %cst_101 : f32 to vector<64x16xf32>
    %107 = arith.mulf %106, %100 : vector<64x16xf32>
    %cst_102 = arith.constant 8.99999984E-4 : f32
    %108 = vector.broadcast %cst_102 : f32 to vector<64x16xf32>
    %109 = arith.addf %107, %108 : vector<64x16xf32>
    %110 = arith.mulf %105, %109 : vector<64x16xf32>
    %111 = arith.mulf %19, %19 : vector<64x16xf32>
    %112 = arith.mulf %37, %37 : vector<64x16xf32>
    %113 = arith.addf %111, %112 : vector<64x16xf32>
    %cst_103 = arith.constant 9.99999974E-5 : f32
    %114 = vector.broadcast %cst_103 : f32 to vector<64x16xf32>
    %115 = arith.addf %113, %114 : vector<64x16xf32>
    %116 = arith.addf %58, %79 : vector<64x16xf32>
    %cst_104 = arith.constant 8.99999984E-4 : f32
    %117 = vector.broadcast %cst_104 : f32 to vector<64x16xf32>
    %118 = arith.addf %116, %117 : vector<64x16xf32>
    %119 = arith.mulf %115, %118 : vector<64x16xf32>
    %120 = tpu.reciprocal %119 {approx = true} : vector<64x16xf32> -> vector<64x16xf32>
    %121 = arith.mulf %119, %120 : vector<64x16xf32>
    %cst_105 = arith.constant 2.000000e+00 : f32
    %122 = vector.broadcast %cst_105 : f32 to vector<64x16xf32>
    %123 = arith.subf %122, %121 : vector<64x16xf32>
    %124 = arith.mulf %120, %123 : vector<64x16xf32>
    %125 = arith.mulf %110, %124 : vector<64x16xf32>
    %cst_106 = arith.constant 1.000000e+00 : f32
    %126 = vector.broadcast %cst_106 : f32 to vector<64x16xf32>
    %127 = arith.subf %126, %125 : vector<64x16xf32>
    %cst_107 = arith.constant 5.000000e-01 : f32
    %128 = vector.broadcast %cst_107 : f32 to vector<64x16xf32>
    %129 = arith.mulf %127, %128 : vector<64x16xf32>
    %cst_108 = arith.constant 0.000000e+00 : f32
    %cst_109 = arith.constant 1.000000e+00 : f32
    %130 = vector.broadcast %cst_108 : f32 to vector<64x16xf32>
    %131 = arith.maximumf %130, %129 : vector<64x16xf32>
    %132 = vector.broadcast %cst_109 : f32 to vector<64x16xf32>
    %133 = arith.minimumf %132, %131 : vector<64x16xf32>
    %c0_110 = arith.constant 0 : index
    %c0_111 = arith.constant 0 : index
    %134 = vector.load %arg5[%c0_110, %c0_111] : memref<64x16xf32, #tpu.memory_space<vmem>>, vector<64x16xf32>
    tpu.vector_store %arg5[%c0_110, %c0_111], %133 {strides = array<i32>} : memref<64x16xf32, #tpu.memory_space<vmem>>, vector<64x16xf32>,
    return
  }
  func.func @transform_0(%arg0: i32) -> (i32, i32) {
    %c0_i32 = arith.constant 0 : i32
    %c0_i32_0 = arith.constant 0 : i32
    return %arg0, %c0_i32 : i32, i32
  }
  func.func @transform_1(%arg0: i32) -> (i32, i32) {
    %c0_i32 = arith.constant 0 : i32
    %c0_i32_0 = arith.constant 0 : i32
    return %arg0, %c0_i32 : i32, i32
  }
  func.func @transform_2(%arg0: i32) -> (i32, i32) {
    %c0_i32 = arith.constant 0 : i32
    %c0_i32_0 = arith.constant 0 : i32
    %c0_i32_1 = arith.constant 0 : i32
    return %c0_i32, %c0_i32_0 : i32, i32
  }
  func.func @transform_3(%arg0: i32) -> (i32, i32) {
    %c0_i32 = arith.constant 0 : i32
    %c0_i32_0 = arith.constant 0 : i32
    %c0_i32_1 = arith.constant 0 : i32
    return %c0_i32, %c0_i32_0 : i32, i32
  }
  func.func @transform_4(%arg0: i32) -> (i32, i32) {
    %c0_i32 = arith.constant 0 : i32
    %c0_i32_0 = arith.constant 0 : i32
    return %arg0, %c0_i32 : i32, i32
  }
}

</mosaic_0001>

<bundles_post_ra>
// kernel: tpu_custom_call.1
= control target key start
LH: loop header
LB: loop body
LE: loop exit
PB: predicated region body
PF: predicated region fallthrough
CT: control target
= control target key end

     0   :  { %s3463_s15 = smov 0   ;;  %s3989_s0 = inlined_call_operand.vmem [shape: f32[128,16], index: 0, kind: input, shape index: {}]   ;;  %s3990_s1 = inlined_call_operand.vmem [shape: f32[128,16], index: 1, kind: input, shape index: {}]   ;;  %s3991_s2 = inlined_call_operand.vmem [shape: f32[16,16], index: 2, kind: input, shape index: {}]   ;;  %s3992_s3 = inlined_call_operand.vmem [shape: f32[16,16], index: 3, kind: input, shape index: {}]   ;;  %s3993_s4 = inlined_call_operand.vmem [shape: f32[128,16], index: 4, kind: output, shape index: {}]  }
   0x1 LB: > { %s2863_s16 = sadd.s32 4294967295, %s3436_s15   ;;  %p2867_p0 = scmp.ge.s32.totalorder %s3436_s15, 1  ;;  %s3436_s15 = sphi %s3463_s15, %s14_s15  }
   0x2   : > { %p174_p1 = scmp.lt.s32.totalorder %s3436_s15, 3 }
   0x4   : > { %p175_p2 = pnand %p2867_p0, %p174_p1 }
   0x5   : > { %v239_v0 = vld [vmem:[%s3992_s3] sm:$0xff] (!%p175_p2)  ;;  %v240_v1 = vld [vmem:[%s3992_s3 + $0x8] sm:$0xff] (!%p175_p2)  ;;  %s2868_s21 = sshll.u32 (!%p175_p2), %s2863_s16, 3  ;;  %vm241_vm0 = vcmask (!%p175_p2), 130048  }
   0x6   : > { %178 = sbr.rel (%p175_p2) target bundleno = 563 (0x233), region = 36  ;;  %v3477_v2 = vpack.c.bf16 (!%p175_p2), %v240_v1, %v239_v0  ;;  %p206_p3 = scmp.lt.s32.totalorder (!%p175_p2), %s2868_s21, 15  ;;  %v3590_v43 = vld [vmem:[%s3991_s2] sm:$0xff] (!%p175_p2)  ;;  %v3597_v49 = vld [vmem:[%s3991_s2 + $0x8] sm:$0xff] (!%p175_p2) }
   0x7   : > { %3106 = vmatprep.mubr.msk.f32.mxu1 (!%p175_p2), %vm241_vm0, %v3590_v43 }
   0x8   : > { %3307 = vmatprep.subr.bf16.mxu0 (!%p175_p2), %v3477_v2 }
   0x9   : > { %3309 = vmatpush3.bf16.msra.mxu0 (!%p175_p2), %v3477_v2 }
   0xa   : > { %3327 = vmatprep.subr.bf16.mxu0 (!%p175_p2), %v3477_v2 }
   0xd   : > { %s3995_s21 = smov (!%p206_p3, %s2868_s21), 15 }
   0xe   : > { %s3481_s22 = sshll.u32 %s3995_s21, 3 }
   0xf   : > { %s209_s25 = scalar_lea.vmem %s3989_s0, %s3481_s22  ;;  %s215_s28 = scalar_lea.vmem %s3990_s1, %s3481_s22 }
  0x10   : > { %v3488_v3 = vld [vmem:[%s209_s25] sm:$0xff]  ;;  %v3490_v4 = vld [vmem:[%s209_s25 + $0x8] sm:$0xff]  ;;  %v3492_v5 = vld [vmem:[%s209_s25 + $0x10] sm:$0xff]  ;;  %s3961_s9 = scalar_lea.vmem %s3993_s4, %s3481_s22 }
  0x11   : > { %3090 = vmatprep.mubr.msk.f32.mxu0 %vm241_vm0, %v3488_v3  ;;  %v3501_v6 = vld [vmem:[%s209_s25 + $0x18] sm:$0xff]  ;;  %v3503_v7 = vld [vmem:[%s209_s25 + $0x20] sm:$0xff]  ;;  %v3510_v8 = vld [vmem:[%s209_s25 + $0x28] sm:$0xff]  ;;  %v1166_v18 = vmul.f32 %v3488_v3, %v3488_v3  ;;  %v1167_v20 = vmul.f32 %v3490_v4, %v3490_v4  ;;  %v1168_v21 = vmul.f32 %v3492_v5, %v3492_v5 }
  0x12   : > { %3091 = vmatmul.mubr.msk.f32.vlgmr.msra.gmra.mrb[0].mxu0 %vm241_vm0, %v3490_v4  ;;  %v3512_v9 = vld [vmem:[%s209_s25 + $0x30] sm:$0xff]  ;;  %v3522_v10 = vld [vmem:[%s209_s25 + $0x38] sm:$0xff]  ;;  %v231_v11 = vld [vmem:[%s215_s28] sm:$0xff]  ;;  %v1169_v22 = vmul.f32 %v3501_v6, %v3501_v6  ;;  %v1170_v23 = vmul.f32 %v3503_v7, %v3503_v7  ;;  %v1171_v24 = vmul.f32 %v3510_v8, %v3510_v8 }
  0x13   : > { %3329 = vmatpush3.bf16.msra.mxu0 %v3477_v2  ;;  %3093 = vmatprep.mubr.msk.f32.mxu0 %vm241_vm0, %v3492_v5  ;;  %v232_v12 = vld [vmem:[%s215_s28 + $0x8] sm:$0xff]  ;;  %v233_v13 = vld [vmem:[%s215_s28 + $0x10] sm:$0xff]  ;;  %v234_v14 = vld [vmem:[%s215_s28 + $0x18] sm:$0xff]  ;;  %v1172_v25 = vmul.f32 %v3512_v9, %v3512_v9  ;;  %v1173_v26 = vmul.f32 %v3522_v10, %v3522_v10  ;;  %v1653_v27 = vmul.f32 %v231_v11, %v231_v11 }
  0x14   : > { %3347 = vmatprep.subr.bf16.mxu0 %v3477_v2  ;;  %v235_v15 = vld [vmem:[%s215_s28 + $0x20] sm:$0xff]  ;;  %v236_v16 = vld [vmem:[%s215_s28 + $0x28] sm:$0xff]  ;;  %v237_v17 = vld [vmem:[%s215_s28 + $0x30] sm:$0xff]  ;;  %v1654_v28 = vmul.f32 %v232_v12, %v232_v12  ;;  %v1655_v29 = vmul.f32 %v233_v13, %v233_v13  ;;  %v1656_v30 = vmul.f32 %v234_v14, %v234_v14  ;;  %v2140_v35 = vmul.f32 %v231_v11, %v3488_v3 }
  0x15   : > { %v238_v19 = vld [vmem:[%s215_s28 + $0x38] sm:$0xff]  ;;  %v1657_v31 = vmul.f32 %v235_v15, %v235_v15  ;;  %v1658_v32 = vmul.f32 %v236_v16, %v236_v16  ;;  %v1659_v33 = vmul.f32 %v237_v17, %v237_v17  ;;  %v2141_v36 = vmul.f32 %v232_v12, %v3490_v4 }
  0x16   : > { %3094 = vmatmul.mubr.msk.f32.gmra.mrb[2].mxu0 %vm241_vm0, %v3501_v6  ;;  %v1660_v34 = vmul.f32 %v238_v19, %v238_v19  ;;  %v2142_v37 = vmul.f32 %v233_v13, %v3492_v5  ;;  %v2143_v38 = vmul.f32 %v234_v14, %v3501_v6  ;;  %v2144_v39 = vmul.f32 %v235_v15, %v3503_v7 }
  0x17   : > { %3096 = vmatprep.mubr.msk.f32.mxu0 %vm241_vm0, %v3503_v7  ;;  %v2145_v40 = vmul.f32 %v236_v16, %v3510_v8  ;;  %v2146_v41 = vmul.f32 %v237_v17, %v3512_v9  ;;  %v2147_v42 = vmul.f32 %v238_v19, %v3522_v10 }
  0x1a   : > { %3097 = vmatmul.mubr.msk.f32.gmra.mrb[4].mxu0 %vm241_vm0, %v3510_v8 }
  0x1b   : > { %3099 = vmatprep.mubr.msk.f32.mxu0 %vm241_vm0, %v3512_v9 }
  0x1e   : > { %3100 = vmatmul.mubr.msk.f32.gmra.mrb[6].mxu0 %vm241_vm0, %v3522_v10 }
  0x1f   : > { %3134 = vmatprep.mubr.msk.f32.mxu0 %vm241_vm0, %v231_v11 }
  0x22   : > { %3135 = vmatmul.mubr.msk.f32.vlgmr.msra.gmra.mrb[8].mxu0 %vm241_vm0, %v232_v12 }
  0x23   : > { %3349 = vmatpush3.bf16.msra.mxu0 %v3477_v2  ;;  %3137 = vmatprep.mubr.msk.f32.mxu0 %vm241_vm0, %v233_v13 }
  0x24   : > { %3367 = vmatprep.subr.bf16.mxu0 %v3477_v2 }
  0x26   : > { %3138 = vmatmul.mubr.msk.f32.gmra.mrb[10].mxu0 %vm241_vm0, %v234_v14 }
  0x27   : > { %3140 = vmatprep.mubr.msk.f32.mxu0 %vm241_vm0, %v235_v15 }
  0x2a   : > { %3141 = vmatmul.mubr.msk.f32.gmra.mrb[12].mxu0 %vm241_vm0, %v236_v16 }
  0x2b   : > { %3143 = vmatprep.mubr.msk.f32.mxu0 %vm241_vm0, %v237_v17 }
  0x2e   : > { %3144 = vmatmul.mubr.msk.f32.gmra.mrb[14].mxu0 %vm241_vm0, %v238_v19 }
  0x2f   : > { %3178 = vmatprep.mubr.msk.f32.mxu0 %vm241_vm0, %v1166_v18 }
  0x32   : > { %3179 = vmatmul.mubr.msk.f32.vlgmr.msra.gmra.mrb[16].mxu0 %vm241_vm0, %v1167_v20 }
  0x33   : > { %3369 = vmatpush3.bf16.msra.mxu0 %v3477_v2  ;;  %3181 = vmatprep.mubr.msk.f32.mxu0 %vm241_vm0, %v1168_v21 }
  0x34   : > { %3387 = vmatprep.subr.bf16.mxu0 %v3477_v2 }
  0x36   : > { %3182 = vmatmul.mubr.msk.f32.gmra.mrb[18].mxu0 %vm241_vm0, %v1169_v22 }
  0x37   : > { %3184 = vmatprep.mubr.msk.f32.mxu0 %vm241_vm0, %v1170_v23 }
  0x3a   : > { %3185 = vmatmul.mubr.msk.f32.gmra.mrb[20].mxu0 %vm241_vm0, %v1171_v24 }
  0x3b   : > { %3187 = vmatprep.mubr.msk.f32.mxu0 %vm241_vm0, %v1172_v25 }
  0x3e   : > { %3188 = vmatmul.mubr.msk.f32.gmra.mrb[22].mxu0 %vm241_vm0, %v1173_v26 }
  0x3f   : > { %3222 = vmatprep.mubr.msk.f32.mxu0 %vm241_vm0, %v1653_v27 }
  0x42   : > { %3223 = vmatmul.mubr.msk.f32.vlgmr.msra.gmra.mrb[24].mxu0 %vm241_vm0, %v1654_v28 }
  0x43   : > { %3389 = vmatpush3.bf16.msra.mxu0 %v3477_v2  ;;  %3225 = vmatprep.mubr.msk.f32.mxu0 %vm241_vm0, %v1655_v29 }
  0x46   : > { %3226 = vmatmul.mubr.msk.f32.gmra.mrb[26].mxu0 %vm241_vm0, %v1656_v30 }
  0x47   : > { %3228 = vmatprep.mubr.msk.f32.mxu0 %vm241_vm0, %v1657_v31 }
  0x4a   : > { %3229 = vmatmul.mubr.msk.f32.gmra.mrb[28].mxu0 %vm241_vm0, %v1658_v32 }
  0x4b   : > { %3231 = vmatprep.mubr.msk.f32.mxu0 %vm241_vm0, %v1659_v33 }
  0x4e   : > { %3232 = vmatmul.mubr.msk.f32.gmra.mrb[30].mxu0 %vm241_vm0, %v1660_v34 }
  0x4f   : > { %3266 = vmatprep.mubr.msk.f32.mxu0 %vm241_vm0, %v2140_v35 }
  0x52   : > { %3267 = vmatmul.mubr.msk.f32.vlgmr.msra.gmra.mrb[32].mxu0 %vm241_vm0, %v2141_v36 }
  0x53   : > { %3269 = vmatprep.mubr.msk.f32.mxu0 %vm241_vm0, %v2142_v37 }
  0x56   : > { %3270 = vmatmul.mubr.msk.f32.gmra.mrb[34].mxu0 %vm241_vm0, %v2143_v38 }
  0x57   : > { %3272 = vmatprep.mubr.msk.f32.mxu0 %vm241_vm0, %v2144_v39 }
  0x5a   : > { %3273 = vmatmul.mubr.msk.f32.gmra.mrb[36].mxu0 %vm241_vm0, %v2145_v40 }
  0x5b   : > { %3275 = vmatprep.mubr.msk.f32.mxu0 %vm241_vm0, %v2146_v41 }
  0x5e   : > { %3276 = vmatmul.mubr.msk.f32.gmra.mrb[38].mxu0 %vm241_vm0, %v2147_v42 }
  0xe5   : > { %v3092_v44 = vpop.f32.mrb[0].mxu0 }
  0xe6   : > { %v332_v45 = vpop.f32.mrb[1].mxu0 }
  0xe7   : > { %v3310_v46 = vpack.c.bf16 %v3092_v44, %v332_v45 }
  0xe9   : > { %v3095_v47 = vpop.f32.mrb[2].mxu0  ;;  %3311 = vmatprep.subr.bf16.mxu1 %v3310_v46 }
  0xea   : > { %v342_v48 = vpop.f32.mrb[3].mxu0  ;;  %3313 = vmatpush3.bf16.msra.mxu1 %v3310_v46 }
  0xeb   : > { %v3314_v50 = vpack.c.bf16 %v3095_v47, %v342_v48 }
  0xed   : > { %v3098_v51 = vpop.f32.mrb[4].mxu0  ;;  %3107 = vmatmul.mubr.msk.f32.vlgmr.msra.gmra.mrb[0].mxu1 %vm241_vm0, %v3597_v49  ;;  %3315 = vmatprep.subr.bf16.mxu1 %v3314_v50 }
  0xee   : > { %v352_v52 = vpop.f32.mrb[5].mxu0  ;;  %3317 = vmatpush3.bf16.msra.mxu1 %v3314_v50  ;;  %3113 = vmatprep.mubr.msk.f32.mxu1 %vm241_vm0, %v3590_v43 }
  0xef   : > { %v3318_v53 = vpack.c.bf16 %v3098_v51, %v352_v52 }
  0xf1   : > { %v3101_v54 = vpop.f32.mrb[6].mxu0  ;;  %3114 = vmatmul.mubr.msk.f32.vlgmr.msra.gmra.mrb[2].mxu1 %vm241_vm0, %v3597_v49  ;;  %3319 = vmatprep.subr.bf16.mxu1 %v3318_v53 }
  0xf2   : > { %v362_v55 = vpop.f32.mrb[7].mxu0  ;;  %3321 = vmatpush3.bf16.msra.mxu1 %v3318_v53  ;;  %3120 = vmatprep.mubr.msk.f32.mxu1 %vm241_vm0, %v3590_v43 }
  0xf3   : > { %v3322_v56 = vpack.c.bf16 %v3101_v54, %v362_v55 }
  0xf5   : > { %3121 = vmatmul.mubr.msk.f32.vlgmr.msra.gmra.mrb[4].mxu1 %vm241_vm0, %v3597_v49  ;;  %3323 = vmatprep.subr.bf16.mxu1 %v3322_v56  ;;  %v3136_v57 = vpop.f32.mrb[8].mxu0 }
  0xf6   : > { %3325 = vmatpush3.bf16.msra.mxu1 %v3322_v56  ;;  %v795_v58 = vpop.f32.mrb[9].mxu0  ;;  %3127 = vmatprep.mubr.msk.f32.mxu1 %vm241_vm0, %v3590_v43 }
  0xf7   : > { %v3330_v59 = vpack.c.bf16 %v3136_v57, %v795_v58 }
  0xf9   : > { %3128 = vmatmul.mubr.msk.f32.vlgmr.msra.gmra.mrb[6].mxu1 %vm241_vm0, %v3597_v49  ;;  %v3139_v60 = vpop.f32.mrb[10].mxu0  ;;  %3331 = vmatprep.subr.bf16.mxu1 %v3330_v59 }
  0xfa   : > { %v805_v61 = vpop.f32.mrb[11].mxu0  ;;  %3333 = vmatpush3.bf16.msra.mxu1 %v3330_v59  ;;  %3150 = vmatprep.mubr.msk.f32.mxu1 %vm241_vm0, %v3590_v43 }
  0xfb   : > { %v3334_v62 = vpack.c.bf16 %v3139_v60, %v805_v61 }
  0xfd   : > { %v3142_v63 = vpop.f32.mrb[12].mxu0  ;;  %3151 = vmatmul.mubr.msk.f32.vlgmr.msra.gmra.mrb[8].mxu1 %vm241_vm0, %v3597_v49  ;;  %3335 = vmatprep.subr.bf16.mxu1 %v3334_v62 }
  0xfe   : > { %v815_v0 = vpop.f32.mrb[13].mxu0  ;;  %3337 = vmatpush3.bf16.msra.mxu1 %v3334_v62  ;;  %3157 = vmatprep.mubr.msk.f32.mxu1 %vm241_vm0, %v3590_v43 }
  0xff   : > { %v3338_v1 = vpack.c.bf16 %v3142_v63, %v815_v0 }
 0x101   : > { %v3145_v2 = vpop.f32.mrb[14].mxu0  ;;  %3158 = vmatmul.mubr.msk.f32.vlgmr.msra.gmra.mrb[10].mxu1 %vm241_vm0, %v3597_v49  ;;  %3339 = vmatprep.subr.bf16.mxu1 %v3338_v1 }
 0x102   : > { %v825_v3 = vpop.f32.mrb[15].mxu0  ;;  %3341 = vmatpush3.bf16.msra.mxu1 %v3338_v1  ;;  %3164 = vmatprep.mubr.msk.f32.mxu1 %vm241_vm0, %v3590_v43 }
 0x103   : > { %v3342_v4 = vpack.c.bf16 %v3145_v2, %v825_v3 }
 0x105   : > { %3165 = vmatmul.mubr.msk.f32.vlgmr.msra.gmra.mrb[12].mxu1 %vm241_vm0, %v3597_v49  ;;  %3343 = vmatprep.subr.bf16.mxu1 %v3342_v4  ;;  %v3180_v5 = vpop.f32.mrb[16].mxu0 }
 0x106   : > { %3345 = vmatpush3.bf16.msra.mxu1 %v3342_v4  ;;  %v1266_v6 = vpop.f32.mrb[17].mxu0  ;;  %3171 = vmatprep.mubr.msk.f32.mxu1 %vm241_vm0, %v3590_v43 }
 0x107   : > { %v3350_v7 = vpack.c.bf16 %v3180_v5, %v1266_v6 }
 0x109   : > { %3172 = vmatmul.mubr.msk.f32.vlgmr.msra.gmra.mrb[14].mxu1 %vm241_vm0, %v3597_v49  ;;  %v3183_v8 = vpop.f32.mrb[18].mxu0  ;;  %3351 = vmatprep.subr.bf16.mxu1 %v3350_v7 }
 0x10a   : > { %v1276_v9 = vpop.f32.mrb[19].mxu0  ;;  %3353 = vmatpush3.bf16.msra.mxu1 %v3350_v7  ;;  %3194 = vmatprep.mubr.msk.f32.mxu1 %vm241_vm0, %v3590_v43 }
 0x10b   : > { %v3354_v10 = vpack.c.bf16 %v3183_v8, %v1276_v9 }
 0x10d   : > { %v3186_v11 = vpop.f32.mrb[20].mxu0  ;;  %3195 = vmatmul.mubr.msk.f32.vlgmr.msra.gmra.mrb[16].mxu1 %vm241_vm0, %v3597_v49  ;;  %3355 = vmatprep.subr.bf16.mxu1 %v3354_v10 }
 0x10e   : > { %v1286_v12 = vpop.f32.mrb[21].mxu0  ;;  %3357 = vmatpush3.bf16.msra.mxu1 %v3354_v10  ;;  %3201 = vmatprep.mubr.msk.f32.mxu1 %vm241_vm0, %v3590_v43 }
 0x10f   : > { %v3358_v13 = vpack.c.bf16 %v3186_v11, %v1286_v12 }
 0x111   : > { %v3189_v14 = vpop.f32.mrb[22].mxu0  ;;  %3202 = vmatmul.mubr.msk.f32.vlgmr.msra.gmra.mrb[18].mxu1 %vm241_vm0, %v3597_v49  ;;  %3359 = vmatprep.subr.bf16.mxu1 %v3358_v13 }
 0x112   : > { %v1296_v15 = vpop.f32.mrb[23].mxu0  ;;  %3361 = vmatpush3.bf16.msra.mxu1 %v3358_v13  ;;  %3208 = vmatprep.mubr.msk.f32.mxu1 %vm241_vm0, %v3590_v43 }
 0x113   : > { %v3362_v16 = vpack.c.bf16 %v3189_v14, %v1296_v15 }
 0x115   : > { %3209 = vmatmul.mubr.msk.f32.vlgmr.msra.gmra.mrb[20].mxu1 %vm241_vm0, %v3597_v49  ;;  %3363 = vmatprep.subr.bf16.mxu1 %v3362_v16  ;;  %v3224_v17 = vpop.f32.mrb[24].mxu0 }
 0x116   : > { %3365 = vmatpush3.bf16.msra.mxu1 %v3362_v16  ;;  %v1753_v18 = vpop.f32.mrb[25].mxu0  ;;  %3215 = vmatprep.mubr.msk.f32.mxu1 %vm241_vm0, %v3590_v43 }
 0x117   : > { %v3370_v19 = vpack.c.bf16 %v3224_v17, %v1753_v18 }
 0x119   : > { %3216 = vmatmul.mubr.msk.f32.vlgmr.msra.gmra.mrb[22].mxu1 %vm241_vm0, %v3597_v49  ;;  %v3227_v20 = vpop.f32.mrb[26].mxu0  ;;  %3371 = vmatprep.subr.bf16.mxu1 %v3370_v19 }
 0x11a   : > { %v1763_v21 = vpop.f32.mrb[27].mxu0  ;;  %3373 = vmatpush3.bf16.msra.mxu1 %v3370_v19  ;;  %3238 = vmatprep.mubr.msk.f32.mxu1 %vm241_vm0, %v3590_v43 }
 0x11b   : > { %v3374_v22 = vpack.c.bf16 %v3227_v20, %v1763_v21 }
 0x11d   : > { %v3230_v23 = vpop.f32.mrb[28].mxu0  ;;  %3239 = vmatmul.mubr.msk.f32.vlgmr.msra.gmra.mrb[24].mxu1 %vm241_vm0, %v3597_v49  ;;  %3375 = vmatprep.subr.bf16.mxu1 %v3374_v22 }
 0x11e   : > { %v1773_v24 = vpop.f32.mrb[29].mxu0  ;;  %3377 = vmatpush3.bf16.msra.mxu1 %v3374_v22  ;;  %3245 = vmatprep.mubr.msk.f32.mxu1 %vm241_vm0, %v3590_v43 }
 0x11f   : > { %v3378_v25 = vpack.c.bf16 %v3230_v23, %v1773_v24 }
 0x121   : > { %v3233_v26 = vpop.f32.mrb[30].mxu0  ;;  %3246 = vmatmul.mubr.msk.f32.vlgmr.msra.gmra.mrb[26].mxu1 %vm241_vm0, %v3597_v49  ;;  %3379 = vmatprep.subr.bf16.mxu1 %v3378_v25 }
 0x122   : > { %v1783_v27 = vpop.f32.mrb[31].mxu0  ;;  %3381 = vmatpush3.bf16.msra.mxu1 %v3378_v25  ;;  %3252 = vmatprep.mubr.msk.f32.mxu1 %vm241_vm0, %v3590_v43 }
 0x123   : > { %v3382_v28 = vpack.c.bf16 %v3233_v26, %v1783_v27 }
 0x125   : > { %3253 = vmatmul.mubr.msk.f32.vlgmr.msra.gmra.mrb[28].mxu1 %vm241_vm0, %v3597_v49  ;;  %3383 = vmatprep.subr.bf16.mxu1 %v3382_v28  ;;  %v3268_v29 = vpop.f32.mrb[32].mxu0 }
 0x126   : > { %3385 = vmatpush3.bf16.msra.mxu1 %v3382_v28  ;;  %v2240_v30 = vpop.f32.mrb[33].mxu0  ;;  %3259 = vmatprep.mubr.msk.f32.mxu1 %vm241_vm0, %v3590_v43 }
 0x127   : > { %v3390_v31 = vpack.c.bf16 %v3268_v29, %v2240_v30 }
 0x129   : > { %3260 = vmatmul.mubr.msk.f32.vlgmr.msra.gmra.mrb[30].mxu1 %vm241_vm0, %v3597_v49  ;;  %v3271_v32 = vpop.f32.mrb[34].mxu0  ;;  %3391 = vmatprep.subr.bf16.mxu1 %v3390_v31 }
 0x12a   : > { %v2250_v33 = vpop.f32.mrb[35].mxu0  ;;  %3393 = vmatpush3.bf16.msra.mxu1 %v3390_v31  ;;  %3282 = vmatprep.mubr.msk.f32.mxu1 %vm241_vm0, %v3590_v43 }
 0x12b   : > { %v3394_v34 = vpack.c.bf16 %v3271_v32, %v2250_v33 }
 0x12d   : > { %v3274_v35 = vpop.f32.mrb[36].mxu0  ;;  %3283 = vmatmul.mubr.msk.f32.vlgmr.msra.gmra.mrb[32].mxu1 %vm241_vm0, %v3597_v49  ;;  %3395 = vmatprep.subr.bf16.mxu1 %v3394_v34 }
 0x12e   : > { %v2260_v36 = vpop.f32.mrb[37].mxu0  ;;  %3397 = vmatpush3.bf16.msra.mxu1 %v3394_v34  ;;  %3289 = vmatprep.mubr.msk.f32.mxu1 %vm241_vm0, %v3590_v43 }
 0x12f   : > { %v3398_v37 = vpack.c.bf16 %v3274_v35, %v2260_v36 }
 0x131   : > { %v3277_v38 = vpop.f32.mrb[38].mxu0  ;;  %3290 = vmatmul.mubr.msk.f32.vlgmr.msra.gmra.mrb[34].mxu1 %vm241_vm0, %v3597_v49  ;;  %3399 = vmatprep.subr.bf16.mxu1 %v3398_v37 }
 0x132   : > { %v2270_v39 = vpop.f32.mrb[39].mxu0  ;;  %3401 = vmatpush3.bf16.msra.mxu1 %v3398_v37  ;;  %3296 = vmatprep.mubr.msk.f32.mxu1 %vm241_vm0, %v3590_v43 }
 0x133   : > { %v3402_v40 = vpack.c.bf16 %v3277_v38, %v2270_v39 }
 0x135   : > { %3297 = vmatmul.mubr.msk.f32.vlgmr.msra.gmra.mrb[36].mxu1 %vm241_vm0, %v3597_v49  ;;  %3403 = vmatprep.subr.bf16.mxu1 %v3402_v40 }
 0x136   : > { %3405 = vmatpush3.bf16.msra.mxu1 %v3402_v40  ;;  %3303 = vmatprep.mubr.msk.f32.mxu1 %vm241_vm0, %v3590_v43 }
 0x139   : > { %3304 = vmatmul.mubr.msk.f32.vlgmr.msra.gmra.mrb[38].mxu1 %vm241_vm0, %v3597_v49 }
 0x1c0   : > { %v3108_v41 = vpop.f32.mrb[0].mxu1 }
 0x1c1   : > { %455 = vst.msk [vmem:[#allocation2 + $0x8] sm:$0xff] %vm241_vm0, %v3108_v41  ;;  %v445_v42 = vpop.f32.mrb[1].mxu1 }
 0x1c2   : > { %454 = vst.msk [vmem:[#allocation2] sm:$0xff] %vm241_vm0, %v445_v42 }
 0x1c4   : > { %v3115_v44 = vpop.f32.mrb[2].mxu1 }
 0x1c5   : > { %532 = vst.msk [vmem:[#allocation2 + $0x18] sm:$0xff] %vm241_vm0, %v3115_v44  ;;  %v522_v45 = vpop.f32.mrb[3].mxu1 }
 0x1c6   : > { %531 = vst.msk [vmem:[#allocation2 + $0x10] sm:$0xff] %vm241_vm0, %v522_v45 }
 0x1c8   : > { %v3122_v46 = vpop.f32.mrb[4].mxu1  ;;  %v688_v49 = vld [vmem:[#allocation2 + $0x8] sm:$0xff] }
 0x1c9   : > { %609 = vst.msk [vmem:[#allocation2 + $0x28] sm:$0xff] %vm241_vm0, %v3122_v46  ;;  %v599_v47 = vpop.f32.mrb[5].mxu1  ;;  %v687_v51 = vld [vmem:[#allocation2] sm:$0xff]  ;;  %v3697_v9 = vmul.f32 0.0022675737, %v688_v49 }
 0x1ca   : > { %608 = vst.msk [vmem:[#allocation2 + $0x20] sm:$0xff] %vm241_vm0, %v599_v47  ;;  %v3699_v10 = vmul.f32 0.0022675737, %v687_v51 }
 0x1cb   : > { %v2628_v21 = vmul.f32 2.0, %v3697_v9  ;;  %v3719_v23 = vmul.f32 %v3697_v9, %v3697_v9 }
 0x1cc   : > { %v3129_v43 = vpop.f32.mrb[6].mxu1  ;;  %v690_v53 = vld [vmem:[#allocation2 + $0x18] sm:$0xff]  ;;  %v2627_v22 = vmul.f32 2.0, %v3699_v10  ;;  %v3730_v29 = vmul.f32 %v3699_v10, %v3699_v10 }
 0x1cd   : > { %686 = vst.msk [vmem:[#allocation2 + $0x38] sm:$0xff] %vm241_vm0, %v3129_v43  ;;  %v676_v48 = vpop.f32.mrb[7].mxu1  ;;  %v689_v55 = vld [vmem:[#allocation2 + $0x10] sm:$0xff]  ;;  %v3703_v12 = vmul.f32 0.0022675737, %v690_v53 }
 0x1ce   : > { %685 = vst.msk [vmem:[#allocation2 + $0x30] sm:$0xff] %vm241_vm0, %v676_v48  ;;  %v3710_v19 = vmul.f32 0.0022675737, %v689_v55 }
 0x1cf   : > { %v2630_v25 = vmul.f32 2.0, %v3703_v12  ;;  %v3745_v35 = vmul.f32 %v3703_v12, %v3703_v12 }
 0x1d0   : > { %v3152_v50 = vpop.f32.mrb[8].mxu1  ;;  %v692_v57 = vld [vmem:[#allocation2 + $0x28] sm:$0xff]  ;;  %v2629_v37 = vmul.f32 2.0, %v3710_v19  ;;  %v3769_v49 = vmul.f32 %v3710_v19, %v3710_v19 }
 0x1d1   : > { %918 = vst.msk [vmem:[#allocation2 + $0x8] sm:$0xff] %vm241_vm0, %v3152_v50  ;;  %v908_v52 = vpop.f32.mrb[9].mxu1  ;;  %v691_v59 = vld [vmem:[#allocation2 + $0x20] sm:$0xff]  ;;  %v3726_v26 = vmul.f32 0.0022675737, %v692_v57 }
 0x1d2   : > { %917 = vst.msk [vmem:[#allocation2] sm:$0xff] %vm241_vm0, %v908_v52  ;;  %v3736_v31 = vmul.f32 0.0022675737, %v691_v59 }
 0x1d3   : > { %v2632_v46 = vmul.f32 2.0, %v3726_v26 }
 0x1d4   : > { %v3159_v54 = vpop.f32.mrb[10].mxu1  ;;  %v694_v61 = vld [vmem:[#allocation2 + $0x38] sm:$0xff]  ;;  %v2631_v51 = vmul.f32 2.0, %v3736_v31 }
 0x1d5   : > { %995 = vst.msk [vmem:[#allocation2 + $0x18] sm:$0xff] %vm241_vm0, %v3159_v54  ;;  %v985_v56 = vpop.f32.mrb[11].mxu1  ;;  %v693_v63 = vld [vmem:[#allocation2 + $0x30] sm:$0xff]  ;;  %v3738_v32 = vmul.f32 0.0022675737, %v694_v61 }
 0x1d6   : > { %994 = vst.msk [vmem:[#allocation2 + $0x10] sm:$0xff] %vm241_vm0, %v985_v56  ;;  %v3752_v38 = vmul.f32 0.0022675737, %v693_v63 }
 0x1d7   : > { %v3775_v52 = vmul.f32 2.0, %v3738_v32 }
 0x1d8   : > { %v3166_v58 = vpop.f32.mrb[12].mxu1  ;;  %v1151_v1 = vld [vmem:[#allocation2 + $0x8] sm:$0xff]  ;;  %v3782_v57 = vmul.f32 2.0, %v3752_v38 }
 0x1d9   : > { %1072 = vst.msk [vmem:[#allocation2 + $0x28] sm:$0xff] %vm241_vm0, %v3166_v58  ;;  %v1062_v60 = vpop.f32.mrb[13].mxu1  ;;  %v1150_v3 = vld [vmem:[#allocation2] sm:$0xff]  ;;  %v3701_v11 = vmul.f32 0.0022675737, %v1151_v1 }
 0x1da   : > { %1071 = vst.msk [vmem:[#allocation2 + $0x20] sm:$0xff] %vm241_vm0, %v1062_v60  ;;  %v3705_v13 = vmul.f32 0.0022675737, %v1150_v3 }
 0x1db   : > { %v3723_v24 = vmul.f32 %v3701_v11, %v3701_v11  ;;  %v2636_v41 = vmul.f32 %v2628_v21, %v3701_v11 }
 0x1dc   : > { %v3173_v62 = vpop.f32.mrb[14].mxu1  ;;  %v1153_v5 = vld [vmem:[#allocation2 + $0x18] sm:$0xff]  ;;  %v3734_v30 = vmul.f32 %v3705_v13, %v3705_v13  ;;  %v2635_v42 = vmul.f32 %v2627_v22, %v3705_v13 }
 0x1dd   : > { %1149 = vst.msk [vmem:[#allocation2 + $0x38] sm:$0xff] %vm241_vm0, %v3173_v62  ;;  %v1139_v0 = vpop.f32.mrb[15].mxu1  ;;  %v1152_v7 = vld [vmem:[#allocation2 + $0x10] sm:$0xff]  ;;  %v3707_v16 = vmul.f32 0.0022675737, %v1153_v5  ;;  %v2676_v45 = vadd.f32 %v3723_v24, %v3719_v23 }
 0x1de   : > { %1148 = vst.msk [vmem:[#allocation2 + $0x30] sm:$0xff] %vm241_vm0, %v1139_v0  ;;  %v3712_v20 = vmul.f32 0.0022675737, %v1152_v7  ;;  %v2675_v50 = vadd.f32 %v3734_v30, %v3730_v29  ;;  %v3789_v61 = vadd.f32 0.0001, %v2636_v41  ;;  %v3832_v41 = vmul.f32 %v3701_v11, %v3697_v9 }
 0x1df   : > { %v3749_v36 = vmul.f32 %v3707_v16, %v3707_v16  ;;  %v2638_v47 = vmul.f32 %v2630_v25, %v3707_v16  ;;  %v3791_v62 = vadd.f32 0.0001, %v2635_v42  ;;  %v3794_v0 = vadd.f32 0.0001, %v2676_v45 }
 0x1e0   : > { %v3196_v2 = vpop.f32.mrb[16].mxu1  ;;  %v1155_v14 = vld [vmem:[#allocation2 + $0x28] sm:$0xff]  ;;  %v3757_v40 = vmul.f32 %v3712_v20, %v3712_v20  ;;  %v2637_v53 = vmul.f32 %v2629_v37, %v3712_v20  ;;  %v3802_v5 = vadd.f32 0.0001, %v2675_v50  ;;  %v3828_v37 = vmul.f32 %v3738_v32, %v3738_v32 }
 0x1e1   : > { %1389 = vst.msk [vmem:[#allocation2 + $0x8] sm:$0xff] %vm241_vm0, %v3196_v2  ;;  %v1379_v4 = vpop.f32.mrb[17].mxu1  ;;  %v1154_v17 = vld [vmem:[#allocation2 + $0x20] sm:$0xff]  ;;  %v1163_v39 = vmul.f32 0.0022675737, %v1155_v14  ;;  %v2678_v56 = vadd.f32 %v3749_v36, %v3745_v35  ;;  %v3809_v14 = vmul.f32 %v3736_v31, %v3736_v31  ;;  %v3836_v42 = vmul.f32 %v3705_v13, %v3699_v10 }
 0x1e2   : > { %1388 = vst.msk [vmem:[#allocation2] sm:$0xff] %vm241_vm0, %v1379_v4  ;;  %v3761_v44 = vmul.f32 0.0022675737, %v1154_v17  ;;  %v2677_v59 = vadd.f32 %v3757_v40, %v3769_v49  ;;  %v3796_v1 = vadd.f32 0.0001, %v2638_v47  ;;  %v3800_v4 = vmul.f32 %v3726_v26, %v3726_v26 }
 0x1e3   : > { %v2640_v58 = vmul.f32 %v2632_v46, %v1163_v39  ;;  %v3787_v60 = vmul.f32 %v1163_v39, %v1163_v39  ;;  %v3848_v9 = vmul.f32 %v3712_v20, %v3710_v19  ;;  %v3851_v11 = vmul.f32 %v1163_v39, %v3726_v26 }
 0x1e4   : > { %v3203_v6 = vpop.f32.mrb[18].mxu1  ;;  %v1157_v27 = vld [vmem:[#allocation2 + $0x38] sm:$0xff]  ;;  %v2639_v63 = vmul.f32 %v2631_v51, %v3761_v44  ;;  %v3822_v22 = vmul.f32 %v3761_v44, %v3761_v44 }
 0x1e5   : > { %1466 = vst.msk [vmem:[#allocation2 + $0x18] sm:$0xff] %vm241_vm0, %v3203_v6  ;;  %v1456_v8 = vpop.f32.mrb[19].mxu1  ;;  %v3741_v33 = vld [vmem:[#allocation2 + $0x30] sm:$0xff]  ;;  %v3804_v6 = vadd.f32 0.0001, %v2637_v53  ;;  %v2680_v21 = vadd.f32 %v3787_v60, %v3800_v4 }
 0x1e6   : > { %1465 = vst.msk [vmem:[#allocation2 + $0x10] sm:$0xff] %vm241_vm0, %v1456_v8  ;;  %v3813_v17 = vadd.f32 0.0001, %v2640_v58  ;;  %v3824_v25 = vadd.f32 0.0001, %v2639_v63  ;;  %v2679_v19 = vadd.f32 %v3822_v22, %v3809_v14 }
 0x1e7   : > { %v3855_v53 = vmul.f32 0.0022675737, %v3741_v33 }
 0x1e8   : > { %v3210_v15 = vpop.f32.mrb[20].mxu1  ;;  %v1622_v43 = vld [vmem:[#allocation2 + $0x8] sm:$0xff] }
 0x1e9   : > { %1543 = vst.msk [vmem:[#allocation2 + $0x28] sm:$0xff] %vm241_vm0, %v3210_v15  ;;  %v1533_v18 = vpop.f32.mrb[21].mxu1  ;;  %v1621_v54 = vld [vmem:[#allocation2] sm:$0xff]  ;;  %v3811_v15 = vadd.f32 0.0001, %v2678_v56 }
 0x1ea   : > { %1542 = vst.msk [vmem:[#allocation2 + $0x20] sm:$0xff] %vm241_vm0, %v1533_v18  ;;  %v3816_v18 = vadd.f32 0.0001, %v2677_v59  ;;  %v1629_v45 = vmul.f32 0.0022675737, %v1621_v54 }
 0x1ec   : > { %v3217_v28 = vpop.f32.mrb[22].mxu1  ;;  %v1624_v2 = vld [vmem:[#allocation2 + $0x18] sm:$0xff]  ;;  %v1645_v33 = vsub.f32 %v1629_v45, %v3730_v29 }
 0x1ed   : > { %1620 = vst.msk [vmem:[#allocation2 + $0x38] sm:$0xff] %vm241_vm0, %v3217_v28  ;;  %v1610_v34 = vpop.f32.mrb[23].mxu1  ;;  %v1623_v7 = vld [vmem:[#allocation2 + $0x10] sm:$0xff]  ;;  %v1165_v28 = vmul.f32 0.0022675737, %v1157_v27 }
 0x1ee   : > { %1619 = vst.msk [vmem:[#allocation2 + $0x30] sm:$0xff] %vm241_vm0, %v1610_v34  ;;  %v1630_v34 = vmul.f32 0.0022675737, %v1622_v43  ;;  %v3844_v43 = vmul.f32 %v3707_v16, %v3703_v12  ;;  %v3858_v16 = vadd.f32 0.0001, %v2680_v21 }
 0x1ef   : > { %v1632_v26 = vmul.f32 0.0022675737, %v1624_v2  ;;  %v1631_v39 = vmul.f32 0.0022675737, %v1623_v7 }
 0x1f0   : > { %v3240_v48 = vpop.f32.mrb[24].mxu1  ;;  %v1626_v46 = vld [vmem:[#allocation2 + $0x28] sm:$0xff]  ;;  %v1646_v20 = vsub.f32 %v1630_v34, %v3719_v23  ;;  %v3874_v23 = vmul.f32 %v3775_v52, %v1165_v28  ;;  %v2687_v52 = vadd.f32 0.0001, %v2679_v19 }
 0x1f1   : > { %1876 = vst.msk [vmem:[#allocation2 + $0x8] sm:$0xff] %vm241_vm0, %v3240_v48  ;;  %v1866_v55 = vpop.f32.mrb[25].mxu1  ;;  %v3840_v48 = vmul.f32 %v3752_v38, %v3752_v38  ;;  %v1625_v10 = vld [vmem:[#allocation2 + $0x20] sm:$0xff]  ;;  %v1634_v56 = vmul.f32 0.0022675737, %v1626_v46  ;;  %v1648_v45 = vsub.f32 %v1632_v26, %v3745_v35 }
 0x1f2   : > { %1875 = vst.msk [vmem:[#allocation2] sm:$0xff] %vm241_vm0, %v1866_v55  ;;  %v3866_v55 = vmul.f32 %v3761_v44, %v3736_v31  ;;  %v1633_v29 = vmul.f32 0.0022675737, %v1625_v10  ;;  %v2130_v10 = vmul.f32 %v3855_v53, %v3855_v53 }
 0x1f4   : > { %v3247_v3 = vpop.f32.mrb[26].mxu1  ;;  %v1628_v58 = vld [vmem:[#allocation2 + $0x38] sm:$0xff] }
 0x1f5   : > { %1953 = vst.msk [vmem:[#allocation2 + $0x18] sm:$0xff] %vm241_vm0, %v3247_v3  ;;  %v1943_v8 = vpop.f32.mrb[27].mxu1 }
 0x1f6   : > { %1952 = vst.msk [vmem:[#allocation2 + $0x10] sm:$0xff] %vm241_vm0, %v1943_v8  ;;  %v3871_v8 = vmul.f32 %v1165_v28, %v3738_v32 }
 0x1f8   : > { %v3254_v47 = vpop.f32.mrb[28].mxu1  ;;  %v2109_v27 = vld [vmem:[#allocation2 + $0x8] sm:$0xff] }
 0x1f9   : > { %2030 = vst.msk [vmem:[#allocation2 + $0x28] sm:$0xff] %vm241_vm0, %v3254_v47  ;;  %v2020_v13 = vpop.f32.mrb[29].mxu1  ;;  %v2117_v50 = vmul.f32 0.0022675737, %v2109_v27  ;;  %v2108_v51 = vld [vmem:[#allocation2] sm:$0xff]  ;;  %v1647_v47 = vsub.f32 %v1631_v39, %v3769_v49  ;;  %v1649_v49 = vsub.f32 %v1633_v29, %v3809_v14 }
 0x1fa   : > { %2029 = vst.msk [vmem:[#allocation2 + $0x20] sm:$0xff] %vm241_vm0, %v2020_v13  ;;  %v2116_v12 = vmul.f32 0.0022675737, %v2108_v51 }
 0x1fb   : > { %v2133_v54 = vsub.f32 %v2117_v50, %v3723_v24  ;;  %v1627_v24 = vld [vmem:[#allocation2 + $0x30] sm:$0xff] }
 0x1fc   : > { %v3261_v59 = vpop.f32.mrb[30].mxu1  ;;  %v2132_v63 = vsub.f32 %v2116_v12, %v3734_v30  ;;  %v2111_v3 = vld [vmem:[#allocation2 + $0x18] sm:$0xff]  ;;  %v2131_v30 = vmul.f32 %v1165_v28, %v1165_v28  ;;  %v1650_v12 = vsub.f32 %v1634_v56, %v3800_v4 }
 0x1fd   : > { %2107 = vst.msk [vmem:[#allocation2 + $0x38] sm:$0xff] %vm241_vm0, %v3261_v59  ;;  %v2097_v2 = vpop.f32.mrb[31].mxu1  ;;  %v2692_v31 = vadd.f32 %v2133_v54, %v1646_v20  ;;  %v2119_v44 = vmul.f32 0.0022675737, %v2111_v3  ;;  %v2110_v7 = vld [vmem:[#allocation2 + $0x10] sm:$0xff] }
 0x1fe   : > { %2106 = vst.msk [vmem:[#allocation2 + $0x30] sm:$0xff] %vm241_vm0, %v2097_v2  ;;  %v2691_v21 = vadd.f32 %v2132_v63, %v1645_v33  ;;  %v2118_v34 = vmul.f32 0.0022675737, %v2110_v7  ;;  %v1636_v54 = vmul.f32 0.0022675737, %v1628_v58 }
 0x1ff   : > { %v2700_v32 = vadd.f32 0.0009, %v2692_v31  ;;  %v2135_v46 = vsub.f32 %v2119_v44, %v3749_v36  ;;  %v1635_v33 = vmul.f32 0.0022675737, %v1627_v24  ;;  %v2682_v31 = vadd.f32 %v2131_v30, %v3828_v37 }
 0x200   : > { %v3284_v27 = vpop.f32.mrb[32].mxu1  ;;  %v2699_v13 = vadd.f32 0.0009, %v2691_v21  ;;  %v2134_v50 = vsub.f32 %v2118_v34, %v3757_v40  ;;  %v2113_v51 = vld [vmem:[#allocation2 + $0x28] sm:$0xff]  ;;  %v1652_v29 = vsub.f32 %v1636_v54, %v3828_v37 }
 0x201   : > { %2363 = vst.msk [vmem:[#allocation2 + $0x8] sm:$0xff] %vm241_vm0, %v3284_v27  ;;  %v3887_v35 = vmul.f32 %v2700_v32, %v3794_v0  ;;  %v2353_v28 = vpop.f32.mrb[33].mxu1  ;;  %v2694_v36 = vadd.f32 %v2135_v46, %v1648_v45  ;;  %v2121_v19 = vmul.f32 0.0022675737, %v2113_v51  ;;  %v2112_v20 = vld [vmem:[#allocation2 + $0x20] sm:$0xff]  ;;  %v1651_v34 = vsub.f32 %v1635_v33, %v3840_v48 }
 0x202   : > { %2362 = vst.msk [vmem:[#allocation2] sm:$0xff] %vm241_vm0, %v2353_v28  ;;  %v3892_v40 = vmul.f32 %v2699_v13, %v3802_v5  ;;  %v2693_v26 = vadd.f32 %v2134_v50, %v1647_v47  ;;  %v2120_v39 = vmul.f32 0.0022675737, %v2112_v20  ;;  %v2690_v28 = vadd.f32 0.0001, %v2682_v31 }
 0x203   : > { %3414 = vrcp.f32 %v3887_v35  ;;  %v2702_v4 = vadd.f32 0.0009, %v2694_v36  ;;  %v2137_v0 = vsub.f32 %v2121_v19, %v3787_v60 }
 0x204   : > { %3416 = vrcp.f32 %v3892_v40  ;;  %v3291_v56 = vpop.f32.mrb[34].mxu1  ;;  %v2701_v59 = vadd.f32 0.0009, %v2693_v26  ;;  %v2136_v14 = vsub.f32 %v2120_v39, %v3822_v22  ;;  %v2115_v63 = vld [vmem:[#allocation2 + $0x38] sm:$0xff]  ;;  %v2681_v22 = vadd.f32 %v2130_v10, %v3840_v48 }
 0x205   : > { %2440 = vst.msk [vmem:[#allocation2 + $0x18] sm:$0xff] %vm241_vm0, %v3291_v56  ;;  %v3900_v5 = vmul.f32 %v2702_v4, %v3811_v15  ;;  %v2430_v3 = vpop.f32.mrb[35].mxu1  ;;  %v2696_v58 = vadd.f32 %v2137_v0, %v1650_v12  ;;  %v2123_v2 = vmul.f32 0.0022675737, %v2115_v63  ;;  %v2114_v44 = vld [vmem:[#allocation2 + $0x30] sm:$0xff] }
 0x206   : > { %2439 = vst.msk [vmem:[#allocation2 + $0x10] sm:$0xff] %vm241_vm0, %v2430_v3  ;;  %v3905_v60 = vmul.f32 %v2701_v59, %v3816_v18  ;;  %v2695_v24 = vadd.f32 %v2136_v14, %v1649_v49  ;;  %v2122_v7 = vmul.f32 0.0022675737, %v2114_v44  ;;  %v3914_v18 = vmul.f32 %v3855_v53, %v3752_v38 }
 0x207   : > { %3418 = vrcp.f32 %v3900_v5  ;;  %v2704_v15 = vadd.f32 0.0009, %v2696_v58  ;;  %v2139_v21 = vsub.f32 %v2123_v2, %v2131_v30  ;;  %v3921_v48 = vadd.f32 0.0001, %v3874_v23 }
 0x208   : > { %v2596_v45 = vld [vmem:[#allocation2 + $0x8] sm:$0xff]  ;;  %3420 = vrcp.f32 %v3905_v60  ;;  %v3298_v32 = vpop.f32.mrb[36].mxu1  ;;  %v2703_v46 = vadd.f32 0.0009, %v2695_v24  ;;  %v2138_v47 = vsub.f32 %v2122_v7, %v2130_v10  ;;  %v2689_v23 = vadd.f32 0.0001, %v2681_v22 }
 0x209   : > { %v2604_v27 = vmul.f32 0.0022675737, %v2596_v45  ;;  %v2595_v13 = vld [vmem:[#allocation2] sm:$0xff]  ;;  %2517 = vst.msk [vmem:[#allocation2 + $0x28] sm:$0xff] %vm241_vm0, %v3298_v32  ;;  %v3918_v37 = vmul.f32 %v2704_v15, %v3858_v16  ;;  %v2507_v30 = vpop.f32.mrb[37].mxu1  ;;  %v2698_v50 = vadd.f32 %v2139_v21, %v1652_v29 }
 0x20a   : > { %v2603_v51 = vmul.f32 0.0022675737, %v2595_v13  ;;  %2516 = vst.msk [vmem:[#allocation2 + $0x20] sm:$0xff] %vm241_vm0, %v2507_v30  ;;  %v3924_v10 = vmul.f32 %v2703_v46, %v2687_v52  ;;  %v2697_v12 = vadd.f32 %v2138_v47, %v1651_v34  ;;  %v3932_v52 = vmul.f32 %v3782_v57, %v3855_v53 }
 0x20b   : > { %v2620_v38 = vsub.f32 %v2604_v27, %v3832_v41  ;;  %3422 = vrcp.f32 %v3918_v37  ;;  %v2706_v36 = vadd.f32 0.0009, %v2698_v50 }
 0x20c   : > { %v2619_v16 = vsub.f32 %v2603_v51, %v3836_v42  ;;  %v2598_v19 = vld [vmem:[#allocation2 + $0x18] sm:$0xff]  ;;  %3424 = vrcp.f32 %v3924_v10  ;;  %v3305_v20 = vpop.f32.mrb[38].mxu1  ;;  %v2705_v49 = vadd.f32 0.0009, %v2697_v12 }
 0x20d   : > { %v3415_v26 = vpop.eup %3414  ;;  %v2652_v39 = vmul.f32 2.0, %v2620_v38  ;;  %v2606_v54 = vmul.f32 0.0022675737, %v2598_v19  ;;  %v2597_v41 = vld [vmem:[#allocation2 + $0x10] sm:$0xff]  ;;  %2594 = vst.msk [vmem:[#allocation2 + $0x38] sm:$0xff] %vm241_vm0, %v3305_v20  ;;  %v3935_v4 = vmul.f32 %v2706_v36, %v2690_v28  ;;  %v2584_v0 = vpop.f32.mrb[39].mxu1 }
 0x20e   : > { %v3417_v42 = vpop.eup %3416  ;;  %v2724_v33 = vmul.f32 %v3415_v26, %v3887_v35  ;;  %v2651_v56 = vmul.f32 2.0, %v2619_v16  ;;  %v2605_v59 = vmul.f32 0.0022675737, %v2597_v41  ;;  %2593 = vst.msk [vmem:[#allocation2 + $0x30] sm:$0xff] %vm241_vm0, %v2584_v0  ;;  %v3939_v14 = vmul.f32 %v2705_v49, %v2689_v23 }
 0x20f   : > { %v2660_v63 = vadd.f32 0.0009, %v2652_v39  ;;  %v2723_v57 = vmul.f32 %v3417_v42, %v3892_v40  ;;  %v2622_v53 = vsub.f32 %v2606_v54, %v3844_v43  ;;  %3426 = vrcp.f32 %v3935_v4 }
 0x210   : > { %v2732_v3 = vsub.f32 2.0, %v2724_v33  ;;  %v2659_v58 = vadd.f32 0.0009, %v2651_v56  ;;  %v2621_v2 = vsub.f32 %v2605_v59, %v3848_v9  ;;  %v2600_v31 = vld [vmem:[#allocation2 + $0x28] sm:$0xff]  ;;  %3428 = vrcp.f32 %v3939_v14 }
 0x211   : > { %v3419_v35 = vpop.eup %3418  ;;  %v2668_v44 = vmul.f32 %v2660_v63, %v3789_v61  ;;  %v2731_v24 = vsub.f32 2.0, %v2723_v57  ;;  %v2654_v7 = vmul.f32 2.0, %v2622_v53  ;;  %v2608_v22 = vmul.f32 0.0022675737, %v2600_v31  ;;  %v2599_v29 = vld [vmem:[#allocation2 + $0x20] sm:$0xff] }
 0x212   : > { %v3421_v15 = vpop.eup %3420  ;;  %v2740_v40 = vmul.f32 %v3415_v26, %v2732_v3  ;;  %v2667_v43 = vmul.f32 %v2659_v58, %v3791_v62  ;;  %v2726_v21 = vmul.f32 %v3419_v35, %v3900_v5  ;;  %v2653_v34 = vmul.f32 2.0, %v2621_v2 }
 0x213   : > { %v2739_v45 = vmul.f32 %v3417_v42, %v2731_v24  ;;  %v2662_v32 = vadd.f32 0.0009, %v2654_v7  ;;  %v2725_v9 = vmul.f32 %v3421_v15, %v3905_v60  ;;  %v2624_v46 = vsub.f32 %v2608_v22, %v3851_v11 }
 0x214   : > { %v2748_v47 = vmul.f32 %v2740_v40, %v2668_v44  ;;  %v2734_v27 = vsub.f32 2.0, %v2726_v21  ;;  %v2661_v61 = vadd.f32 0.0009, %v2653_v34  ;;  %v2607_v13 = vmul.f32 0.0022675737, %v2599_v29  ;;  %v2602_v39 = vld [vmem:[#allocation2 + $0x38] sm:$0xff] }
 0x215   : > { %v3423_v30 = vpop.eup %3422  ;;  %v2747_v50 = vmul.f32 %v2739_v45, %v2667_v43  ;;  %v2670_v51 = vmul.f32 %v2662_v32, %v3796_v1  ;;  %v2733_v12 = vsub.f32 2.0, %v2725_v9  ;;  %v2656_v38 = vmul.f32 2.0, %v2624_v46  ;;  %v2601_v57 = vld [vmem:[#allocation2 + $0x30] sm:$0xff] }
 0x216   : > { %v3425_v62 = vpop.eup %3424  ;;  %v2756_v28 = vsub.f32 1.0, %v2748_v47  ;;  %v2742_v5 = vmul.f32 %v3419_v35, %v2734_v27  ;;  %v2669_v36 = vmul.f32 %v2661_v61, %v3804_v6  ;;  %v2728_v16 = vmul.f32 %v3423_v30, %v3918_v37 }
 0x217   : > { %v2755_v60 = vsub.f32 1.0, %v2747_v50  ;;  %v2741_v19 = vmul.f32 %v3421_v15, %v2733_v12  ;;  %v2664_v11 = vadd.f32 0.0009, %v2656_v38  ;;  %v2623_v20 = vsub.f32 %v2607_v13, %v3866_v55 }
 0x218   : > { %v2764_v23 = vmul.f32 0.5, %v2756_v28  ;;  %v2750_v49 = vmul.f32 %v2742_v5, %v2670_v51  ;;  %v2736_v26 = vsub.f32 2.0, %v2728_v16  ;;  %v2727_v1 = vmul.f32 %v3425_v62, %v3924_v10 }
 0x219   : > { %v3427_v54 = vpop.eup %3426  ;;  %v2763_v41 = vmul.f32 0.5, %v2755_v60  ;;  %v2749_v0 = vmul.f32 %v2741_v19, %v2669_v36  ;;  %v2672_v42 = vmul.f32 %v2664_v11, %v3813_v17  ;;  %v2655_v6 = vmul.f32 2.0, %v2623_v20 }
 0x21a   : > { %v3429_v33 = vpop.eup %3428  ;;  %v2772_v37 = vmax.f32 %v2764_v23, 0.0  ;;  %v2758_v56 = vsub.f32 1.0, %v2750_v49  ;;  %v2744_v59 = vmul.f32 %v3423_v30, %v2736_v26  ;;  %v2735_v63 = vsub.f32 2.0, %v2727_v1 }
 0x21b   : > { %v2771_v55 = vmax.f32 %v2763_v41, 0.0  ;;  %v2757_v10 = vsub.f32 1.0, %v2749_v0  ;;  %v2663_v53 = vadd.f32 0.0009, %v2655_v6  ;;  %v2610_v3 = vmul.f32 0.0022675737, %v2602_v39 }
 0x21c   : > { %v2780_v58 = vmin.f32 %v2772_v37, 1.0  ;;  %v2766_v17 = vmul.f32 0.5, %v2758_v56  ;;  %v2752_v2 = vmul.f32 %v2744_v59, %v2672_v42  ;;  %v2743_v31 = vmul.f32 %v3425_v62, %v2735_v63 }
 0x21d   : > { %v2779_v35 = vmin.f32 %v2771_v55, 1.0  ;;  %v2765_v44 = vmul.f32 0.5, %v2757_v10  ;;  %v2671_v24 = vmul.f32 %v2663_v53, %v3824_v25  ;;  %v2626_v7 = vsub.f32 %v2610_v3, %v3871_v8 }
 0x21e   : > { %2788 = vst.msk [vmem:[%s3961_s9 + $0x8] sm:$0xff] %vm241_vm0, %v2780_v58  ;;  %v2774_v22 = vmax.f32 %v2766_v17, 0.0  ;;  %v2760_v29 = vsub.f32 1.0, %v2752_v2  ;;  %v2730_v15 = vmul.f32 %v3427_v54, %v3935_v4  ;;  %v2609_v40 = vmul.f32 0.0022675737, %v2601_v57 }
 0x21f   : > { %2787 = vst.msk [vmem:[%s3961_s9] sm:$0xff] %vm241_vm0, %v2779_v35  ;;  %v2773_v43 = vmax.f32 %v2765_v44, 0.0  ;;  %v2751_v21 = vmul.f32 %v2743_v31, %v2671_v24  ;;  %v2658_v34 = vmul.f32 2.0, %v2626_v7  ;;  %v2729_v45 = vmul.f32 %v3429_v33, %v3939_v14 }
 0x220   : > { %v2782_v32 = vmin.f32 %v2774_v22, 1.0  ;;  %v2768_v25 = vmul.f32 0.5, %v2760_v29  ;;  %v2738_v9 = vsub.f32 2.0, %v2730_v15  ;;  %v2625_v8 = vsub.f32 %v2609_v40, %v3914_v18 }
 0x221   : > { %v2781_v46 = vmin.f32 %v2773_v43, 1.0  ;;  %v2759_v47 = vsub.f32 1.0, %v2751_v21  ;;  %v2666_v27 = vadd.f32 0.0009, %v2658_v34  ;;  %v2737_v61 = vsub.f32 2.0, %v2729_v45 }
 0x222   : > { %2790 = vst.msk [vmem:[%s3961_s9 + $0x18] sm:$0xff] %vm241_vm0, %v2782_v32  ;;  %v2776_v4 = vmax.f32 %v2768_v25, 0.0  ;;  %v2746_v13 = vmul.f32 %v3427_v54, %v2738_v9  ;;  %v2657_v30 = vmul.f32 2.0, %v2625_v8  ;;  %v2649_v51 = vadd.f32 0.0001, %v3932_v52 }
 0x223   : > { %2789 = vst.msk [vmem:[%s3961_s9 + $0x10] sm:$0xff] %vm241_vm0, %v2781_v46  ;;  %v2767_v50 = vmul.f32 0.5, %v2759_v47  ;;  %v2674_v14 = vmul.f32 %v2666_v27, %v3921_v48  ;;  %v2745_v38 = vmul.f32 %v3429_v33, %v2737_v61 }
 0x224   : > { %v2784_v12 = vmin.f32 %v2776_v4, 1.0  ;;  %v2665_v18 = vadd.f32 0.0009, %v2657_v30 }
 0x225   : > { %v2775_v62 = vmax.f32 %v2767_v50, 0.0  ;;  %v2754_v28 = vmul.f32 %v2746_v13, %v2674_v14 }
 0x226   : > { %2792 = vst.msk [vmem:[%s3961_s9 + $0x28] sm:$0xff] %vm241_vm0, %v2784_v12  ;;  %v2673_v5 = vmul.f32 %v2665_v18, %v2649_v51 }
 0x227   : > { %v2783_v36 = vmin.f32 %v2775_v62, 1.0  ;;  %v2762_v16 = vsub.f32 1.0, %v2754_v28 }
 0x228   : > { %v2753_v60 = vmul.f32 %v2745_v38, %v2673_v5 }
 0x229   : > { %2791 = vst.msk [vmem:[%s3961_s9 + $0x20] sm:$0xff] %vm241_vm0, %v2783_v36  ;;  %v2770_v19 = vmul.f32 0.5, %v2762_v16 }
 0x22a   : > { %v2761_v11 = vsub.f32 1.0, %v2753_v60 }
 0x22b   : > { %v2778_v48 = vmax.f32 %v2770_v19, 0.0 }
 0x22c   : > { %v2769_v20 = vmul.f32 0.5, %v2761_v11 }
 0x22d   : > { %v2786_v52 = vmin.f32 %v2778_v48, 1.0 }
 0x22e   : > { %v2777_v23 = vmax.f32 %v2769_v20, 0.0 }
 0x22f   : > { %2794 = vst.msk [vmem:[%s3961_s9 + $0x38] sm:$0xff] %vm241_vm0, %v2786_v52 }
 0x230   : > { %v2785_v49 = vmin.f32 %v2777_v23, 1.0 }
 0x232   : > { %2793 = vst.msk [vmem:[%s3961_s9 + $0x30] sm:$0xff] %vm241_vm0, %v2785_v49 }
 0x233 PF: > { %s14_s15 = sadd.s32 1, %s3436_s15  }
 0x234   : > { %p11_p4 = scmp.ge.s32.totalorder %s14_s15, 4  }
 0x236   :  { %13 = sbr.rel (!%p11_p4) target bundleno = 1 (0x1), region = 69 }

// kernel: tpu_custom_call.1
= control target key start
LH: loop header
LB: loop body
LE: loop exit
PB: predicated region body
PF: predicated region fallthrough
CT: control target
= control target key end

     0   :  { %s3463_s15 = smov 0   ;;  %s3989_s0 = inlined_call_operand.vmem [shape: f32[128,16], index: 0, kind: input, shape index: {}]   ;;  %s3990_s1 = inlined_call_operand.vmem [shape: f32[128,16], index: 1, kind: input, shape index: {}]   ;;  %s3991_s2 = inlined_call_operand.vmem [shape: f32[16,16], index: 2, kind: input, shape index: {}]   ;;  %s3992_s3 = inlined_call_operand.vmem [shape: f32[16,16], index: 3, kind: input, shape index: {}]   ;;  %s3993_s4 = inlined_call_operand.vmem [shape: f32[128,16], index: 4, kind: output, shape index: {}]  }
   0x1 LB: > { %s2863_s16 = sadd.s32 4294967295, %s3436_s15   ;;  %p2867_p0 = scmp.ge.s32.totalorder %s3436_s15, 1  ;;  %s3436_s15 = sphi %s3463_s15, %s14_s15  }
   0x2   : > { %p174_p1 = scmp.lt.s32.totalorder %s3436_s15, 3 }
   0x4   : > { %p175_p2 = pnand %p2867_p0, %p174_p1 }
   0x5   : > { %v239_v0 = vld [vmem:[%s3992_s3] sm:$0xff] (!%p175_p2)  ;;  %v240_v1 = vld [vmem:[%s3992_s3 + $0x8] sm:$0xff] (!%p175_p2)  ;;  %s2868_s21 = sshll.u32 (!%p175_p2), %s2863_s16, 3  ;;  %vm241_vm0 = vcmask (!%p175_p2), 130048  }
   0x6   : > { %178 = sbr.rel (%p175_p2) target bundleno = 563 (0x233), region = 36  ;;  %v3477_v2 = vpack.c.bf16 (!%p175_p2), %v240_v1, %v239_v0  ;;  %p206_p3 = scmp.lt.s32.totalorder (!%p175_p2), %s2868_s21, 15  ;;  %v3590_v43 = vld [vmem:[%s3991_s2] sm:$0xff] (!%p175_p2)  ;;  %v3597_v49 = vld [vmem:[%s3991_s2 + $0x8] sm:$0xff] (!%p175_p2) }
   0x7   : > { %3106 = vmatprep.mubr.msk.f32.mxu1 (!%p175_p2), %vm241_vm0, %v3590_v43 }
   0x8   : > { %3307 = vmatprep.subr.bf16.mxu0 (!%p175_p2), %v3477_v2 }
   0x9   : > { %3309 = vmatpush3.bf16.msra.mxu0 (!%p175_p2), %v3477_v2 }
   0xa   : > { %3327 = vmatprep.subr.bf16.mxu0 (!%p175_p2), %v3477_v2 }
   0xd   : > { %s3995_s21 = smov (!%p206_p3, %s2868_s21), 15 }
   0xe   : > { %s3481_s22 = sshll.u32 %s3995_s21, 3 }
   0xf   : > { %s209_s25 = scalar_lea.vmem %s3989_s0, %s3481_s22  ;;  %s215_s28 = scalar_lea.vmem %s3990_s1, %s3481_s22 }
  0x10   : > { %v3488_v3 = vld [vmem:[%s209_s25] sm:$0xff]  ;;  %v3490_v4 = vld [vmem:[%s209_s25 + $0x8] sm:$0xff]  ;;  %v3492_v5 = vld [vmem:[%s209_s25 + $0x10] sm:$0xff]  ;;  %s3961_s9 = scalar_lea.vmem %s3993_s4, %s3481_s22 }
  0x11   : > { %3090 = vmatprep.mubr.msk.f32.mxu0 %vm241_vm0, %v3488_v3  ;;  %v3501_v6 = vld [vmem:[%s209_s25 + $0x18] sm:$0xff]  ;;  %v3503_v7 = vld [vmem:[%s209_s25 + $0x20] sm:$0xff]  ;;  %v3510_v8 = vld [vmem:[%s209_s25 + $0x28] sm:$0xff]  ;;  %v1166_v18 = vmul.f32 %v3488_v3, %v3488_v3  ;;  %v1167_v20 = vmul.f32 %v3490_v4, %v3490_v4  ;;  %v1168_v21 = vmul.f32 %v3492_v5, %v3492_v5 }
  0x12   : > { %3091 = vmatmul.mubr.msk.f32.vlgmr.msra.gmra.mrb[0].mxu0 %vm241_vm0, %v3490_v4  ;;  %v3512_v9 = vld [vmem:[%s209_s25 + $0x30] sm:$0xff]  ;;  %v3522_v10 = vld [vmem:[%s209_s25 + $0x38] sm:$0xff]  ;;  %v231_v11 = vld [vmem:[%s215_s28] sm:$0xff]  ;;  %v1169_v22 = vmul.f32 %v3501_v6, %v3501_v6  ;;  %v1170_v23 = vmul.f32 %v3503_v7, %v3503_v7  ;;  %v1171_v24 = vmul.f32 %v3510_v8, %v3510_v8 }
  0x13   : > { %3329 = vmatpush3.bf16.msra.mxu0 %v3477_v2  ;;  %3093 = vmatprep.mubr.msk.f32.mxu0 %vm241_vm0, %v3492_v5  ;;  %v232_v12 = vld [vmem:[%s215_s28 + $0x8] sm:$0xff]  ;;  %v233_v13 = vld [vmem:[%s215_s28 + $0x10] sm:$0xff]  ;;  %v234_v14 = vld [vmem:[%s215_s28 + $0x18] sm:$0xff]  ;;  %v1172_v25 = vmul.f32 %v3512_v9, %v3512_v9  ;;  %v1173_v26 = vmul.f32 %v3522_v10, %v3522_v10  ;;  %v1653_v27 = vmul.f32 %v231_v11, %v231_v11 }
  0x14   : > { %3347 = vmatprep.subr.bf16.mxu0 %v3477_v2  ;;  %v235_v15 = vld [vmem:[%s215_s28 + $0x20] sm:$0xff]  ;;  %v236_v16 = vld [vmem:[%s215_s28 + $0x28] sm:$0xff]  ;;  %v237_v17 = vld [vmem:[%s215_s28 + $0x30] sm:$0xff]  ;;  %v1654_v28 = vmul.f32 %v232_v12, %v232_v12  ;;  %v1655_v29 = vmul.f32 %v233_v13, %v233_v13  ;;  %v1656_v30 = vmul.f32 %v234_v14, %v234_v14  ;;  %v2140_v35 = vmul.f32 %v231_v11, %v3488_v3 }
  0x15   : > { %v238_v19 = vld [vmem:[%s215_s28 + $0x38] sm:$0xff]  ;;  %v1657_v31 = vmul.f32 %v235_v15, %v235_v15  ;;  %v1658_v32 = vmul.f32 %v236_v16, %v236_v16  ;;  %v1659_v33 = vmul.f32 %v237_v17, %v237_v17  ;;  %v2141_v36 = vmul.f32 %v232_v12, %v3490_v4 }
  0x16   : > { %3094 = vmatmul.mubr.msk.f32.gmra.mrb[2].mxu0 %vm241_vm0, %v3501_v6  ;;  %v1660_v34 = vmul.f32 %v238_v19, %v238_v19  ;;  %v2142_v37 = vmul.f32 %v233_v13, %v3492_v5  ;;  %v2143_v38 = vmul.f32 %v234_v14, %v3501_v6  ;;  %v2144_v39 = vmul.f32 %v235_v15, %v3503_v7 }
  0x17   : > { %3096 = vmatprep.mubr.msk.f32.mxu0 %vm241_vm0, %v3503_v7  ;;  %v2145_v40 = vmul.f32 %v236_v16, %v3510_v8  ;;  %v2146_v41 = vmul.f32 %v237_v17, %v3512_v9  ;;  %v2147_v42 = vmul.f32 %v238_v19, %v3522_v10 }
  0x1a   : > { %3097 = vmatmul.mubr.msk.f32.gmra.mrb[4].mxu0 %vm241_vm0, %v3510_v8 }
  0x1b   : > { %3099 = vmatprep.mubr.msk.f32.mxu0 %vm241_vm0, %v3512_v9 }
  0x1e   : > { %3100 = vmatmul.mubr.msk.f32.gmra.mrb[6].mxu0 %vm241_vm0, %v3522_v10 }
  0x1f   : > { %3134 = vmatprep.mubr.msk.f32.mxu0 %vm241_vm0, %v231_v11 }
  0x22   : > { %3135 = vmatmul.mubr.msk.f32.vlgmr.msra.gmra.mrb[8].mxu0 %vm241_vm0, %v232_v12 }
  0x23   : > { %3349 = vmatpush3.bf16.msra.mxu0 %v3477_v2  ;;  %3137 = vmatprep.mubr.msk.f32.mxu0 %vm241_vm0, %v233_v13 }
  0x24   : > { %3367 = vmatprep.subr.bf16.mxu0 %v3477_v2 }
  0x26   : > { %3138 = vmatmul.mubr.msk.f32.gmra.mrb[10].mxu0 %vm241_vm0, %v234_v14 }
  0x27   : > { %3140 = vmatprep.mubr.msk.f32.mxu0 %vm241_vm0, %v235_v15 }
  0x2a   : > { %3141 = vmatmul.mubr.msk.f32.gmra.mrb[12].mxu0 %vm241_vm0, %v236_v16 }
  0x2b   : > { %3143 = vmatprep.mubr.msk.f32.mxu0 %vm241_vm0, %v237_v17 }
  0x2e   : > { %3144 = vmatmul.mubr.msk.f32.gmra.mrb[14].mxu0 %vm241_vm0, %v238_v19 }
  0x2f   : > { %3178 = vmatprep.mubr.msk.f32.mxu0 %vm241_vm0, %v1166_v18 }
  0x32   : > { %3179 = vmatmul.mubr.msk.f32.vlgmr.msra.gmra.mrb[16].mxu0 %vm241_vm0, %v1167_v20 }
  0x33   : > { %3369 = vmatpush3.bf16.msra.mxu0 %v3477_v2  ;;  %3181 = vmatprep.mubr.msk.f32.mxu0 %vm241_vm0, %v1168_v21 }
  0x34   : > { %3387 = vmatprep.subr.bf16.mxu0 %v3477_v2 }
  0x36   : > { %3182 = vmatmul.mubr.msk.f32.gmra.mrb[18].mxu0 %vm241_vm0, %v1169_v22 }
  0x37   : > { %3184 = vmatprep.mubr.msk.f32.mxu0 %vm241_vm0, %v1170_v23 }
  0x3a   : > { %3185 = vmatmul.mubr.msk.f32.gmra.mrb[20].mxu0 %vm241_vm0, %v1171_v24 }
  0x3b   : > { %3187 = vmatprep.mubr.msk.f32.mxu0 %vm241_vm0, %v1172_v25 }
  0x3e   : > { %3188 = vmatmul.mubr.msk.f32.gmra.mrb[22].mxu0 %vm241_vm0, %v1173_v26 }
  0x3f   : > { %3222 = vmatprep.mubr.msk.f32.mxu0 %vm241_vm0, %v1653_v27 }
  0x42   : > { %3223 = vmatmul.mubr.msk.f32.vlgmr.msra.gmra.mrb[24].mxu0 %vm241_vm0, %v1654_v28 }
  0x43   : > { %3389 = vmatpush3.bf16.msra.mxu0 %v3477_v2  ;;  %3225 = vmatprep.mubr.msk.f32.mxu0 %vm241_vm0, %v1655_v29 }
  0x46   : > { %3226 = vmatmul.mubr.msk.f32.gmra.mrb[26].mxu0 %vm241_vm0, %v1656_v30 }
  0x47   : > { %3228 = vmatprep.mubr.msk.f32.mxu0 %vm241_vm0, %v1657_v31 }
  0x4a   : > { %3229 = vmatmul.mubr.msk.f32.gmra.mrb[28].mxu0 %vm241_vm0, %v1658_v32 }
  0x4b   : > { %3231 = vmatprep.mubr.msk.f32.mxu0 %vm241_vm0, %v1659_v33 }
  0x4e   : > { %3232 = vmatmul.mubr.msk.f32.gmra.mrb[30].mxu0 %vm241_vm0, %v1660_v34 }
  0x4f   : > { %3266 = vmatprep.mubr.msk.f32.mxu0 %vm241_vm0, %v2140_v35 }
  0x52   : > { %3267 = vmatmul.mubr.msk.f32.vlgmr.msra.gmra.mrb[32].mxu0 %vm241_vm0, %v2141_v36 }
  0x53   : > { %3269 = vmatprep.mubr.msk.f32.mxu0 %vm241_vm0, %v2142_v37 }
  0x56   : > { %3270 = vmatmul.mubr.msk.f32.gmra.mrb[34].mxu0 %vm241_vm0, %v2143_v38 }
  0x57   : > { %3272 = vmatprep.mubr.msk.f32.mxu0 %vm241_vm0, %v2144_v39 }
  0x5a   : > { %3273 = vmatmul.mubr.msk.f32.gmra.mrb[36].mxu0 %vm241_vm0, %v2145_v40 }
  0x5b   : > { %3275 = vmatprep.mubr.msk.f32.mxu0 %vm241_vm0, %v2146_v41 }
  0x5e   : > { %3276 = vmatmul.mubr.msk.f32.gmra.mrb[38].mxu0 %vm241_vm0, %v2147_v42 }
  0xe5   : > { %v3092_v44 = vpop.f32.mrb[0].mxu0 }
  0xe6   : > { %v332_v45 = vpop.f32.mrb[1].mxu0 }
  0xe7   : > { %v3310_v46 = vpack.c.bf16 %v3092_v44, %v332_v45 }
  0xe9   : > { %v3095_v47 = vpop.f32.mrb[2].mxu0  ;;  %3311 = vmatprep.subr.bf16.mxu1 %v3310_v46 }
  0xea   : > { %v342_v48 = vpop.f32.mrb[3].mxu0  ;;  %3313 = vmatpush3.bf16.msra.mxu1 %v3310_v46 }
  0xeb   : > { %v3314_v50 = vpack.c.bf16 %v3095_v47, %v342_v48 }
  0xed   : > { %v3098_v51 = vpop.f32.mrb[4].mxu0  ;;  %3107 = vmatmul.mubr.msk.f32.vlgmr.msra.gmra.mrb[0].mxu1 %vm241_vm0, %v3597_v49  ;;  %3315 = vmatprep.subr.bf16.mxu1 %v3314_v50 }
  0xee   : > { %v352_v52 = vpop.f32.mrb[5].mxu0  ;;  %3317 = vmatpush3.bf16.msra.mxu1 %v3314_v50  ;;  %3113 = vmatprep.mubr.msk.f32.mxu1 %vm241_vm0, %v3590_v43 }
  0xef   : > { %v3318_v53 = vpack.c.bf16 %v3098_v51, %v352_v52 }
  0xf1   : > { %v3101_v54 = vpop.f32.mrb[6].mxu0  ;;  %3114 = vmatmul.mubr.msk.f32.vlgmr.msra.gmra.mrb[2].mxu1 %vm241_vm0, %v3597_v49  ;;  %3319 = vmatprep.subr.bf16.mxu1 %v3318_v53 }
  0xf2   : > { %v362_v55 = vpop.f32.mrb[7].mxu0  ;;  %3321 = vmatpush3.bf16.msra.mxu1 %v3318_v53  ;;  %3120 = vmatprep.mubr.msk.f32.mxu1 %vm241_vm0, %v3590_v43 }
  0xf3   : > { %v3322_v56 = vpack.c.bf16 %v3101_v54, %v362_v55 }
  0xf5   : > { %3121 = vmatmul.mubr.msk.f32.vlgmr.msra.gmra.mrb[4].mxu1 %vm241_vm0, %v3597_v49  ;;  %3323 = vmatprep.subr.bf16.mxu1 %v3322_v56  ;;  %v3136_v57 = vpop.f32.mrb[8].mxu0 }
  0xf6   : > { %3325 = vmatpush3.bf16.msra.mxu1 %v3322_v56  ;;  %v795_v58 = vpop.f32.mrb[9].mxu0  ;;  %3127 = vmatprep.mubr.msk.f32.mxu1 %vm241_vm0, %v3590_v43 }
  0xf7   : > { %v3330_v59 = vpack.c.bf16 %v3136_v57, %v795_v58 }
  0xf9   : > { %3128 = vmatmul.mubr.msk.f32.vlgmr.msra.gmra.mrb[6].mxu1 %vm241_vm0, %v3597_v49  ;;  %v3139_v60 = vpop.f32.mrb[10].mxu0  ;;  %3331 = vmatprep.subr.bf16.mxu1 %v3330_v59 }
  0xfa   : > { %v805_v61 = vpop.f32.mrb[11].mxu0  ;;  %3333 = vmatpush3.bf16.msra.mxu1 %v3330_v59  ;;  %3150 = vmatprep.mubr.msk.f32.mxu1 %vm241_vm0, %v3590_v43 }
  0xfb   : > { %v3334_v62 = vpack.c.bf16 %v3139_v60, %v805_v61 }
  0xfd   : > { %v3142_v63 = vpop.f32.mrb[12].mxu0  ;;  %3151 = vmatmul.mubr.msk.f32.vlgmr.msra.gmra.mrb[8].mxu1 %vm241_vm0, %v3597_v49  ;;  %3335 = vmatprep.subr.bf16.mxu1 %v3334_v62 }
  0xfe   : > { %v815_v0 = vpop.f32.mrb[13].mxu0  ;;  %3337 = vmatpush3.bf16.msra.mxu1 %v3334_v62  ;;  %3157 = vmatprep.mubr.msk.f32.mxu1 %vm241_vm0, %v3590_v43 }
  0xff   : > { %v3338_v1 = vpack.c.bf16 %v3142_v63, %v815_v0 }
 0x101   : > { %v3145_v2 = vpop.f32.mrb[14].mxu0  ;;  %3158 = vmatmul.mubr.msk.f32.vlgmr.msra.gmra.mrb[10].mxu1 %vm241_vm0, %v3597_v49  ;;  %3339 = vmatprep.subr.bf16.mxu1 %v3338_v1 }
 0x102   : > { %v825_v3 = vpop.f32.mrb[15].mxu0  ;;  %3341 = vmatpush3.bf16.msra.mxu1 %v3338_v1  ;;  %3164 = vmatprep.mubr.msk.f32.mxu1 %vm241_vm0, %v3590_v43 }
 0x103   : > { %v3342_v4 = vpack.c.bf16 %v3145_v2, %v825_v3 }
 0x105   : > { %3165 = vmatmul.mubr.msk.f32.vlgmr.msra.gmra.mrb[12].mxu1 %vm241_vm0, %v3597_v49  ;;  %3343 = vmatprep.subr.bf16.mxu1 %v3342_v4  ;;  %v3180_v5 = vpop.f32.mrb[16].mxu0 }
 0x106   : > { %3345 = vmatpush3.bf16.msra.mxu1 %v3342_v4  ;;  %v1266_v6 = vpop.f32.mrb[17].mxu0  ;;  %3171 = vmatprep.mubr.msk.f32.mxu1 %vm241_vm0, %v3590_v43 }
 0x107   : > { %v3350_v7 = vpack.c.bf16 %v3180_v5, %v1266_v6 }
 0x109   : > { %3172 = vmatmul.mubr.msk.f32.vlgmr.msra.gmra.mrb[14].mxu1 %vm241_vm0, %v3597_v49  ;;  %v3183_v8 = vpop.f32.mrb[18].mxu0  ;;  %3351 = vmatprep.subr.bf16.mxu1 %v3350_v7 }
 0x10a   : > { %v1276_v9 = vpop.f32.mrb[19].mxu0  ;;  %3353 = vmatpush3.bf16.msra.mxu1 %v3350_v7  ;;  %3194 = vmatprep.mubr.msk.f32.mxu1 %vm241_vm0, %v3590_v43 }
 0x10b   : > { %v3354_v10 = vpack.c.bf16 %v3183_v8, %v1276_v9 }
 0x10d   : > { %v3186_v11 = vpop.f32.mrb[20].mxu0  ;;  %3195 = vmatmul.mubr.msk.f32.vlgmr.msra.gmra.mrb[16].mxu1 %vm241_vm0, %v3597_v49  ;;  %3355 = vmatprep.subr.bf16.mxu1 %v3354_v10 }
 0x10e   : > { %v1286_v12 = vpop.f32.mrb[21].mxu0  ;;  %3357 = vmatpush3.bf16.msra.mxu1 %v3354_v10  ;;  %3201 = vmatprep.mubr.msk.f32.mxu1 %vm241_vm0, %v3590_v43 }
 0x10f   : > { %v3358_v13 = vpack.c.bf16 %v3186_v11, %v1286_v12 }
 0x111   : > { %v3189_v14 = vpop.f32.mrb[22].mxu0  ;;  %3202 = vmatmul.mubr.msk.f32.vlgmr.msra.gmra.mrb[18].mxu1 %vm241_vm0, %v3597_v49  ;;  %3359 = vmatprep.subr.bf16.mxu1 %v3358_v13 }
 0x112   : > { %v1296_v15 = vpop.f32.mrb[23].mxu0  ;;  %3361 = vmatpush3.bf16.msra.mxu1 %v3358_v13  ;;  %3208 = vmatprep.mubr.msk.f32.mxu1 %vm241_vm0, %v3590_v43 }
 0x113   : > { %v3362_v16 = vpack.c.bf16 %v3189_v14, %v1296_v15 }
 0x115   : > { %3209 = vmatmul.mubr.msk.f32.vlgmr.msra.gmra.mrb[20].mxu1 %vm241_vm0, %v3597_v49  ;;  %3363 = vmatprep.subr.bf16.mxu1 %v3362_v16  ;;  %v3224_v17 = vpop.f32.mrb[24].mxu0 }
 0x116   : > { %3365 = vmatpush3.bf16.msra.mxu1 %v3362_v16  ;;  %v1753_v18 = vpop.f32.mrb[25].mxu0  ;;  %3215 = vmatprep.mubr.msk.f32.mxu1 %vm241_vm0, %v3590_v43 }
 0x117   : > { %v3370_v19 = vpack.c.bf16 %v3224_v17, %v1753_v18 }
 0x119   : > { %3216 = vmatmul.mubr.msk.f32.vlgmr.msra.gmra.mrb[22].mxu1 %vm241_vm0, %v3597_v49  ;;  %v3227_v20 = vpop.f32.mrb[26].mxu0  ;;  %3371 = vmatprep.subr.bf16.mxu1 %v3370_v19 }
 0x11a   : > { %v1763_v21 = vpop.f32.mrb[27].mxu0  ;;  %3373 = vmatpush3.bf16.msra.mxu1 %v3370_v19  ;;  %3238 = vmatprep.mubr.msk.f32.mxu1 %vm241_vm0, %v3590_v43 }
 0x11b   : > { %v3374_v22 = vpack.c.bf16 %v3227_v20, %v1763_v21 }
 0x11d   : > { %v3230_v23 = vpop.f32.mrb[28].mxu0  ;;  %3239 = vmatmul.mubr.msk.f32.vlgmr.msra.gmra.mrb[24].mxu1 %vm241_vm0, %v3597_v49  ;;  %3375 = vmatprep.subr.bf16.mxu1 %v3374_v22 }
 0x11e   : > { %v1773_v24 = vpop.f32.mrb[29].mxu0  ;;  %3377 = vmatpush3.bf16.msra.mxu1 %v3374_v22  ;;  %3245 = vmatprep.mubr.msk.f32.mxu1 %vm241_vm0, %v3590_v43 }
 0x11f   : > { %v3378_v25 = vpack.c.bf16 %v3230_v23, %v1773_v24 }
 0x121   : > { %v3233_v26 = vpop.f32.mrb[30].mxu0  ;;  %3246 = vmatmul.mubr.msk.f32.vlgmr.msra.gmra.mrb[26].mxu1 %vm241_vm0, %v3597_v49  ;;  %3379 = vmatprep.subr.bf16.mxu1 %v3378_v25 }
 0x122   : > { %v1783_v27 = vpop.f32.mrb[31].mxu0  ;;  %3381 = vmatpush3.bf16.msra.mxu1 %v3378_v25  ;;  %3252 = vmatprep.mubr.msk.f32.mxu1 %vm241_vm0, %v3590_v43 }
 0x123   : > { %v3382_v28 = vpack.c.bf16 %v3233_v26, %v1783_v27 }
 0x125   : > { %3253 = vmatmul.mubr.msk.f32.vlgmr.msra.gmra.mrb[28].mxu1 %vm241_vm0, %v3597_v49  ;;  %3383 = vmatprep.subr.bf16.mxu1 %v3382_v28  ;;  %v3268_v29 = vpop.f32.mrb[32].mxu0 }
 0x126   : > { %3385 = vmatpush3.bf16.msra.mxu1 %v3382_v28  ;;  %v2240_v30 = vpop.f32.mrb[33].mxu0  ;;  %3259 = vmatprep.mubr.msk.f32.mxu1 %vm241_vm0, %v3590_v43 }
 0x127   : > { %v3390_v31 = vpack.c.bf16 %v3268_v29, %v2240_v30 }
 0x129   : > { %3260 = vmatmul.mubr.msk.f32.vlgmr.msra.gmra.mrb[30].mxu1 %vm241_vm0, %v3597_v49  ;;  %v3271_v32 = vpop.f32.mrb[34].mxu0  ;;  %3391 = vmatprep.subr.bf16.mxu1 %v3390_v31 }
 0x12a   : > { %v2250_v33 = vpop.f32.mrb[35].mxu0  ;;  %3393 = vmatpush3.bf16.msra.mxu1 %v3390_v31  ;;  %3282 = vmatprep.mubr.msk.f32.mxu1 %vm241_vm0, %v3590_v43 }
 0x12b   : > { %v3394_v34 = vpack.c.bf16 %v3271_v32, %v2250_v33 }
 0x12d   : > { %v3274_v35 = vpop.f32.mrb[36].mxu0  ;;  %3283 = vmatmul.mubr.msk.f32.vlgmr.msra.gmra.mrb[32].mxu1 %vm241_vm0, %v3597_v49  ;;  %3395 = vmatprep.subr.bf16.mxu1 %v3394_v34 }
 0x12e   : > { %v2260_v36 = vpop.f32.mrb[37].mxu0  ;;  %3397 = vmatpush3.bf16.msra.mxu1 %v3394_v34  ;;  %3289 = vmatprep.mubr.msk.f32.mxu1 %vm241_vm0, %v3590_v43 }
 0x12f   : > { %v3398_v37 = vpack.c.bf16 %v3274_v35, %v2260_v36 }
 0x131   : > { %v3277_v38 = vpop.f32.mrb[38].mxu0  ;;  %3290 = vmatmul.mubr.msk.f32.vlgmr.msra.gmra.mrb[34].mxu1 %vm241_vm0, %v3597_v49  ;;  %3399 = vmatprep.subr.bf16.mxu1 %v3398_v37 }
 0x132   : > { %v2270_v39 = vpop.f32.mrb[39].mxu0  ;;  %3401 = vmatpush3.bf16.msra.mxu1 %v3398_v37  ;;  %3296 = vmatprep.mubr.msk.f32.mxu1 %vm241_vm0, %v3590_v43 }
 0x133   : > { %v3402_v40 = vpack.c.bf16 %v3277_v38, %v2270_v39 }
 0x135   : > { %3297 = vmatmul.mubr.msk.f32.vlgmr.msra.gmra.mrb[36].mxu1 %vm241_vm0, %v3597_v49  ;;  %3403 = vmatprep.subr.bf16.mxu1 %v3402_v40 }
 0x136   : > { %3405 = vmatpush3.bf16.msra.mxu1 %v3402_v40  ;;  %3303 = vmatprep.mubr.msk.f32.mxu1 %vm241_vm0, %v3590_v43 }
 0x139   : > { %3304 = vmatmul.mubr.msk.f32.vlgmr.msra.gmra.mrb[38].mxu1 %vm241_vm0, %v3597_v49 }
 0x1c0   : > { %v3108_v41 = vpop.f32.mrb[0].mxu1 }
 0x1c1   : > { %455 = vst.msk [vmem:[#allocation2 + $0x8] sm:$0xff] %vm241_vm0, %v3108_v41  ;;  %v445_v42 = vpop.f32.mrb[1].mxu1 }
 0x1c2   : > { %454 = vst.msk [vmem:[#allocation2] sm:$0xff] %vm241_vm0, %v445_v42 }
 0x1c4   : > { %v3115_v44 = vpop.f32.mrb[2].mxu1 }
 0x1c5   : > { %532 = vst.msk [vmem:[#allocation2 + $0x18] sm:$0xff] %vm241_vm0, %v3115_v44  ;;  %v522_v45 = vpop.f32.mrb[3].mxu1 }
 0x1c6   : > { %531 = vst.msk [vmem:[#allocation2 + $0x10] sm:$0xff] %vm241_vm0, %v522_v45 }
 0x1c8   : > { %v3122_v46 = vpop.f32.mrb[4].mxu1  ;;  %v688_v49 = vld [vmem:[#allocation2 + $0x8] sm:$0xff] }
 0x1c9   : > { %609 = vst.msk [vmem:[#allocation2 + $0x28] sm:$0xff] %vm241_vm0, %v3122_v46  ;;  %v599_v47 = vpop.f32.mrb[5].mxu1  ;;  %v687_v51 = vld [vmem:[#allocation2] sm:$0xff]  ;;  %v3697_v9 = vmul.f32 0.0022675737, %v688_v49 }
 0x1ca   : > { %608 = vst.msk [vmem:[#allocation2 + $0x20] sm:$0xff] %vm241_vm0, %v599_v47  ;;  %v3699_v10 = vmul.f32 0.0022675737, %v687_v51 }
 0x1cb   : > { %v2628_v21 = vmul.f32 2.0, %v3697_v9  ;;  %v3719_v23 = vmul.f32 %v3697_v9, %v3697_v9 }
 0x1cc   : > { %v3129_v43 = vpop.f32.mrb[6].mxu1  ;;  %v690_v53 = vld [vmem:[#allocation2 + $0x18] sm:$0xff]  ;;  %v2627_v22 = vmul.f32 2.0, %v3699_v10  ;;  %v3730_v29 = vmul.f32 %v3699_v10, %v3699_v10 }
 0x1cd   : > { %686 = vst.msk [vmem:[#allocation2 + $0x38] sm:$0xff] %vm241_vm0, %v3129_v43  ;;  %v676_v48 = vpop.f32.mrb[7].mxu1  ;;  %v689_v55 = vld [vmem:[#allocation2 + $0x10] sm:$0xff]  ;;  %v3703_v12 = vmul.f32 0.0022675737, %v690_v53 }
 0x1ce   : > { %685 = vst.msk [vmem:[#allocation2 + $0x30] sm:$0xff] %vm241_vm0, %v676_v48  ;;  %v3710_v19 = vmul.f32 0.0022675737, %v689_v55 }
 0x1cf   : > { %v2630_v25 = vmul.f32 2.0, %v3703_v12  ;;  %v3745_v35 = vmul.f32 %v3703_v12, %v3703_v12 }
 0x1d0   : > { %v3152_v50 = vpop.f32.mrb[8].mxu1  ;;  %v692_v57 = vld [vmem:[#allocation2 + $0x28] sm:$0xff]  ;;  %v2629_v37 = vmul.f32 2.0, %v3710_v19  ;;  %v3769_v49 = vmul.f32 %v3710_v19, %v3710_v19 }
 0x1d1   : > { %918 = vst.msk [vmem:[#allocation2 + $0x8] sm:$0xff] %vm241_vm0, %v3152_v50  ;;  %v908_v52 = vpop.f32.mrb[9].mxu1  ;;  %v691_v59 = vld [vmem:[#allocation2 + $0x20] sm:$0xff]  ;;  %v3726_v26 = vmul.f32 0.0022675737, %v692_v57 }
 0x1d2   : > { %917 = vst.msk [vmem:[#allocation2] sm:$0xff] %vm241_vm0, %v908_v52  ;;  %v3736_v31 = vmul.f32 0.0022675737, %v691_v59 }
 0x1d3   : > { %v2632_v46 = vmul.f32 2.0, %v3726_v26 }
 0x1d4   : > { %v3159_v54 = vpop.f32.mrb[10].mxu1  ;;  %v694_v61 = vld [vmem:[#allocation2 + $0x38] sm:$0xff]  ;;  %v2631_v51 = vmul.f32 2.0, %v3736_v31 }
 0x1d5   : > { %995 = vst.msk [vmem:[#allocation2 + $0x18] sm:$0xff] %vm241_vm0, %v3159_v54  ;;  %v985_v56 = vpop.f32.mrb[11].mxu1  ;;  %v693_v63 = vld [vmem:[#allocation2 + $0x30] sm:$0xff]  ;;  %v3738_v32 = vmul.f32 0.0022675737, %v694_v61 }
 0x1d6   : > { %994 = vst.msk [vmem:[#allocation2 + $0x10] sm:$0xff] %vm241_vm0, %v985_v56  ;;  %v3752_v38 = vmul.f32 0.0022675737, %v693_v63 }
 0x1d7   : > { %v3775_v52 = vmul.f32 2.0, %v3738_v32 }
 0x1d8   : > { %v3166_v58 = vpop.f32.mrb[12].mxu1  ;;  %v1151_v1 = vld [vmem:[#allocation2 + $0x8] sm:$0xff]  ;;  %v3782_v57 = vmul.f32 2.0, %v3752_v38 }
 0x1d9   : > { %1072 = vst.msk [vmem:[#allocation2 + $0x28] sm:$0xff] %vm241_vm0, %v3166_v58  ;;  %v1062_v60 = vpop.f32.mrb[13].mxu1  ;;  %v1150_v3 = vld [vmem:[#allocation2] sm:$0xff]  ;;  %v3701_v11 = vmul.f32 0.0022675737, %v1151_v1 }
 0x1da   : > { %1071 = vst.msk [vmem:[#allocation2 + $0x20] sm:$0xff] %vm241_vm0, %v1062_v60  ;;  %v3705_v13 = vmul.f32 0.0022675737, %v1150_v3 }
 0x1db   : > { %v3723_v24 = vmul.f32 %v3701_v11, %v3701_v11  ;;  %v2636_v41 = vmul.f32 %v2628_v21, %v3701_v11 }
 0x1dc   : > { %v3173_v62 = vpop.f32.mrb[14].mxu1  ;;  %v1153_v5 = vld [vmem:[#allocation2 + $0x18] sm:$0xff]  ;;  %v3734_v30 = vmul.f32 %v3705_v13, %v3705_v13  ;;  %v2635_v42 = vmul.f32 %v2627_v22, %v3705_v13 }
 0x1dd   : > { %1149 = vst.msk [vmem:[#allocation2 + $0x38] sm:$0xff] %vm241_vm0, %v3173_v62  ;;  %v1139_v0 = vpop.f32.mrb[15].mxu1  ;;  %v1152_v7 = vld [vmem:[#allocation2 + $0x10] sm:$0xff]  ;;  %v3707_v16 = vmul.f32 0.0022675737, %v1153_v5  ;;  %v2676_v45 = vadd.f32 %v3723_v24, %v3719_v23 }
 0x1de   : > { %1148 = vst.msk [vmem:[#allocation2 + $0x30] sm:$0xff] %vm241_vm0, %v1139_v0  ;;  %v3712_v20 = vmul.f32 0.0022675737, %v1152_v7  ;;  %v2675_v50 = vadd.f32 %v3734_v30, %v3730_v29  ;;  %v3789_v61 = vadd.f32 0.0001, %v2636_v41  ;;  %v3832_v41 = vmul.f32 %v3701_v11, %v3697_v9 }
 0x1df   : > { %v3749_v36 = vmul.f32 %v3707_v16, %v3707_v16  ;;  %v2638_v47 = vmul.f32 %v2630_v25, %v3707_v16  ;;  %v3791_v62 = vadd.f32 0.0001, %v2635_v42  ;;  %v3794_v0 = vadd.f32 0.0001, %v2676_v45 }
 0x1e0   : > { %v3196_v2 = vpop.f32.mrb[16].mxu1  ;;  %v1155_v14 = vld [vmem:[#allocation2 + $0x28] sm:$0xff]  ;;  %v3757_v40 = vmul.f32 %v3712_v20, %v3712_v20  ;;  %v2637_v53 = vmul.f32 %v2629_v37, %v3712_v20  ;;  %v3802_v5 = vadd.f32 0.0001, %v2675_v50  ;;  %v3828_v37 = vmul.f32 %v3738_v32, %v3738_v32 }
 0x1e1   : > { %1389 = vst.msk [vmem:[#allocation2 + $0x8] sm:$0xff] %vm241_vm0, %v3196_v2  ;;  %v1379_v4 = vpop.f32.mrb[17].mxu1  ;;  %v1154_v17 = vld [vmem:[#allocation2 + $0x20] sm:$0xff]  ;;  %v1163_v39 = vmul.f32 0.0022675737, %v1155_v14  ;;  %v2678_v56 = vadd.f32 %v3749_v36, %v3745_v35  ;;  %v3809_v14 = vmul.f32 %v3736_v31, %v3736_v31  ;;  %v3836_v42 = vmul.f32 %v3705_v13, %v3699_v10 }
 0x1e2   : > { %1388 = vst.msk [vmem:[#allocation2] sm:$0xff] %vm241_vm0, %v1379_v4  ;;  %v3761_v44 = vmul.f32 0.0022675737, %v1154_v17  ;;  %v2677_v59 = vadd.f32 %v3757_v40, %v3769_v49  ;;  %v3796_v1 = vadd.f32 0.0001, %v2638_v47  ;;  %v3800_v4 = vmul.f32 %v3726_v26, %v3726_v26 }
 0x1e3   : > { %v2640_v58 = vmul.f32 %v2632_v46, %v1163_v39  ;;  %v3787_v60 = vmul.f32 %v1163_v39, %v1163_v39  ;;  %v3848_v9 = vmul.f32 %v3712_v20, %v3710_v19  ;;  %v3851_v11 = vmul.f32 %v1163_v39, %v3726_v26 }
 0x1e4   : > { %v3203_v6 = vpop.f32.mrb[18].mxu1  ;;  %v1157_v27 = vld [vmem:[#allocation2 + $0x38] sm:$0xff]  ;;  %v2639_v63 = vmul.f32 %v2631_v51, %v3761_v44  ;;  %v3822_v22 = vmul.f32 %v3761_v44, %v3761_v44 }
 0x1e5   : > { %1466 = vst.msk [vmem:[#allocation2 + $0x18] sm:$0xff] %vm241_vm0, %v3203_v6  ;;  %v1456_v8 = vpop.f32.mrb[19].mxu1  ;;  %v3741_v33 = vld [vmem:[#allocation2 + $0x30] sm:$0xff]  ;;  %v3804_v6 = vadd.f32 0.0001, %v2637_v53  ;;  %v2680_v21 = vadd.f32 %v3787_v60, %v3800_v4 }
 0x1e6   : > { %1465 = vst.msk [vmem:[#allocation2 + $0x10] sm:$0xff] %vm241_vm0, %v1456_v8  ;;  %v3813_v17 = vadd.f32 0.0001, %v2640_v58  ;;  %v3824_v25 = vadd.f32 0.0001, %v2639_v63  ;;  %v2679_v19 = vadd.f32 %v3822_v22, %v3809_v14 }
 0x1e7   : > { %v3855_v53 = vmul.f32 0.0022675737, %v3741_v33 }
 0x1e8   : > { %v3210_v15 = vpop.f32.mrb[20].mxu1  ;;  %v1622_v43 = vld [vmem:[#allocation2 + $0x8] sm:$0xff] }
 0x1e9   : > { %1543 = vst.msk [vmem:[#allocation2 + $0x28] sm:$0xff] %vm241_vm0, %v3210_v15  ;;  %v1533_v18 = vpop.f32.mrb[21].mxu1  ;;  %v1621_v54 = vld [vmem:[#allocation2] sm:$0xff]  ;;  %v3811_v15 = vadd.f32 0.0001, %v2678_v56 }
 0x1ea   : > { %1542 = vst.msk [vmem:[#allocation2 + $0x20] sm:$0xff] %vm241_vm0, %v1533_v18  ;;  %v3816_v18 = vadd.f32 0.0001, %v2677_v59  ;;  %v1629_v45 = vmul.f32 0.0022675737, %v1621_v54 }
 0x1ec   : > { %v3217_v28 = vpop.f32.mrb[22].mxu1  ;;  %v1624_v2 = vld [vmem:[#allocation2 + $0x18] sm:$0xff]  ;;  %v1645_v33 = vsub.f32 %v1629_v45, %v3730_v29 }
 0x1ed   : > { %1620 = vst.msk [vmem:[#allocation2 + $0x38] sm:$0xff] %vm241_vm0, %v3217_v28  ;;  %v1610_v34 = vpop.f32.mrb[23].mxu1  ;;  %v1623_v7 = vld [vmem:[#allocation2 + $0x10] sm:$0xff]  ;;  %v1165_v28 = vmul.f32 0.0022675737, %v1157_v27 }
 0x1ee   : > { %1619 = vst.msk [vmem:[#allocation2 + $0x30] sm:$0xff] %vm241_vm0, %v1610_v34  ;;  %v1630_v34 = vmul.f32 0.0022675737, %v1622_v43  ;;  %v3844_v43 = vmul.f32 %v3707_v16, %v3703_v12  ;;  %v3858_v16 = vadd.f32 0.0001, %v2680_v21 }
 0x1ef   : > { %v1632_v26 = vmul.f32 0.0022675737, %v1624_v2  ;;  %v1631_v39 = vmul.f32 0.0022675737, %v1623_v7 }
 0x1f0   : > { %v3240_v48 = vpop.f32.mrb[24].mxu1  ;;  %v1626_v46 = vld [vmem:[#allocation2 + $0x28] sm:$0xff]  ;;  %v1646_v20 = vsub.f32 %v1630_v34, %v3719_v23  ;;  %v3874_v23 = vmul.f32 %v3775_v52, %v1165_v28  ;;  %v2687_v52 = vadd.f32 0.0001, %v2679_v19 }
 0x1f1   : > { %1876 = vst.msk [vmem:[#allocation2 + $0x8] sm:$0xff] %vm241_vm0, %v3240_v48  ;;  %v1866_v55 = vpop.f32.mrb[25].mxu1  ;;  %v3840_v48 = vmul.f32 %v3752_v38, %v3752_v38  ;;  %v1625_v10 = vld [vmem:[#allocation2 + $0x20] sm:$0xff]  ;;  %v1634_v56 = vmul.f32 0.0022675737, %v1626_v46  ;;  %v1648_v45 = vsub.f32 %v1632_v26, %v3745_v35 }
 0x1f2   : > { %1875 = vst.msk [vmem:[#allocation2] sm:$0xff] %vm241_vm0, %v1866_v55  ;;  %v3866_v55 = vmul.f32 %v3761_v44, %v3736_v31  ;;  %v1633_v29 = vmul.f32 0.0022675737, %v1625_v10  ;;  %v2130_v10 = vmul.f32 %v3855_v53, %v3855_v53 }
 0x1f4   : > { %v3247_v3 = vpop.f32.mrb[26].mxu1  ;;  %v1628_v58 = vld [vmem:[#allocation2 + $0x38] sm:$0xff] }
 0x1f5   : > { %1953 = vst.msk [vmem:[#allocation2 + $0x18] sm:$0xff] %vm241_vm0, %v3247_v3  ;;  %v1943_v8 = vpop.f32.mrb[27].mxu1 }
 0x1f6   : > { %1952 = vst.msk [vmem:[#allocation2 + $0x10] sm:$0xff] %vm241_vm0, %v1943_v8  ;;  %v3871_v8 = vmul.f32 %v1165_v28, %v3738_v32 }
 0x1f8   : > { %v3254_v47 = vpop.f32.mrb[28].mxu1  ;;  %v2109_v27 = vld [vmem:[#allocation2 + $0x8] sm:$0xff] }
 0x1f9   : > { %2030 = vst.msk [vmem:[#allocation2 + $0x28] sm:$0xff] %vm241_vm0, %v3254_v47  ;;  %v2020_v13 = vpop.f32.mrb[29].mxu1  ;;  %v2117_v50 = vmul.f32 0.0022675737, %v2109_v27  ;;  %v2108_v51 = vld [vmem:[#allocation2] sm:$0xff]  ;;  %v1647_v47 = vsub.f32 %v1631_v39, %v3769_v49  ;;  %v1649_v49 = vsub.f32 %v1633_v29, %v3809_v14 }
 0x1fa   : > { %2029 = vst.msk [vmem:[#allocation2 + $0x20] sm:$0xff] %vm241_vm0, %v2020_v13  ;;  %v2116_v12 = vmul.f32 0.0022675737, %v2108_v51 }
 0x1fb   : > { %v2133_v54 = vsub.f32 %v2117_v50, %v3723_v24  ;;  %v1627_v24 = vld [vmem:[#allocation2 + $0x30] sm:$0xff] }
 0x1fc   : > { %v3261_v59 = vpop.f32.mrb[30].mxu1  ;;  %v2132_v63 = vsub.f32 %v2116_v12, %v3734_v30  ;;  %v2111_v3 = vld [vmem:[#allocation2 + $0x18] sm:$0xff]  ;;  %v2131_v30 = vmul.f32 %v1165_v28, %v1165_v28  ;;  %v1650_v12 = vsub.f32 %v1634_v56, %v3800_v4 }
 0x1fd   : > { %2107 = vst.msk [vmem:[#allocation2 + $0x38] sm:$0xff] %vm241_vm0, %v3261_v59  ;;  %v2097_v2 = vpop.f32.mrb[31].mxu1  ;;  %v2692_v31 = vadd.f32 %v2133_v54, %v1646_v20  ;;  %v2119_v44 = vmul.f32 0.0022675737, %v2111_v3  ;;  %v2110_v7 = vld [vmem:[#allocation2 + $0x10] sm:$0xff] }
 0x1fe   : > { %2106 = vst.msk [vmem:[#allocation2 + $0x30] sm:$0xff] %vm241_vm0, %v2097_v2  ;;  %v2691_v21 = vadd.f32 %v2132_v63, %v1645_v33  ;;  %v2118_v34 = vmul.f32 0.0022675737, %v2110_v7  ;;  %v1636_v54 = vmul.f32 0.0022675737, %v1628_v58 }
 0x1ff   : > { %v2700_v32 = vadd.f32 0.0009, %v2692_v31  ;;  %v2135_v46 = vsub.f32 %v2119_v44, %v3749_v36  ;;  %v1635_v33 = vmul.f32 0.0022675737, %v1627_v24  ;;  %v2682_v31 = vadd.f32 %v2131_v30, %v3828_v37 }
 0x200   : > { %v3284_v27 = vpop.f32.mrb[32].mxu1  ;;  %v2699_v13 = vadd.f32 0.0009, %v2691_v21  ;;  %v2134_v50 = vsub.f32 %v2118_v34, %v3757_v40  ;;  %v2113_v51 = vld [vmem:[#allocation2 + $0x28] sm:$0xff]  ;;  %v1652_v29 = vsub.f32 %v1636_v54, %v3828_v37 }
 0x201   : > { %2363 = vst.msk [vmem:[#allocation2 + $0x8] sm:$0xff] %vm241_vm0, %v3284_v27  ;;  %v3887_v35 = vmul.f32 %v2700_v32, %v3794_v0  ;;  %v2353_v28 = vpop.f32.mrb[33].mxu1  ;;  %v2694_v36 = vadd.f32 %v2135_v46, %v1648_v45  ;;  %v2121_v19 = vmul.f32 0.0022675737, %v2113_v51  ;;  %v2112_v20 = vld [vmem:[#allocation2 + $0x20] sm:$0xff]  ;;  %v1651_v34 = vsub.f32 %v1635_v33, %v3840_v48 }
 0x202   : > { %2362 = vst.msk [vmem:[#allocation2] sm:$0xff] %vm241_vm0, %v2353_v28  ;;  %v3892_v40 = vmul.f32 %v2699_v13, %v3802_v5  ;;  %v2693_v26 = vadd.f32 %v2134_v50, %v1647_v47  ;;  %v2120_v39 = vmul.f32 0.0022675737, %v2112_v20  ;;  %v2690_v28 = vadd.f32 0.0001, %v2682_v31 }
 0x203   : > { %3414 = vrcp.f32 %v3887_v35  ;;  %v2702_v4 = vadd.f32 0.0009, %v2694_v36  ;;  %v2137_v0 = vsub.f32 %v2121_v19, %v3787_v60 }
 0x204   : > { %3416 = vrcp.f32 %v3892_v40  ;;  %v3291_v56 = vpop.f32.mrb[34].mxu1  ;;  %v2701_v59 = vadd.f32 0.0009, %v2693_v26  ;;  %v2136_v14 = vsub.f32 %v2120_v39, %v3822_v22  ;;  %v2115_v63 = vld [vmem:[#allocation2 + $0x38] sm:$0xff]  ;;  %v2681_v22 = vadd.f32 %v2130_v10, %v3840_v48 }
 0x205   : > { %2440 = vst.msk [vmem:[#allocation2 + $0x18] sm:$0xff] %vm241_vm0, %v3291_v56  ;;  %v3900_v5 = vmul.f32 %v2702_v4, %v3811_v15  ;;  %v2430_v3 = vpop.f32.mrb[35].mxu1  ;;  %v2696_v58 = vadd.f32 %v2137_v0, %v1650_v12  ;;  %v2123_v2 = vmul.f32 0.0022675737, %v2115_v63  ;;  %v2114_v44 = vld [vmem:[#allocation2 + $0x30] sm:$0xff] }
 0x206   : > { %2439 = vst.msk [vmem:[#allocation2 + $0x10] sm:$0xff] %vm241_vm0, %v2430_v3  ;;  %v3905_v60 = vmul.f32 %v2701_v59, %v3816_v18  ;;  %v2695_v24 = vadd.f32 %v2136_v14, %v1649_v49  ;;  %v2122_v7 = vmul.f32 0.0022675737, %v2114_v44  ;;  %v3914_v18 = vmul.f32 %v3855_v53, %v3752_v38 }
 0x207   : > { %3418 = vrcp.f32 %v3900_v5  ;;  %v2704_v15 = vadd.f32 0.0009, %v2696_v58  ;;  %v2139_v21 = vsub.f32 %v2123_v2, %v2131_v30  ;;  %v3921_v48 = vadd.f32 0.0001, %v3874_v23 }
 0x208   : > { %v2596_v45 = vld [vmem:[#allocation2 + $0x8] sm:$0xff]  ;;  %3420 = vrcp.f32 %v3905_v60  ;;  %v3298_v32 = vpop.f32.mrb[36].mxu1  ;;  %v2703_v46 = vadd.f32 0.0009, %v2695_v24  ;;  %v2138_v47 = vsub.f32 %v2122_v7, %v2130_v10  ;;  %v2689_v23 = vadd.f32 0.0001, %v2681_v22 }
 0x209   : > { %v2604_v27 = vmul.f32 0.0022675737, %v2596_v45  ;;  %v2595_v13 = vld [vmem:[#allocation2] sm:$0xff]  ;;  %2517 = vst.msk [vmem:[#allocation2 + $0x28] sm:$0xff] %vm241_vm0, %v3298_v32  ;;  %v3918_v37 = vmul.f32 %v2704_v15, %v3858_v16  ;;  %v2507_v30 = vpop.f32.mrb[37].mxu1  ;;  %v2698_v50 = vadd.f32 %v2139_v21, %v1652_v29 }
 0x20a   : > { %v2603_v51 = vmul.f32 0.0022675737, %v2595_v13  ;;  %2516 = vst.msk [vmem:[#allocation2 + $0x20] sm:$0xff] %vm241_vm0, %v2507_v30  ;;  %v3924_v10 = vmul.f32 %v2703_v46, %v2687_v52  ;;  %v2697_v12 = vadd.f32 %v2138_v47, %v1651_v34  ;;  %v3932_v52 = vmul.f32 %v3782_v57, %v3855_v53 }
 0x20b   : > { %v2620_v38 = vsub.f32 %v2604_v27, %v3832_v41  ;;  %3422 = vrcp.f32 %v3918_v37  ;;  %v2706_v36 = vadd.f32 0.0009, %v2698_v50 }
 0x20c   : > { %v2619_v16 = vsub.f32 %v2603_v51, %v3836_v42  ;;  %v2598_v19 = vld [vmem:[#allocation2 + $0x18] sm:$0xff]  ;;  %3424 = vrcp.f32 %v3924_v10  ;;  %v3305_v20 = vpop.f32.mrb[38].mxu1  ;;  %v2705_v49 = vadd.f32 0.0009, %v2697_v12 }
 0x20d   : > { %v3415_v26 = vpop.eup %3414  ;;  %v2652_v39 = vmul.f32 2.0, %v2620_v38  ;;  %v2606_v54 = vmul.f32 0.0022675737, %v2598_v19  ;;  %v2597_v41 = vld [vmem:[#allocation2 + $0x10] sm:$0xff]  ;;  %2594 = vst.msk [vmem:[#allocation2 + $0x38] sm:$0xff] %vm241_vm0, %v3305_v20  ;;  %v3935_v4 = vmul.f32 %v2706_v36, %v2690_v28  ;;  %v2584_v0 = vpop.f32.mrb[39].mxu1 }
 0x20e   : > { %v3417_v42 = vpop.eup %3416  ;;  %v2724_v33 = vmul.f32 %v3415_v26, %v3887_v35  ;;  %v2651_v56 = vmul.f32 2.0, %v2619_v16  ;;  %v2605_v59 = vmul.f32 0.0022675737, %v2597_v41  ;;  %2593 = vst.msk [vmem:[#allocation2 + $0x30] sm:$0xff] %vm241_vm0, %v2584_v0  ;;  %v3939_v14 = vmul.f32 %v2705_v49, %v2689_v23 }
 0x20f   : > { %v2660_v63 = vadd.f32 0.0009, %v2652_v39  ;;  %v2723_v57 = vmul.f32 %v3417_v42, %v3892_v40  ;;  %v2622_v53 = vsub.f32 %v2606_v54, %v3844_v43  ;;  %3426 = vrcp.f32 %v3935_v4 }
 0x210   : > { %v2732_v3 = vsub.f32 2.0, %v2724_v33  ;;  %v2659_v58 = vadd.f32 0.0009, %v2651_v56  ;;  %v2621_v2 = vsub.f32 %v2605_v59, %v3848_v9  ;;  %v2600_v31 = vld [vmem:[#allocation2 + $0x28] sm:$0xff]  ;;  %3428 = vrcp.f32 %v3939_v14 }
 0x211   : > { %v3419_v35 = vpop.eup %3418  ;;  %v2668_v44 = vmul.f32 %v2660_v63, %v3789_v61  ;;  %v2731_v24 = vsub.f32 2.0, %v2723_v57  ;;  %v2654_v7 = vmul.f32 2.0, %v2622_v53  ;;  %v2608_v22 = vmul.f32 0.0022675737, %v2600_v31  ;;  %v2599_v29 = vld [vmem:[#allocation2 + $0x20] sm:$0xff] }
 0x212   : > { %v3421_v15 = vpop.eup %3420  ;;  %v2740_v40 = vmul.f32 %v3415_v26, %v2732_v3  ;;  %v2667_v43 = vmul.f32 %v2659_v58, %v3791_v62  ;;  %v2726_v21 = vmul.f32 %v3419_v35, %v3900_v5  ;;  %v2653_v34 = vmul.f32 2.0, %v2621_v2 }
 0x213   : > { %v2739_v45 = vmul.f32 %v3417_v42, %v2731_v24  ;;  %v2662_v32 = vadd.f32 0.0009, %v2654_v7  ;;  %v2725_v9 = vmul.f32 %v3421_v15, %v3905_v60  ;;  %v2624_v46 = vsub.f32 %v2608_v22, %v3851_v11 }
 0x214   : > { %v2748_v47 = vmul.f32 %v2740_v40, %v2668_v44  ;;  %v2734_v27 = vsub.f32 2.0, %v2726_v21  ;;  %v2661_v61 = vadd.f32 0.0009, %v2653_v34  ;;  %v2607_v13 = vmul.f32 0.0022675737, %v2599_v29  ;;  %v2602_v39 = vld [vmem:[#allocation2 + $0x38] sm:$0xff] }
 0x215   : > { %v3423_v30 = vpop.eup %3422  ;;  %v2747_v50 = vmul.f32 %v2739_v45, %v2667_v43  ;;  %v2670_v51 = vmul.f32 %v2662_v32, %v3796_v1  ;;  %v2733_v12 = vsub.f32 2.0, %v2725_v9  ;;  %v2656_v38 = vmul.f32 2.0, %v2624_v46  ;;  %v2601_v57 = vld [vmem:[#allocation2 + $0x30] sm:$0xff] }
 0x216   : > { %v3425_v62 = vpop.eup %3424  ;;  %v2756_v28 = vsub.f32 1.0, %v2748_v47  ;;  %v2742_v5 = vmul.f32 %v3419_v35, %v2734_v27  ;;  %v2669_v36 = vmul.f32 %v2661_v61, %v3804_v6  ;;  %v2728_v16 = vmul.f32 %v3423_v30, %v3918_v37 }
 0x217   : > { %v2755_v60 = vsub.f32 1.0, %v2747_v50  ;;  %v2741_v19 = vmul.f32 %v3421_v15, %v2733_v12  ;;  %v2664_v11 = vadd.f32 0.0009, %v2656_v38  ;;  %v2623_v20 = vsub.f32 %v2607_v13, %v3866_v55 }
 0x218   : > { %v2764_v23 = vmul.f32 0.5, %v2756_v28  ;;  %v2750_v49 = vmul.f32 %v2742_v5, %v2670_v51  ;;  %v2736_v26 = vsub.f32 2.0, %v2728_v16  ;;  %v2727_v1 = vmul.f32 %v3425_v62, %v3924_v10 }
 0x219   : > { %v3427_v54 = vpop.eup %3426  ;;  %v2763_v41 = vmul.f32 0.5, %v2755_v60  ;;  %v2749_v0 = vmul.f32 %v2741_v19, %v2669_v36  ;;  %v2672_v42 = vmul.f32 %v2664_v11, %v3813_v17  ;;  %v2655_v6 = vmul.f32 2.0, %v2623_v20 }
 0x21a   : > { %v3429_v33 = vpop.eup %3428  ;;  %v2772_v37 = vmax.f32 %v2764_v23, 0.0  ;;  %v2758_v56 = vsub.f32 1.0, %v2750_v49  ;;  %v2744_v59 = vmul.f32 %v3423_v30, %v2736_v26  ;;  %v2735_v63 = vsub.f32 2.0, %v2727_v1 }
 0x21b   : > { %v2771_v55 = vmax.f32 %v2763_v41, 0.0  ;;  %v2757_v10 = vsub.f32 1.0, %v2749_v0  ;;  %v2663_v53 = vadd.f32 0.0009, %v2655_v6  ;;  %v2610_v3 = vmul.f32 0.0022675737, %v2602_v39 }
 0x21c   : > { %v2780_v58 = vmin.f32 %v2772_v37, 1.0  ;;  %v2766_v17 = vmul.f32 0.5, %v2758_v56  ;;  %v2752_v2 = vmul.f32 %v2744_v59, %v2672_v42  ;;  %v2743_v31 = vmul.f32 %v3425_v62, %v2735_v63 }
 0x21d   : > { %v2779_v35 = vmin.f32 %v2771_v55, 1.0  ;;  %v2765_v44 = vmul.f32 0.5, %v2757_v10  ;;  %v2671_v24 = vmul.f32 %v2663_v53, %v3824_v25  ;;  %v2626_v7 = vsub.f32 %v2610_v3, %v3871_v8 }
 0x21e   : > { %2788 = vst.msk [vmem:[%s3961_s9 + $0x8] sm:$0xff] %vm241_vm0, %v2780_v58  ;;  %v2774_v22 = vmax.f32 %v2766_v17, 0.0  ;;  %v2760_v29 = vsub.f32 1.0, %v2752_v2  ;;  %v2730_v15 = vmul.f32 %v3427_v54, %v3935_v4  ;;  %v2609_v40 = vmul.f32 0.0022675737, %v2601_v57 }
 0x21f   : > { %2787 = vst.msk [vmem:[%s3961_s9] sm:$0xff] %vm241_vm0, %v2779_v35  ;;  %v2773_v43 = vmax.f32 %v2765_v44, 0.0  ;;  %v2751_v21 = vmul.f32 %v2743_v31, %v2671_v24  ;;  %v2658_v34 = vmul.f32 2.0, %v2626_v7  ;;  %v2729_v45 = vmul.f32 %v3429_v33, %v3939_v14 }
 0x220   : > { %v2782_v32 = vmin.f32 %v2774_v22, 1.0  ;;  %v2768_v25 = vmul.f32 0.5, %v2760_v29  ;;  %v2738_v9 = vsub.f32 2.0, %v2730_v15  ;;  %v2625_v8 = vsub.f32 %v2609_v40, %v3914_v18 }
 0x221   : > { %v2781_v46 = vmin.f32 %v2773_v43, 1.0  ;;  %v2759_v47 = vsub.f32 1.0, %v2751_v21  ;;  %v2666_v27 = vadd.f32 0.0009, %v2658_v34  ;;  %v2737_v61 = vsub.f32 2.0, %v2729_v45 }
 0x222   : > { %2790 = vst.msk [vmem:[%s3961_s9 + $0x18] sm:$0xff] %vm241_vm0, %v2782_v32  ;;  %v2776_v4 = vmax.f32 %v2768_v25, 0.0  ;;  %v2746_v13 = vmul.f32 %v3427_v54, %v2738_v9  ;;  %v2657_v30 = vmul.f32 2.0, %v2625_v8  ;;  %v2649_v51 = vadd.f32 0.0001, %v3932_v52 }
 0x223   : > { %2789 = vst.msk [vmem:[%s3961_s9 + $0x10] sm:$0xff] %vm241_vm0, %v2781_v46  ;;  %v2767_v50 = vmul.f32 0.5, %v2759_v47  ;;  %v2674_v14 = vmul.f32 %v2666_v27, %v3921_v48  ;;  %v2745_v38 = vmul.f32 %v3429_v33, %v2737_v61 }
 0x224   : > { %v2784_v12 = vmin.f32 %v2776_v4, 1.0  ;;  %v2665_v18 = vadd.f32 0.0009, %v2657_v30 }
 0x225   : > { %v2775_v62 = vmax.f32 %v2767_v50, 0.0  ;;  %v2754_v28 = vmul.f32 %v2746_v13, %v2674_v14 }
 0x226   : > { %2792 = vst.msk [vmem:[%s3961_s9 + $0x28] sm:$0xff] %vm241_vm0, %v2784_v12  ;;  %v2673_v5 = vmul.f32 %v2665_v18, %v2649_v51 }
 0x227   : > { %v2783_v36 = vmin.f32 %v2775_v62, 1.0  ;;  %v2762_v16 = vsub.f32 1.0, %v2754_v28 }
 0x228   : > { %v2753_v60 = vmul.f32 %v2745_v38, %v2673_v5 }
 0x229   : > { %2791 = vst.msk [vmem:[%s3961_s9 + $0x20] sm:$0xff] %vm241_vm0, %v2783_v36  ;;  %v2770_v19 = vmul.f32 0.5, %v2762_v16 }
 0x22a   : > { %v2761_v11 = vsub.f32 1.0, %v2753_v60 }
 0x22b   : > { %v2778_v48 = vmax.f32 %v2770_v19, 0.0 }
 0x22c   : > { %v2769_v20 = vmul.f32 0.5, %v2761_v11 }
 0x22d   : > { %v2786_v52 = vmin.f32 %v2778_v48, 1.0 }
 0x22e   : > { %v2777_v23 = vmax.f32 %v2769_v20, 0.0 }
 0x22f   : > { %2794 = vst.msk [vmem:[%s3961_s9 + $0x38] sm:$0xff] %vm241_vm0, %v2786_v52 }
 0x230   : > { %v2785_v49 = vmin.f32 %v2777_v23, 1.0 }
 0x232   : > { %2793 = vst.msk [vmem:[%s3961_s9 + $0x30] sm:$0xff] %vm241_vm0, %v2785_v49 }
 0x233 PF: > { %s14_s15 = sadd.s32 1, %s3436_s15  }
 0x234   : > { %p11_p4 = scmp.ge.s32.totalorder %s14_s15, 4  }
 0x236   :  { %13 = sbr.rel (!%p11_p4) target bundleno = 1 (0x1), region = 69 }

</bundles_post_ra>
